<compile_context>
chip_gen: v5e
topology: v5e:2x2
jax: 0.10.0
libtpu: 0.0.40
codegen_flags: <defaults>
</compile_context>

<pallas_src>
import functools
import math

import jax
import jax.numpy as jnp
from jax.experimental import pallas as pl
from jax.experimental.pallas import tpu as pltpu


# ---------------------------------------------------------------------------
# helpers
# ---------------------------------------------------------------------------
def _round_up(x, m):
    return ((x + m - 1) // m) * m


# ---------------------------------------------------------------------------
# Pallas matmul kernel with fused bias epilogue (conv-as-im2col and fc layers)
#   out[i,j] = sum_k x[i,k] * w[k,j] + b[j]      (bf16 in, f32 accumulate, bf16 out)
# ---------------------------------------------------------------------------
def _mm_bias_kernel(x_ref, w_ref, b_ref, o_ref, acc_ref):
    @pl.when(pl.program_id(2) == 0)
    def _():
        acc_ref[...] = jnp.zeros_like(acc_ref)

    acc_ref[...] += jnp.dot(x_ref[...], w_ref[...], preferred_element_type=jnp.float32)

    @pl.when(pl.program_id(2) == pl.num_programs(2) - 1)
    def _():
        o_ref[...] = (acc_ref[...] + b_ref[...]).astype(o_ref.dtype)


def pallas_matmul_bias(x, w, b, out_dtype=jnp.bfloat16):
    """x: [M, K], w: [K, N], b: [N] -> [M, N] (out_dtype). Tiles M/N ("parallel") and
    streams K ("arbitrary") through an f32 VMEM accumulator. N is padded to a lane-dense
    multiple of 128 for unmasked stores."""
    M, K = x.shape
    K2, N = w.shape
    assert K == K2 and b.shape == (N,)
    x = x.astype(jnp.bfloat16)
    w = w.astype(jnp.bfloat16)
    b = b.astype(jnp.float32)

    # Tile selection (fits v7x 32 MiB scoped VMEM comfortably; good v5e/v6e utilization).
    tm = min(512, _round_up(M, 8))
    Mp = _round_up(M, tm)
    Np = _round_up(N, 128)
    tn = min(256, Np)
    Np = _round_up(Np, tn)
    if K <= 2048:                      # full-K block: no K padding, single K step
        tk, Kp = K, K
    else:                              # stream K (e.g. fc5 at channels=128: K=8192)
        tk = 512
        Kp = _round_up(K, tk)

    if (Mp, Kp) != (M, K):
        x = jnp.pad(x, ((0, Mp - M), (0, Kp - K)))
    if (Kp, Np) != (K, N):
        w = jnp.pad(w, ((0, Kp - K), (0, Np - N)))
    if Np != N:
        b = jnp.pad(b, (0, Np - N))
    b2 = b.reshape(1, Np)

    out = pl.pallas_call(
        _mm_bias_kernel,
        out_shape=jax.ShapeDtypeStruct((Mp, Np), out_dtype),
        grid=(Mp // tm, Np // tn, Kp // tk),
        in_specs=[
            pl.BlockSpec((tm, tk), lambda i, j, k: (i, k)),
            pl.BlockSpec((tk, tn), lambda i, j, k: (k, j)),
            pl.BlockSpec((1, tn), lambda i, j, k: (0, j)),
        ],
        out_specs=pl.BlockSpec((tm, tn), lambda i, j, k: (i, j)),
        scratch_shapes=[pltpu.VMEM((tm, tn), jnp.float32)],
        compiler_params=pltpu.CompilerParams(
            dimension_semantics=("parallel", "parallel", "arbitrary")),
    )(x, w, b2)
    return out[:M, :N]


# ---------------------------------------------------------------------------
# Pallas multi-step Parametric-LIF neuron kernel
#   H[t] = V[t-1] + (X[t] - (V[t-1] - v_reset)) * sigmoid(w)     (decay_input=True)
#   S[t] = heaviside(H[t] - v_threshold)
#   V[t] = H[t] * (1 - S[t]) + v_reset * S[t]                    (hard reset)
# sigmoid(w) at init = 1 / init_tau = 0.5 for init_tau = 2.0
# ---------------------------------------------------------------------------
PLIF_DECAY = 0.5       # sigmoid(w), w = -log(init_tau - 1), init_tau = 2.0
PLIF_V_TH = 1.0
PLIF_V_RESET = 0.0


def _plif_kernel(x_ref, o_ref, v_ref, *, decay, v_th, v_reset):
    # grid = (row_tiles, T): axis 1 (T) is the recurrence.
    @pl.when(pl.program_id(1) == 0)
    def _():
        v_ref[...] = jnp.full_like(v_ref, v_reset)

    v = v_ref[...]                              # f32 state
    x = x_ref[0].astype(jnp.float32)            # bf16 in, f32 math (v5e-safe)
    h = v + (x - (v - v_reset)) * decay
    spike = (h >= v_th).astype(jnp.float32)
    v_ref[...] = h * (1.0 - spike) + v_reset * spike
    o_ref[0] = spike.astype(o_ref.dtype)


def plif_multistep(x, decay=PLIF_DECAY, v_th=PLIF_V_TH, v_reset=PLIF_V_RESET):
    """x: [T, ...] -> spikes (bf16), same shape. Recurrence over T inside the kernel,
    feature rows tiled on a leading 'parallel' grid axis (megacore-shardable)."""
    T = x.shape[0]
    orig_shape = x.shape
    F = math.prod(x.shape[1:])
    L = 128
    R = _round_up(-(-F // L), 8)          # rows of 128 lanes, multiple of 8
    tile_r = min(256, R)
    R = _round_up(R, tile_r)
    Fp = R * L

    xf = x.reshape(T, F).astype(jnp.bfloat16)
    if Fp != F:
        xf = jnp.pad(xf, ((0, 0), (0, Fp - F)))
    xf = xf.reshape(T, R, L)

    out = pl.pallas_call(
        functools.partial(_plif_kernel, decay=decay, v_th=v_th, v_reset=v_reset),
        out_shape=jax.ShapeDtypeStruct((T, R, L), jnp.bfloat16),
        grid=(R // tile_r, T),
        in_specs=[pl.BlockSpec((1, tile_r, L), lambda r, t: (t, r, 0))],
        out_specs=pl.BlockSpec((1, tile_r, L), lambda r, t: (t, r, 0)),
        scratch_shapes=[pltpu.VMEM((tile_r, L), jnp.float32)],
        compiler_params=pltpu.CompilerParams(
            dimension_semantics=("parallel", "arbitrary")),
    )(xf)
    return out.reshape(T, Fp)[:, :F].reshape(orig_shape)


# ---------------------------------------------------------------------------
# conv / pool / voting glue (NHWC, bf16)
# ---------------------------------------------------------------------------
def conv3x3_bn(x_nhwc, wk, bias):
    """3x3 conv (pad=1) + eval-mode BatchNorm, both folded into wk/bias.
    x_nhwc: [B, H, W, Cin] (any float dtype); wk: [9*Cin, Cout] bf16 (K-order kh,kw,cin);
    bias: [Cout] f32. Returns [B, H, W, Cout] bf16."""
    # TODO(synk): a single-pass direct-conv kernel (9 shifted matmuls accumulated in VMEM)
    # would remove the 9x im2col HBM blowup; im2col is kept in bf16 NHWC for robustness.
    B, H, W, Cin = x_nhwc.shape
    Cout = bias.shape[0]
    xp = jnp.pad(x_nhwc.astype(jnp.bfloat16), ((0, 0), (1, 1), (1, 1), (0, 0)))
    cols = [xp[:, kh:kh + H, kw:kw + W, :] for kh in range(3) for kw in range(3)]
    patches = jnp.concatenate(cols, axis=-1).reshape(B * H * W, 9 * Cin)
    y = pallas_matmul_bias(patches, wk, bias)
    return y.reshape(B, H, W, Cout)


def maxpool2x2_nhwc(x):
    B, H, W, C = x.shape
    return x.reshape(B, H // 2, 2, W // 2, 2, C).max(axis=(2, 4))


# ---------------------------------------------------------------------------
# MultiStepCIFAR10DVSNet forward
# ---------------------------------------------------------------------------
def multi_step_cifar10dvs_forward(params, x_seq):
    """x_seq: [T, N, 2, H, W] (H = W = 128 for CIFAR10-DVS) -> [T, N, 10]."""
    T, N, Cin, H, W = x_seq.shape
    z = x_seq.reshape(T * N, Cin, H, W).transpose(0, 2, 3, 1)      # NHWC

    def conv_block(z, idx, h, w):
        z = conv3x3_bn(z, params[f"conv{idx}_wk"], params[f"conv{idx}_b"])
        s = plif_multistep(z.reshape(T, N, h, w, -1))              # sn{idx}
        return maxpool2x2_nhwc(s.reshape(T * N, h, w, -1))         # pool{idx}

    z = conv_block(z, 1, H, W)                  # -> [T*N, H/2,  W/2,  C]
    z = conv_block(z, 2, H // 2, W // 2)        # -> [T*N, H/4,  W/4,  C]
    z = conv_block(z, 3, H // 4, W // 4)        # -> [T*N, H/8,  W/8,  C]
    z = conv_block(z, 4, H // 8, W // 8)        # -> [T*N, H/16, W/16, C]

    Hp, Wp = H // 16, W // 16
    C = z.shape[-1]
    # flatten(2): PyTorch NCHW channel-major flatten order
    z = z.transpose(0, 3, 1, 2).reshape(T * N, C * Hp * Wp)

    # dp5: MultiStepDropout(0.5) identity in eval mode
    # TODO(synk): training-mode dropout mask (shared over T) not implemented (eval semantics).
    z = pallas_matmul_bias(z, params["fc5_wk"], params["fc5_b"])
    s = plif_multistep(z.reshape(T, N, -1))                        # sn5

    # dp6: identity in eval mode
    z = pallas_matmul_bias(s.reshape(T * N, -1), params["fc6_wk"], params["fc6_b"])
    s = plif_multistep(z.reshape(T, N, -1))                        # sn6, [T, N, 100]

    # voting: avg_pool1d(kernel=10, stride=10) over the class dim
    out = s.astype(jnp.float32).reshape(T, N, 10, 10).mean(axis=-1)
    return out                                                     # [T, N, 10]


# ---------------------------------------------------------------------------
# deterministic parameter construction (conv+BN folded, fc weights pre-transposed, bf16)
# ---------------------------------------------------------------------------
def make_params(channels, key):
    ks = list(jax.random.split(key, 28))
    eps = 1e-5

    def conv_bn_fold(kw_, kcb, kg, kb, km, kv, cin, cout):
        w = jax.random.normal(kw_, (cout, cin, 3, 3), jnp.float32) / math.sqrt(cin * 9)
        conv_b = 0.05 * jax.random.normal(kcb, (cout,), jnp.float32)
        gamma = 1.0 + 0.1 * jax.random.normal(kg, (cout,), jnp.float32)
        beta = 0.1 * jax.random.normal(kb, (cout,), jnp.float32)
        mean = 0.1 * jax.random.normal(km, (cout,), jnp.float32)
        var = 1.0 + 0.1 * jnp.abs(jax.random.normal(kv, (cout,), jnp.float32))
        scale = gamma / jnp.sqrt(var + eps)
        # K-order (kh, kw, cin) to match NHWC im2col; fold BN scale; prepack as bf16 [K, Cout].
        wk = (w.transpose(2, 3, 1, 0).reshape(cin * 9, cout) * scale[None, :]).astype(jnp.bfloat16)
        bias = beta + (conv_b - mean) * scale
        return wk, bias

    p = {}
    cins = [2, channels, channels, channels]
    for i in range(4):
        wk, b = conv_bn_fold(*ks[i * 6:(i + 1) * 6], cins[i], channels)
        p[f"conv{i + 1}_wk"] = wk
        p[f"conv{i + 1}_b"] = b

    fc5_in = channels * 8 * 8
    fc5_w = jax.random.normal(ks[24], (512, fc5_in), jnp.float32) / math.sqrt(fc5_in)
    fc5_b = 0.01 * jax.random.normal(ks[25], (512,), jnp.float32)
    fc6_w = jax.random.normal(ks[26], (100, 512), jnp.float32) / math.sqrt(512.0)
    fc6_b = 0.01 * jax.random.normal(ks[27], (100,), jnp.float32)

    p["fc5_wk"] = fc5_w.T.astype(jnp.bfloat16)     # pre-transposed [K, N], bf16
    p["fc5_b"] = fc5_b
    p["fc6_wk"] = fc6_w.T.astype(jnp.bfloat16)
    p["fc6_b"] = fc6_b
    return p


if __name__ == "__main__":
    key = jax.random.PRNGKey(0)
    k_param, k_x = jax.random.split(key)

    channels = 8     # module default is 128; kept small for the demo
    batch = 2
    T = 4
    H = W = 128      # CIFAR10-DVS frame size (fc5 expects channels*8*8 after 4 pools)

    x = jax.random.normal(k_x, (T, batch, 2, H, W), jnp.float32)
    params = make_params(channels, k_param)

    fwd = jax.jit(multi_step_cifar10dvs_forward)
    out = jax.block_until_ready(fwd(params, x))
    assert out.shape == (T, batch, 10), out.shape
    assert bool(jnp.all(jnp.isfinite(out)))
    print("KERNEL_OK")
</pallas_src>

<mosaic_0001>
module attributes {stable_mosaic.version = 11 : i64} {
  func.func @_mm_bias_kernel(%arg0: i32, %arg1: i32, %arg2: i32, %arg3: memref<512x18xbf16, #tpu.memory_space<vmem>>, %arg4: memref<18x128xbf16, #tpu.memory_space<vmem>>, %arg5: memref<1x128xf32, #tpu.memory_space<vmem>>, %arg6: memref<512x128xbf16, #tpu.memory_space<vmem>>, %arg7: memref<512x128xf32, #tpu.memory_space<vmem>>) attributes {dimension_semantics = [#tpu.dimension_semantics<parallel>, #tpu.dimension_semantics<parallel>, #tpu.dimension_semantics<arbitrary>], iteration_bounds = array<i64: 256, 1, 1>, scalar_prefetch = 0 : i64, scratch_operands = 1 : i64, tpu.core_type = #tpu.core_type<tc>, window_params = [{transform_indices = @transform_0, window_bounds = array<i64: 512, 18>}, {transform_indices = @transform_1, window_bounds = array<i64: 18, 128>}, {transform_indices = @transform_2, window_bounds = array<i64: 1, 128>}, {transform_indices = @transform_3, window_bounds = array<i64: 512, 128>}]} {
    %c0_i32 = arith.constant 0 : i32
    %0 = arith.cmpi eq, %arg2, %c0_i32 : i32
    %1 = arith.extui %0 : i1 to i32
    %c0_i32_0 = arith.constant 0 : i32
    %2 = arith.cmpi ne, %1, %c0_i32_0 : i32
    scf.if %2 {
      %cst_10 = arith.constant 0.000000e+00 : f32
      %12 = vector.broadcast %cst_10 : f32 to vector<512x128xf32>
      %c0_11 = arith.constant 0 : index
      %c0_12 = arith.constant 0 : index
      %13 = vector.load %arg7[%c0_11, %c0_12] : memref<512x128xf32, #tpu.memory_space<vmem>>, vector<512x128xf32>
      tpu.vector_store %arg7[%c0_11, %c0_12], %12 {strides = array<i32>} : memref<512x128xf32, #tpu.memory_space<vmem>>, vector<512x128xf32>,
    } else {
    }
    %c0 = arith.constant 0 : index
    %c0_1 = arith.constant 0 : index
    %3 = vector.load %arg7[%c0, %c0_1] : memref<512x128xf32, #tpu.memory_space<vmem>>, vector<512x128xf32>
    %c0_2 = arith.constant 0 : index
    %c0_3 = arith.constant 0 : index
    %4 = vector.load %arg3[%c0_2, %c0_3] : memref<512x18xbf16, #tpu.memory_space<vmem>>, vector<512x18xbf16>
    %c0_4 = arith.constant 0 : index
    %c0_5 = arith.constant 0 : index
    %5 = vector.load %arg4[%c0_4, %c0_5] : memref<18x128xbf16, #tpu.memory_space<vmem>>, vector<18x128xbf16>
    %cst = arith.constant dense<0.000000e+00> : vector<512x128xf32>
    %6 = tpu.matmul %4, %5, %cst {dimension_numbers = #tpu.dot_dimension_numbers<[1], [0], [0], [1], [0, 0, 1, 1], [], []>} : vector<512x18xbf16>, vector<18x128xbf16>, vector<512x128xf32> -> vector<512x128xf32>
    %7 = arith.addf %3, %6 : vector<512x128xf32>
    %c0_6 = arith.constant 0 : index
    %c0_7 = arith.constant 0 : index
    %8 = vector.load %arg7[%c0_6, %c0_7] : memref<512x128xf32, #tpu.memory_space<vmem>>, vector<512x128xf32>
    tpu.vector_store %arg7[%c0_6, %c0_7], %7 {strides = array<i32>} : memref<512x128xf32, #tpu.memory_space<vmem>>, vector<512x128xf32>,
    %c0_i32_8 = arith.constant 0 : i32
    %9 = arith.cmpi eq, %arg2, %c0_i32_8 : i32
    %10 = arith.extui %9 : i1 to i32
    %c0_i32_9 = arith.constant 0 : i32
    %11 = arith.cmpi ne, %10, %c0_i32_9 : i32
    scf.if %11 {
      %c0_10 = arith.constant 0 : index
      %c0_11 = arith.constant 0 : index
      %12 = vector.load %arg7[%c0_10, %c0_11] : memref<512x128xf32, #tpu.memory_space<vmem>>, vector<512x128xf32>
      %c0_12 = arith.constant 0 : index
      %c0_13 = arith.constant 0 : index
      %13 = vector.load %arg5[%c0_12, %c0_13] : memref<1x128xf32, #tpu.memory_space<vmem>>, vector<1x128xf32>
      %14 = vector.broadcast %13 : vector<1x128xf32> to vector<512x128xf32>
      %15 = arith.addf %12, %14 : vector<512x128xf32>
      %16 = arith.truncf %15 : vector<512x128xf32> to vector<512x128xbf16>
      %c0_14 = arith.constant 0 : index
      %c0_15 = arith.constant 0 : index
      %17 = vector.load %arg6[%c0_14, %c0_15] : memref<512x128xbf16, #tpu.memory_space<vmem>>, vector<512x128xbf16>
      tpu.vector_store %arg6[%c0_14, %c0_15], %16 {strides = array<i32>} : memref<512x128xbf16, #tpu.memory_space<vmem>>, vector<512x128xbf16>,
    } else {
    }
    return
  }
  func.func @transform_0(%arg0: i32, %arg1: i32, %arg2: i32) -> (i32, i32) {
    %c0_i32 = arith.constant 0 : i32
    return %arg0, %arg2 : i32, i32
  }
  func.func @transform_1(%arg0: i32, %arg1: i32, %arg2: i32) -> (i32, i32) {
    %c0_i32 = arith.constant 0 : i32
    return %arg2, %arg1 : i32, i32
  }
  func.func @transform_2(%arg0: i32, %arg1: i32, %arg2: i32) -> (i32, i32) {
    %c0_i32 = arith.constant 0 : i32
    %c0_i32_0 = arith.constant 0 : i32
    return %c0_i32, %arg1 : i32, i32
  }
  func.func @transform_3(%arg0: i32, %arg1: i32, %arg2: i32) -> (i32, i32) {
    %c0_i32 = arith.constant 0 : i32
    return %arg0, %arg1 : i32, i32
  }
}

module attributes {stable_mosaic.version = 11 : i64} {
  func.func @_plif_kernel(%arg0: i32, %arg1: i32, %arg2: memref<1x256x128xbf16, #tpu.memory_space<vmem>>, %arg3: memref<1x256x128xbf16, #tpu.memory_space<vmem>>, %arg4: memref<256x128xf32, #tpu.memory_space<vmem>>) attributes {dimension_semantics = [#tpu.dimension_semantics<parallel>, #tpu.dimension_semantics<arbitrary>], iteration_bounds = array<i64: 8, 4>, scalar_prefetch = 0 : i64, scratch_operands = 1 : i64, tpu.core_type = #tpu.core_type<tc>, window_params = [{transform_indices = @transform_0, window_bounds = array<i64: 1, 256, 128>}, {transform_indices = @transform_1, window_bounds = array<i64: 1, 256, 128>}]} {
    %c0_i32 = arith.constant 0 : i32
    %0 = arith.cmpi eq, %arg1, %c0_i32 : i32
    %1 = arith.extui %0 : i1 to i32
    %c0_i32_0 = arith.constant 0 : i32
    %2 = arith.cmpi ne, %1, %c0_i32_0 : i32
    scf.if %2 {
      %cst_14 = arith.constant 0.000000e+00 : f32
      %28 = vector.broadcast %cst_14 : f32 to vector<256x128xf32>
      %c0_15 = arith.constant 0 : index
      %c0_16 = arith.constant 0 : index
      %29 = vector.load %arg4[%c0_15, %c0_16] : memref<256x128xf32, #tpu.memory_space<vmem>>, vector<256x128xf32>
      tpu.vector_store %arg4[%c0_15, %c0_16], %28 {strides = array<i32>} : memref<256x128xf32, #tpu.memory_space<vmem>>, vector<256x128xf32>,
    } else {
    }
    %c0 = arith.constant 0 : index
    %c0_1 = arith.constant 0 : index
    %3 = vector.load %arg4[%c0, %c0_1] : memref<256x128xf32, #tpu.memory_space<vmem>>, vector<256x128xf32>
    %c0_2 = arith.constant 0 : index
    %c0_3 = arith.constant 0 : index
    %c0_4 = arith.constant 0 : index
    %4 = vector.load %arg2[%c0_2, %c0_3, %c0_4] : memref<1x256x128xbf16, #tpu.memory_space<vmem>>, vector<1x256x128xbf16>
    %5 = vector.shape_cast %4 : vector<1x256x128xbf16> to vector<256x128xbf16>
    %6 = arith.extf %5 : vector<256x128xbf16> to vector<256x128xf32>
    %cst = arith.constant 0.000000e+00 : f32
    %7 = vector.broadcast %cst : f32 to vector<256x128xf32>
    %8 = arith.subf %3, %7 : vector<256x128xf32>
    %9 = arith.subf %6, %8 : vector<256x128xf32>
    %cst_5 = arith.constant 5.000000e-01 : f32
    %10 = vector.broadcast %cst_5 : f32 to vector<256x128xf32>
    %11 = arith.mulf %9, %10 : vector<256x128xf32>
    %12 = arith.addf %3, %11 : vector<256x128xf32>
    %cst_6 = arith.constant 1.000000e+00 : f32
    %13 = vector.broadcast %cst_6 : f32 to vector<256x128xf32>
    %14 = arith.cmpf oge, %12, %13 : vector<256x128xf32>
    %15 = arith.extui %14 : vector<256x128xi1> to vector<256x128xi32>
    %16 = arith.sitofp %15 : vector<256x128xi32> to vector<256x128xf32>
    %cst_7 = arith.constant 1.000000e+00 : f32
    %17 = vector.broadcast %cst_7 : f32 to vector<256x128xf32>
    %18 = arith.subf %17, %16 : vector<256x128xf32>
    %19 = arith.mulf %12, %18 : vector<256x128xf32>
    %cst_8 = arith.constant 0.000000e+00 : f32
    %20 = vector.broadcast %cst_8 : f32 to vector<256x128xf32>
    %21 = arith.mulf %20, %16 : vector<256x128xf32>
    %22 = arith.addf %19, %21 : vector<256x128xf32>
    %c0_9 = arith.constant 0 : index
    %c0_10 = arith.constant 0 : index
    %23 = vector.load %arg4[%c0_9, %c0_10] : memref<256x128xf32, #tpu.memory_space<vmem>>, vector<256x128xf32>
    tpu.vector_store %arg4[%c0_9, %c0_10], %22 {strides = array<i32>} : memref<256x128xf32, #tpu.memory_space<vmem>>, vector<256x128xf32>,
    %24 = arith.truncf %16 : vector<256x128xf32> to vector<256x128xbf16>
    %c0_11 = arith.constant 0 : index
    %c0_12 = arith.constant 0 : index
    %c0_13 = arith.constant 0 : index
    %25 = vector.load %arg3[%c0_11, %c0_12, %c0_13] : memref<1x256x128xbf16, #tpu.memory_space<vmem>>, vector<1x256x128xbf16>
    %26 = vector.shape_cast %25 : vector<1x256x128xbf16> to vector<256x128xbf16>
    %27 = vector.shape_cast %24 : vector<256x128xbf16> to vector<1x256x128xbf16>
    tpu.vector_store %arg3[%c0_11, %c0_12, %c0_13], %27 {strides = array<i32>} : memref<1x256x128xbf16, #tpu.memory_space<vmem>>, vector<1x256x128xbf16>,
    return
  }
  func.func @transform_0(%arg0: i32, %arg1: i32) -> (i32, i32, i32) {
    %c0_i32 = arith.constant 0 : i32
    %c0_i32_0 = arith.constant 0 : i32
    return %arg1, %arg0, %c0_i32 : i32, i32, i32
  }
  func.func @transform_1(%arg0: i32, %arg1: i32) -> (i32, i32, i32) {
    %c0_i32 = arith.constant 0 : i32
    %c0_i32_0 = arith.constant 0 : i32
    return %arg1, %arg0, %c0_i32 : i32, i32, i32
  }
}

module attributes {stable_mosaic.version = 11 : i64} {
  func.func @_mm_bias_kernel(%arg0: i32, %arg1: i32, %arg2: i32, %arg3: memref<512x72xbf16, #tpu.memory_space<vmem>>, %arg4: memref<72x128xbf16, #tpu.memory_space<vmem>>, %arg5: memref<1x128xf32, #tpu.memory_space<vmem>>, %arg6: memref<512x128xbf16, #tpu.memory_space<vmem>>, %arg7: memref<512x128xf32, #tpu.memory_space<vmem>>) attributes {dimension_semantics = [#tpu.dimension_semantics<parallel>, #tpu.dimension_semantics<parallel>, #tpu.dimension_semantics<arbitrary>], iteration_bounds = array<i64: 64, 1, 1>, scalar_prefetch = 0 : i64, scratch_operands = 1 : i64, tpu.core_type = #tpu.core_type<tc>, window_params = [{transform_indices = @transform_0, window_bounds = array<i64: 512, 72>}, {transform_indices = @transform_1, window_bounds = array<i64: 72, 128>}, {transform_indices = @transform_2, window_bounds = array<i64: 1, 128>}, {transform_indices = @transform_3, window_bounds = array<i64: 512, 128>}]} {
    %c0_i32 = arith.constant 0 : i32
    %0 = arith.cmpi eq, %arg2, %c0_i32 : i32
    %1 = arith.extui %0 : i1 to i32
    %c0_i32_0 = arith.constant 0 : i32
    %2 = arith.cmpi ne, %1, %c0_i32_0 : i32
    scf.if %2 {
      %cst_10 = arith.constant 0.000000e+00 : f32
      %12 = vector.broadcast %cst_10 : f32 to vector<512x128xf32>
      %c0_11 = arith.constant 0 : index
      %c0_12 = arith.constant 0 : index
      %13 = vector.load %arg7[%c0_11, %c0_12] : memref<512x128xf32, #tpu.memory_space<vmem>>, vector<512x128xf32>
      tpu.vector_store %arg7[%c0_11, %c0_12], %12 {strides = array<i32>} : memref<512x128xf32, #tpu.memory_space<vmem>>, vector<512x128xf32>,
    } else {
    }
    %c0 = arith.constant 0 : index
    %c0_1 = arith.constant 0 : index
    %3 = vector.load %arg7[%c0, %c0_1] : memref<512x128xf32, #tpu.memory_space<vmem>>, vector<512x128xf32>
    %c0_2 = arith.constant 0 : index
    %c0_3 = arith.constant 0 : index
    %4 = vector.load %arg3[%c0_2, %c0_3] : memref<512x72xbf16, #tpu.memory_space<vmem>>, vector<512x72xbf16>
    %c0_4 = arith.constant 0 : index
    %c0_5 = arith.constant 0 : index
    %5 = vector.load %arg4[%c0_4, %c0_5] : memref<72x128xbf16, #tpu.memory_space<vmem>>, vector<72x128xbf16>
    %cst = arith.constant dense<0.000000e+00> : vector<512x128xf32>
    %6 = tpu.matmul %4, %5, %cst {dimension_numbers = #tpu.dot_dimension_numbers<[1], [0], [0], [1], [0, 0, 1, 1], [], []>} : vector<512x72xbf16>, vector<72x128xbf16>, vector<512x128xf32> -> vector<512x128xf32>
    %7 = arith.addf %3, %6 : vector<512x128xf32>
    %c0_6 = arith.constant 0 : index
    %c0_7 = arith.constant 0 : index
    %8 = vector.load %arg7[%c0_6, %c0_7] : memref<512x128xf32, #tpu.memory_space<vmem>>, vector<512x128xf32>
    tpu.vector_store %arg7[%c0_6, %c0_7], %7 {strides = array<i32>} : memref<512x128xf32, #tpu.memory_space<vmem>>, vector<512x128xf32>,
    %c0_i32_8 = arith.constant 0 : i32
    %9 = arith.cmpi eq, %arg2, %c0_i32_8 : i32
    %10 = arith.extui %9 : i1 to i32
    %c0_i32_9 = arith.constant 0 : i32
    %11 = arith.cmpi ne, %10, %c0_i32_9 : i32
    scf.if %11 {
      %c0_10 = arith.constant 0 : index
      %c0_11 = arith.constant 0 : index
      %12 = vector.load %arg7[%c0_10, %c0_11] : memref<512x128xf32, #tpu.memory_space<vmem>>, vector<512x128xf32>
      %c0_12 = arith.constant 0 : index
      %c0_13 = arith.constant 0 : index
      %13 = vector.load %arg5[%c0_12, %c0_13] : memref<1x128xf32, #tpu.memory_space<vmem>>, vector<1x128xf32>
      %14 = vector.broadcast %13 : vector<1x128xf32> to vector<512x128xf32>
      %15 = arith.addf %12, %14 : vector<512x128xf32>
      %16 = arith.truncf %15 : vector<512x128xf32> to vector<512x128xbf16>
      %c0_14 = arith.constant 0 : index
      %c0_15 = arith.constant 0 : index
      %17 = vector.load %arg6[%c0_14, %c0_15] : memref<512x128xbf16, #tpu.memory_space<vmem>>, vector<512x128xbf16>
      tpu.vector_store %arg6[%c0_14, %c0_15], %16 {strides = array<i32>} : memref<512x128xbf16, #tpu.memory_space<vmem>>, vector<512x128xbf16>,
    } else {
    }
    return
  }
  func.func @transform_0(%arg0: i32, %arg1: i32, %arg2: i32) -> (i32, i32) {
    %c0_i32 = arith.constant 0 : i32
    return %arg0, %arg2 : i32, i32
  }
  func.func @transform_1(%arg0: i32, %arg1: i32, %arg2: i32) -> (i32, i32) {
    %c0_i32 = arith.constant 0 : i32
    return %arg2, %arg1 : i32, i32
  }
  func.func @transform_2(%arg0: i32, %arg1: i32, %arg2: i32) -> (i32, i32) {
    %c0_i32 = arith.constant 0 : i32
    %c0_i32_0 = arith.constant 0 : i32
    return %c0_i32, %arg1 : i32, i32
  }
  func.func @transform_3(%arg0: i32, %arg1: i32, %arg2: i32) -> (i32, i32) {
    %c0_i32 = arith.constant 0 : i32
    return %arg0, %arg1 : i32, i32
  }
}

module attributes {stable_mosaic.version = 11 : i64} {
  func.func @_plif_kernel(%arg0: i32, %arg1: i32, %arg2: memref<1x256x128xbf16, #tpu.memory_space<vmem>>, %arg3: memref<1x256x128xbf16, #tpu.memory_space<vmem>>, %arg4: memref<256x128xf32, #tpu.memory_space<vmem>>) attributes {dimension_semantics = [#tpu.dimension_semantics<parallel>, #tpu.dimension_semantics<arbitrary>], iteration_bounds = array<i64: 2, 4>, scalar_prefetch = 0 : i64, scratch_operands = 1 : i64, tpu.core_type = #tpu.core_type<tc>, window_params = [{transform_indices = @transform_0, window_bounds = array<i64: 1, 256, 128>}, {transform_indices = @transform_1, window_bounds = array<i64: 1, 256, 128>}]} {
    %c0_i32 = arith.constant 0 : i32
    %0 = arith.cmpi eq, %arg1, %c0_i32 : i32
    %1 = arith.extui %0 : i1 to i32
    %c0_i32_0 = arith.constant 0 : i32
    %2 = arith.cmpi ne, %1, %c0_i32_0 : i32
    scf.if %2 {
      %cst_14 = arith.constant 0.000000e+00 : f32
      %28 = vector.broadcast %cst_14 : f32 to vector<256x128xf32>
      %c0_15 = arith.constant 0 : index
      %c0_16 = arith.constant 0 : index
      %29 = vector.load %arg4[%c0_15, %c0_16] : memref<256x128xf32, #tpu.memory_space<vmem>>, vector<256x128xf32>
      tpu.vector_store %arg4[%c0_15, %c0_16], %28 {strides = array<i32>} : memref<256x128xf32, #tpu.memory_space<vmem>>, vector<256x128xf32>,
    } else {
    }
    %c0 = arith.constant 0 : index
    %c0_1 = arith.constant 0 : index
    %3 = vector.load %arg4[%c0, %c0_1] : memref<256x128xf32, #tpu.memory_space<vmem>>, vector<256x128xf32>
    %c0_2 = arith.constant 0 : index
    %c0_3 = arith.constant 0 : index
    %c0_4 = arith.constant 0 : index
    %4 = vector.load %arg2[%c0_2, %c0_3, %c0_4] : memref<1x256x128xbf16, #tpu.memory_space<vmem>>, vector<1x256x128xbf16>
    %5 = vector.shape_cast %4 : vector<1x256x128xbf16> to vector<256x128xbf16>
    %6 = arith.extf %5 : vector<256x128xbf16> to vector<256x128xf32>
    %cst = arith.constant 0.000000e+00 : f32
    %7 = vector.broadcast %cst : f32 to vector<256x128xf32>
    %8 = arith.subf %3, %7 : vector<256x128xf32>
    %9 = arith.subf %6, %8 : vector<256x128xf32>
    %cst_5 = arith.constant 5.000000e-01 : f32
    %10 = vector.broadcast %cst_5 : f32 to vector<256x128xf32>
    %11 = arith.mulf %9, %10 : vector<256x128xf32>
    %12 = arith.addf %3, %11 : vector<256x128xf32>
    %cst_6 = arith.constant 1.000000e+00 : f32
    %13 = vector.broadcast %cst_6 : f32 to vector<256x128xf32>
    %14 = arith.cmpf oge, %12, %13 : vector<256x128xf32>
    %15 = arith.extui %14 : vector<256x128xi1> to vector<256x128xi32>
    %16 = arith.sitofp %15 : vector<256x128xi32> to vector<256x128xf32>
    %cst_7 = arith.constant 1.000000e+00 : f32
    %17 = vector.broadcast %cst_7 : f32 to vector<256x128xf32>
    %18 = arith.subf %17, %16 : vector<256x128xf32>
    %19 = arith.mulf %12, %18 : vector<256x128xf32>
    %cst_8 = arith.constant 0.000000e+00 : f32
    %20 = vector.broadcast %cst_8 : f32 to vector<256x128xf32>
    %21 = arith.mulf %20, %16 : vector<256x128xf32>
    %22 = arith.addf %19, %21 : vector<256x128xf32>
    %c0_9 = arith.constant 0 : index
    %c0_10 = arith.constant 0 : index
    %23 = vector.load %arg4[%c0_9, %c0_10] : memref<256x128xf32, #tpu.memory_space<vmem>>, vector<256x128xf32>
    tpu.vector_store %arg4[%c0_9, %c0_10], %22 {strides = array<i32>} : memref<256x128xf32, #tpu.memory_space<vmem>>, vector<256x128xf32>,
    %24 = arith.truncf %16 : vector<256x128xf32> to vector<256x128xbf16>
    %c0_11 = arith.constant 0 : index
    %c0_12 = arith.constant 0 : index
    %c0_13 = arith.constant 0 : index
    %25 = vector.load %arg3[%c0_11, %c0_12, %c0_13] : memref<1x256x128xbf16, #tpu.memory_space<vmem>>, vector<1x256x128xbf16>
    %26 = vector.shape_cast %25 : vector<1x256x128xbf16> to vector<256x128xbf16>
    %27 = vector.shape_cast %24 : vector<256x128xbf16> to vector<1x256x128xbf16>
    tpu.vector_store %arg3[%c0_11, %c0_12, %c0_13], %27 {strides = array<i32>} : memref<1x256x128xbf16, #tpu.memory_space<vmem>>, vector<1x256x128xbf16>,
    return
  }
  func.func @transform_0(%arg0: i32, %arg1: i32) -> (i32, i32, i32) {
    %c0_i32 = arith.constant 0 : i32
    %c0_i32_0 = arith.constant 0 : i32
    return %arg1, %arg0, %c0_i32 : i32, i32, i32
  }
  func.func @transform_1(%arg0: i32, %arg1: i32) -> (i32, i32, i32) {
    %c0_i32 = arith.constant 0 : i32
    %c0_i32_0 = arith.constant 0 : i32
    return %arg1, %arg0, %c0_i32 : i32, i32, i32
  }
}

module attributes {stable_mosaic.version = 11 : i64} {
  func.func @_mm_bias_kernel(%arg0: i32, %arg1: i32, %arg2: i32, %arg3: memref<512x72xbf16, #tpu.memory_space<vmem>>, %arg4: memref<72x128xbf16, #tpu.memory_space<vmem>>, %arg5: memref<1x128xf32, #tpu.memory_space<vmem>>, %arg6: memref<512x128xbf16, #tpu.memory_space<vmem>>, %arg7: memref<512x128xf32, #tpu.memory_space<vmem>>) attributes {dimension_semantics = [#tpu.dimension_semantics<parallel>, #tpu.dimension_semantics<parallel>, #tpu.dimension_semantics<arbitrary>], iteration_bounds = array<i64: 16, 1, 1>, scalar_prefetch = 0 : i64, scratch_operands = 1 : i64, tpu.core_type = #tpu.core_type<tc>, window_params = [{transform_indices = @transform_0, window_bounds = array<i64: 512, 72>}, {transform_indices = @transform_1, window_bounds = array<i64: 72, 128>}, {transform_indices = @transform_2, window_bounds = array<i64: 1, 128>}, {transform_indices = @transform_3, window_bounds = array<i64: 512, 128>}]} {
    %c0_i32 = arith.constant 0 : i32
    %0 = arith.cmpi eq, %arg2, %c0_i32 : i32
    %1 = arith.extui %0 : i1 to i32
    %c0_i32_0 = arith.constant 0 : i32
    %2 = arith.cmpi ne, %1, %c0_i32_0 : i32
    scf.if %2 {
      %cst_10 = arith.constant 0.000000e+00 : f32
      %12 = vector.broadcast %cst_10 : f32 to vector<512x128xf32>
      %c0_11 = arith.constant 0 : index
      %c0_12 = arith.constant 0 : index
      %13 = vector.load %arg7[%c0_11, %c0_12] : memref<512x128xf32, #tpu.memory_space<vmem>>, vector<512x128xf32>
      tpu.vector_store %arg7[%c0_11, %c0_12], %12 {strides = array<i32>} : memref<512x128xf32, #tpu.memory_space<vmem>>, vector<512x128xf32>,
    } else {
    }
    %c0 = arith.constant 0 : index
    %c0_1 = arith.constant 0 : index
    %3 = vector.load %arg7[%c0, %c0_1] : memref<512x128xf32, #tpu.memory_space<vmem>>, vector<512x128xf32>
    %c0_2 = arith.constant 0 : index
    %c0_3 = arith.constant 0 : index
    %4 = vector.load %arg3[%c0_2, %c0_3] : memref<512x72xbf16, #tpu.memory_space<vmem>>, vector<512x72xbf16>
    %c0_4 = arith.constant 0 : index
    %c0_5 = arith.constant 0 : index
    %5 = vector.load %arg4[%c0_4, %c0_5] : memref<72x128xbf16, #tpu.memory_space<vmem>>, vector<72x128xbf16>
    %cst = arith.constant dense<0.000000e+00> : vector<512x128xf32>
    %6 = tpu.matmul %4, %5, %cst {dimension_numbers = #tpu.dot_dimension_numbers<[1], [0], [0], [1], [0, 0, 1, 1], [], []>} : vector<512x72xbf16>, vector<72x128xbf16>, vector<512x128xf32> -> vector<512x128xf32>
    %7 = arith.addf %3, %6 : vector<512x128xf32>
    %c0_6 = arith.constant 0 : index
    %c0_7 = arith.constant 0 : index
    %8 = vector.load %arg7[%c0_6, %c0_7] : memref<512x128xf32, #tpu.memory_space<vmem>>, vector<512x128xf32>
    tpu.vector_store %arg7[%c0_6, %c0_7], %7 {strides = array<i32>} : memref<512x128xf32, #tpu.memory_space<vmem>>, vector<512x128xf32>,
    %c0_i32_8 = arith.constant 0 : i32
    %9 = arith.cmpi eq, %arg2, %c0_i32_8 : i32
    %10 = arith.extui %9 : i1 to i32
    %c0_i32_9 = arith.constant 0 : i32
    %11 = arith.cmpi ne, %10, %c0_i32_9 : i32
    scf.if %11 {
      %c0_10 = arith.constant 0 : index
      %c0_11 = arith.constant 0 : index
      %12 = vector.load %arg7[%c0_10, %c0_11] : memref<512x128xf32, #tpu.memory_space<vmem>>, vector<512x128xf32>
      %c0_12 = arith.constant 0 : index
      %c0_13 = arith.constant 0 : index
      %13 = vector.load %arg5[%c0_12, %c0_13] : memref<1x128xf32, #tpu.memory_space<vmem>>, vector<1x128xf32>
      %14 = vector.broadcast %13 : vector<1x128xf32> to vector<512x128xf32>
      %15 = arith.addf %12, %14 : vector<512x128xf32>
      %16 = arith.truncf %15 : vector<512x128xf32> to vector<512x128xbf16>
      %c0_14 = arith.constant 0 : index
      %c0_15 = arith.constant 0 : index
      %17 = vector.load %arg6[%c0_14, %c0_15] : memref<512x128xbf16, #tpu.memory_space<vmem>>, vector<512x128xbf16>
      tpu.vector_store %arg6[%c0_14, %c0_15], %16 {strides = array<i32>} : memref<512x128xbf16, #tpu.memory_space<vmem>>, vector<512x128xbf16>,
    } else {
    }
    return
  }
  func.func @transform_0(%arg0: i32, %arg1: i32, %arg2: i32) -> (i32, i32) {
    %c0_i32 = arith.constant 0 : i32
    return %arg0, %arg2 : i32, i32
  }
  func.func @transform_1(%arg0: i32, %arg1: i32, %arg2: i32) -> (i32, i32) {
    %c0_i32 = arith.constant 0 : i32
    return %arg2, %arg1 : i32, i32
  }
  func.func @transform_2(%arg0: i32, %arg1: i32, %arg2: i32) -> (i32, i32) {
    %c0_i32 = arith.constant 0 : i32
    %c0_i32_0 = arith.constant 0 : i32
    return %c0_i32, %arg1 : i32, i32
  }
  func.func @transform_3(%arg0: i32, %arg1: i32, %arg2: i32) -> (i32, i32) {
    %c0_i32 = arith.constant 0 : i32
    return %arg0, %arg1 : i32, i32
  }
}

module attributes {stable_mosaic.version = 11 : i64} {
  func.func @_plif_kernel(%arg0: i32, %arg1: i32, %arg2: memref<1x128x128xbf16, #tpu.memory_space<vmem>>, %arg3: memref<1x128x128xbf16, #tpu.memory_space<vmem>>, %arg4: memref<128x128xf32, #tpu.memory_space<vmem>>) attributes {dimension_semantics = [#tpu.dimension_semantics<parallel>, #tpu.dimension_semantics<arbitrary>], iteration_bounds = array<i64: 1, 4>, scalar_prefetch = 0 : i64, scratch_operands = 1 : i64, tpu.core_type = #tpu.core_type<tc>, window_params = [{transform_indices = @transform_0, window_bounds = array<i64: 1, 128, 128>}, {transform_indices = @transform_1, window_bounds = array<i64: 1, 128, 128>}]} {
    %c0_i32 = arith.constant 0 : i32
    %0 = arith.cmpi eq, %arg1, %c0_i32 : i32
    %1 = arith.extui %0 : i1 to i32
    %c0_i32_0 = arith.constant 0 : i32
    %2 = arith.cmpi ne, %1, %c0_i32_0 : i32
    scf.if %2 {
      %cst_14 = arith.constant 0.000000e+00 : f32
      %28 = vector.broadcast %cst_14 : f32 to vector<128x128xf32>
      %c0_15 = arith.constant 0 : index
      %c0_16 = arith.constant 0 : index
      %29 = vector.load %arg4[%c0_15, %c0_16] : memref<128x128xf32, #tpu.memory_space<vmem>>, vector<128x128xf32>
      tpu.vector_store %arg4[%c0_15, %c0_16], %28 {strides = array<i32>} : memref<128x128xf32, #tpu.memory_space<vmem>>, vector<128x128xf32>,
    } else {
    }
    %c0 = arith.constant 0 : index
    %c0_1 = arith.constant 0 : index
    %3 = vector.load %arg4[%c0, %c0_1] : memref<128x128xf32, #tpu.memory_space<vmem>>, vector<128x128xf32>
    %c0_2 = arith.constant 0 : index
    %c0_3 = arith.constant 0 : index
    %c0_4 = arith.constant 0 : index
    %4 = vector.load %arg2[%c0_2, %c0_3, %c0_4] : memref<1x128x128xbf16, #tpu.memory_space<vmem>>, vector<1x128x128xbf16>
    %5 = vector.shape_cast %4 : vector<1x128x128xbf16> to vector<128x128xbf16>
    %6 = arith.extf %5 : vector<128x128xbf16> to vector<128x128xf32>
    %cst = arith.constant 0.000000e+00 : f32
    %7 = vector.broadcast %cst : f32 to vector<128x128xf32>
    %8 = arith.subf %3, %7 : vector<128x128xf32>
    %9 = arith.subf %6, %8 : vector<128x128xf32>
    %cst_5 = arith.constant 5.000000e-01 : f32
    %10 = vector.broadcast %cst_5 : f32 to vector<128x128xf32>
    %11 = arith.mulf %9, %10 : vector<128x128xf32>
    %12 = arith.addf %3, %11 : vector<128x128xf32>
    %cst_6 = arith.constant 1.000000e+00 : f32
    %13 = vector.broadcast %cst_6 : f32 to vector<128x128xf32>
    %14 = arith.cmpf oge, %12, %13 : vector<128x128xf32>
    %15 = arith.extui %14 : vector<128x128xi1> to vector<128x128xi32>
    %16 = arith.sitofp %15 : vector<128x128xi32> to vector<128x128xf32>
    %cst_7 = arith.constant 1.000000e+00 : f32
    %17 = vector.broadcast %cst_7 : f32 to vector<128x128xf32>
    %18 = arith.subf %17, %16 : vector<128x128xf32>
    %19 = arith.mulf %12, %18 : vector<128x128xf32>
    %cst_8 = arith.constant 0.000000e+00 : f32
    %20 = vector.broadcast %cst_8 : f32 to vector<128x128xf32>
    %21 = arith.mulf %20, %16 : vector<128x128xf32>
    %22 = arith.addf %19, %21 : vector<128x128xf32>
    %c0_9 = arith.constant 0 : index
    %c0_10 = arith.constant 0 : index
    %23 = vector.load %arg4[%c0_9, %c0_10] : memref<128x128xf32, #tpu.memory_space<vmem>>, vector<128x128xf32>
    tpu.vector_store %arg4[%c0_9, %c0_10], %22 {strides = array<i32>} : memref<128x128xf32, #tpu.memory_space<vmem>>, vector<128x128xf32>,
    %24 = arith.truncf %16 : vector<128x128xf32> to vector<128x128xbf16>
    %c0_11 = arith.constant 0 : index
    %c0_12 = arith.constant 0 : index
    %c0_13 = arith.constant 0 : index
    %25 = vector.load %arg3[%c0_11, %c0_12, %c0_13] : memref<1x128x128xbf16, #tpu.memory_space<vmem>>, vector<1x128x128xbf16>
    %26 = vector.shape_cast %25 : vector<1x128x128xbf16> to vector<128x128xbf16>
    %27 = vector.shape_cast %24 : vector<128x128xbf16> to vector<1x128x128xbf16>
    tpu.vector_store %arg3[%c0_11, %c0_12, %c0_13], %27 {strides = array<i32>} : memref<1x128x128xbf16, #tpu.memory_space<vmem>>, vector<1x128x128xbf16>,
    return
  }
  func.func @transform_0(%arg0: i32, %arg1: i32) -> (i32, i32, i32) {
    %c0_i32 = arith.constant 0 : i32
    %c0_i32_0 = arith.constant 0 : i32
    return %arg1, %arg0, %c0_i32 : i32, i32, i32
  }
  func.func @transform_1(%arg0: i32, %arg1: i32) -> (i32, i32, i32) {
    %c0_i32 = arith.constant 0 : i32
    %c0_i32_0 = arith.constant 0 : i32
    return %arg1, %arg0, %c0_i32 : i32, i32, i32
  }
}

module attributes {stable_mosaic.version = 11 : i64} {
  func.func @_mm_bias_kernel(%arg0: i32, %arg1: i32, %arg2: i32, %arg3: memref<512x72xbf16, #tpu.memory_space<vmem>>, %arg4: memref<72x128xbf16, #tpu.memory_space<vmem>>, %arg5: memref<1x128xf32, #tpu.memory_space<vmem>>, %arg6: memref<512x128xbf16, #tpu.memory_space<vmem>>, %arg7: memref<512x128xf32, #tpu.memory_space<vmem>>) attributes {dimension_semantics = [#tpu.dimension_semantics<parallel>, #tpu.dimension_semantics<parallel>, #tpu.dimension_semantics<arbitrary>], iteration_bounds = array<i64: 4, 1, 1>, scalar_prefetch = 0 : i64, scratch_operands = 1 : i64, tpu.core_type = #tpu.core_type<tc>, window_params = [{transform_indices = @transform_0, window_bounds = array<i64: 512, 72>}, {transform_indices = @transform_1, window_bounds = array<i64: 72, 128>}, {transform_indices = @transform_2, window_bounds = array<i64: 1, 128>}, {transform_indices = @transform_3, window_bounds = array<i64: 512, 128>}]} {
    %c0_i32 = arith.constant 0 : i32
    %0 = arith.cmpi eq, %arg2, %c0_i32 : i32
    %1 = arith.extui %0 : i1 to i32
    %c0_i32_0 = arith.constant 0 : i32
    %2 = arith.cmpi ne, %1, %c0_i32_0 : i32
    scf.if %2 {
      %cst_10 = arith.constant 0.000000e+00 : f32
      %12 = vector.broadcast %cst_10 : f32 to vector<512x128xf32>
      %c0_11 = arith.constant 0 : index
      %c0_12 = arith.constant 0 : index
      %13 = vector.load %arg7[%c0_11, %c0_12] : memref<512x128xf32, #tpu.memory_space<vmem>>, vector<512x128xf32>
      tpu.vector_store %arg7[%c0_11, %c0_12], %12 {strides = array<i32>} : memref<512x128xf32, #tpu.memory_space<vmem>>, vector<512x128xf32>,
    } else {
    }
    %c0 = arith.constant 0 : index
    %c0_1 = arith.constant 0 : index
    %3 = vector.load %arg7[%c0, %c0_1] : memref<512x128xf32, #tpu.memory_space<vmem>>, vector<512x128xf32>
    %c0_2 = arith.constant 0 : index
    %c0_3 = arith.constant 0 : index
    %4 = vector.load %arg3[%c0_2, %c0_3] : memref<512x72xbf16, #tpu.memory_space<vmem>>, vector<512x72xbf16>
    %c0_4 = arith.constant 0 : index
    %c0_5 = arith.constant 0 : index
    %5 = vector.load %arg4[%c0_4, %c0_5] : memref<72x128xbf16, #tpu.memory_space<vmem>>, vector<72x128xbf16>
    %cst = arith.constant dense<0.000000e+00> : vector<512x128xf32>
    %6 = tpu.matmul %4, %5, %cst {dimension_numbers = #tpu.dot_dimension_numbers<[1], [0], [0], [1], [0, 0, 1, 1], [], []>} : vector<512x72xbf16>, vector<72x128xbf16>, vector<512x128xf32> -> vector<512x128xf32>
    %7 = arith.addf %3, %6 : vector<512x128xf32>
    %c0_6 = arith.constant 0 : index
    %c0_7 = arith.constant 0 : index
    %8 = vector.load %arg7[%c0_6, %c0_7] : memref<512x128xf32, #tpu.memory_space<vmem>>, vector<512x128xf32>
    tpu.vector_store %arg7[%c0_6, %c0_7], %7 {strides = array<i32>} : memref<512x128xf32, #tpu.memory_space<vmem>>, vector<512x128xf32>,
    %c0_i32_8 = arith.constant 0 : i32
    %9 = arith.cmpi eq, %arg2, %c0_i32_8 : i32
    %10 = arith.extui %9 : i1 to i32
    %c0_i32_9 = arith.constant 0 : i32
    %11 = arith.cmpi ne, %10, %c0_i32_9 : i32
    scf.if %11 {
      %c0_10 = arith.constant 0 : index
      %c0_11 = arith.constant 0 : index
      %12 = vector.load %arg7[%c0_10, %c0_11] : memref<512x128xf32, #tpu.memory_space<vmem>>, vector<512x128xf32>
      %c0_12 = arith.constant 0 : index
      %c0_13 = arith.constant 0 : index
      %13 = vector.load %arg5[%c0_12, %c0_13] : memref<1x128xf32, #tpu.memory_space<vmem>>, vector<1x128xf32>
      %14 = vector.broadcast %13 : vector<1x128xf32> to vector<512x128xf32>
      %15 = arith.addf %12, %14 : vector<512x128xf32>
      %16 = arith.truncf %15 : vector<512x128xf32> to vector<512x128xbf16>
      %c0_14 = arith.constant 0 : index
      %c0_15 = arith.constant 0 : index
      %17 = vector.load %arg6[%c0_14, %c0_15] : memref<512x128xbf16, #tpu.memory_space<vmem>>, vector<512x128xbf16>
      tpu.vector_store %arg6[%c0_14, %c0_15], %16 {strides = array<i32>} : memref<512x128xbf16, #tpu.memory_space<vmem>>, vector<512x128xbf16>,
    } else {
    }
    return
  }
  func.func @transform_0(%arg0: i32, %arg1: i32, %arg2: i32) -> (i32, i32) {
    %c0_i32 = arith.constant 0 : i32
    return %arg0, %arg2 : i32, i32
  }
  func.func @transform_1(%arg0: i32, %arg1: i32, %arg2: i32) -> (i32, i32) {
    %c0_i32 = arith.constant 0 : i32
    return %arg2, %arg1 : i32, i32
  }
  func.func @transform_2(%arg0: i32, %arg1: i32, %arg2: i32) -> (i32, i32) {
    %c0_i32 = arith.constant 0 : i32
    %c0_i32_0 = arith.constant 0 : i32
    return %c0_i32, %arg1 : i32, i32
  }
  func.func @transform_3(%arg0: i32, %arg1: i32, %arg2: i32) -> (i32, i32) {
    %c0_i32 = arith.constant 0 : i32
    return %arg0, %arg1 : i32, i32
  }
}

module attributes {stable_mosaic.version = 11 : i64} {
  func.func @_plif_kernel(%arg0: i32, %arg1: i32, %arg2: memref<1x32x128xbf16, #tpu.memory_space<vmem>>, %arg3: memref<1x32x128xbf16, #tpu.memory_space<vmem>>, %arg4: memref<32x128xf32, #tpu.memory_space<vmem>>) attributes {dimension_semantics = [#tpu.dimension_semantics<parallel>, #tpu.dimension_semantics<arbitrary>], iteration_bounds = array<i64: 1, 4>, scalar_prefetch = 0 : i64, scratch_operands = 1 : i64, tpu.core_type = #tpu.core_type<tc>, window_params = [{transform_indices = @transform_0, window_bounds = array<i64: 1, 32, 128>}, {transform_indices = @transform_1, window_bounds = array<i64: 1, 32, 128>}]} {
    %c0_i32 = arith.constant 0 : i32
    %0 = arith.cmpi eq, %arg1, %c0_i32 : i32
    %1 = arith.extui %0 : i1 to i32
    %c0_i32_0 = arith.constant 0 : i32
    %2 = arith.cmpi ne, %1, %c0_i32_0 : i32
    scf.if %2 {
      %cst_14 = arith.constant 0.000000e+00 : f32
      %28 = vector.broadcast %cst_14 : f32 to vector<32x128xf32>
      %c0_15 = arith.constant 0 : index
      %c0_16 = arith.constant 0 : index
      %29 = vector.load %arg4[%c0_15, %c0_16] : memref<32x128xf32, #tpu.memory_space<vmem>>, vector<32x128xf32>
      tpu.vector_store %arg4[%c0_15, %c0_16], %28 {strides = array<i32>} : memref<32x128xf32, #tpu.memory_space<vmem>>, vector<32x128xf32>,
    } else {
    }
    %c0 = arith.constant 0 : index
    %c0_1 = arith.constant 0 : index
    %3 = vector.load %arg4[%c0, %c0_1] : memref<32x128xf32, #tpu.memory_space<vmem>>, vector<32x128xf32>
    %c0_2 = arith.constant 0 : index
    %c0_3 = arith.constant 0 : index
    %c0_4 = arith.constant 0 : index
    %4 = vector.load %arg2[%c0_2, %c0_3, %c0_4] : memref<1x32x128xbf16, #tpu.memory_space<vmem>>, vector<1x32x128xbf16>
    %5 = vector.shape_cast %4 : vector<1x32x128xbf16> to vector<32x128xbf16>
    %6 = arith.extf %5 : vector<32x128xbf16> to vector<32x128xf32>
    %cst = arith.constant 0.000000e+00 : f32
    %7 = vector.broadcast %cst : f32 to vector<32x128xf32>
    %8 = arith.subf %3, %7 : vector<32x128xf32>
    %9 = arith.subf %6, %8 : vector<32x128xf32>
    %cst_5 = arith.constant 5.000000e-01 : f32
    %10 = vector.broadcast %cst_5 : f32 to vector<32x128xf32>
    %11 = arith.mulf %9, %10 : vector<32x128xf32>
    %12 = arith.addf %3, %11 : vector<32x128xf32>
    %cst_6 = arith.constant 1.000000e+00 : f32
    %13 = vector.broadcast %cst_6 : f32 to vector<32x128xf32>
    %14 = arith.cmpf oge, %12, %13 : vector<32x128xf32>
    %15 = arith.extui %14 : vector<32x128xi1> to vector<32x128xi32>
    %16 = arith.sitofp %15 : vector<32x128xi32> to vector<32x128xf32>
    %cst_7 = arith.constant 1.000000e+00 : f32
    %17 = vector.broadcast %cst_7 : f32 to vector<32x128xf32>
    %18 = arith.subf %17, %16 : vector<32x128xf32>
    %19 = arith.mulf %12, %18 : vector<32x128xf32>
    %cst_8 = arith.constant 0.000000e+00 : f32
    %20 = vector.broadcast %cst_8 : f32 to vector<32x128xf32>
    %21 = arith.mulf %20, %16 : vector<32x128xf32>
    %22 = arith.addf %19, %21 : vector<32x128xf32>
    %c0_9 = arith.constant 0 : index
    %c0_10 = arith.constant 0 : index
    %23 = vector.load %arg4[%c0_9, %c0_10] : memref<32x128xf32, #tpu.memory_space<vmem>>, vector<32x128xf32>
    tpu.vector_store %arg4[%c0_9, %c0_10], %22 {strides = array<i32>} : memref<32x128xf32, #tpu.memory_space<vmem>>, vector<32x128xf32>,
    %24 = arith.truncf %16 : vector<32x128xf32> to vector<32x128xbf16>
    %c0_11 = arith.constant 0 : index
    %c0_12 = arith.constant 0 : index
    %c0_13 = arith.constant 0 : index
    %25 = vector.load %arg3[%c0_11, %c0_12, %c0_13] : memref<1x32x128xbf16, #tpu.memory_space<vmem>>, vector<1x32x128xbf16>
    %26 = vector.shape_cast %25 : vector<1x32x128xbf16> to vector<32x128xbf16>
    %27 = vector.shape_cast %24 : vector<32x128xbf16> to vector<1x32x128xbf16>
    tpu.vector_store %arg3[%c0_11, %c0_12, %c0_13], %27 {strides = array<i32>} : memref<1x32x128xbf16, #tpu.memory_space<vmem>>, vector<1x32x128xbf16>,
    return
  }
  func.func @transform_0(%arg0: i32, %arg1: i32) -> (i32, i32, i32) {
    %c0_i32 = arith.constant 0 : i32
    %c0_i32_0 = arith.constant 0 : i32
    return %arg1, %arg0, %c0_i32 : i32, i32, i32
  }
  func.func @transform_1(%arg0: i32, %arg1: i32) -> (i32, i32, i32) {
    %c0_i32 = arith.constant 0 : i32
    %c0_i32_0 = arith.constant 0 : i32
    return %arg1, %arg0, %c0_i32 : i32, i32, i32
  }
}

module attributes {stable_mosaic.version = 11 : i64} {
  func.func @_mm_bias_kernel(%arg0: i32, %arg1: i32, %arg2: i32, %arg3: memref<8x512xbf16, #tpu.memory_space<vmem>>, %arg4: memref<512x256xbf16, #tpu.memory_space<vmem>>, %arg5: memref<1x256xf32, #tpu.memory_space<vmem>>, %arg6: memref<8x256xbf16, #tpu.memory_space<vmem>>, %arg7: memref<8x256xf32, #tpu.memory_space<vmem>>) attributes {dimension_semantics = [#tpu.dimension_semantics<parallel>, #tpu.dimension_semantics<parallel>, #tpu.dimension_semantics<arbitrary>], iteration_bounds = array<i64: 1, 2, 1>, scalar_prefetch = 0 : i64, scratch_operands = 1 : i64, tpu.core_type = #tpu.core_type<tc>, window_params = [{transform_indices = @transform_0, window_bounds = array<i64: 8, 512>}, {transform_indices = @transform_1, window_bounds = array<i64: 512, 256>}, {transform_indices = @transform_2, window_bounds = array<i64: 1, 256>}, {transform_indices = @transform_3, window_bounds = array<i64: 8, 256>}]} {
    %c0_i32 = arith.constant 0 : i32
    %0 = arith.cmpi eq, %arg2, %c0_i32 : i32
    %1 = arith.extui %0 : i1 to i32
    %c0_i32_0 = arith.constant 0 : i32
    %2 = arith.cmpi ne, %1, %c0_i32_0 : i32
    scf.if %2 {
      %cst_10 = arith.constant 0.000000e+00 : f32
      %12 = vector.broadcast %cst_10 : f32 to vector<8x256xf32>
      %c0_11 = arith.constant 0 : index
      %c0_12 = arith.constant 0 : index
      %13 = vector.load %arg7[%c0_11, %c0_12] : memref<8x256xf32, #tpu.memory_space<vmem>>, vector<8x256xf32>
      tpu.vector_store %arg7[%c0_11, %c0_12], %12 {strides = array<i32>} : memref<8x256xf32, #tpu.memory_space<vmem>>, vector<8x256xf32>,
    } else {
    }
    %c0 = arith.constant 0 : index
    %c0_1 = arith.constant 0 : index
    %3 = vector.load %arg7[%c0, %c0_1] : memref<8x256xf32, #tpu.memory_space<vmem>>, vector<8x256xf32>
    %c0_2 = arith.constant 0 : index
    %c0_3 = arith.constant 0 : index
    %4 = vector.load %arg3[%c0_2, %c0_3] : memref<8x512xbf16, #tpu.memory_space<vmem>>, vector<8x512xbf16>
    %c0_4 = arith.constant 0 : index
    %c0_5 = arith.constant 0 : index
    %5 = vector.load %arg4[%c0_4, %c0_5] : memref<512x256xbf16, #tpu.memory_space<vmem>>, vector<512x256xbf16>
    %cst = arith.constant dense<0.000000e+00> : vector<8x256xf32>
    %6 = tpu.matmul %4, %5, %cst {dimension_numbers = #tpu.dot_dimension_numbers<[1], [0], [0], [1], [0, 0, 1, 1], [], []>} : vector<8x512xbf16>, vector<512x256xbf16>, vector<8x256xf32> -> vector<8x256xf32>
    %7 = arith.addf %3, %6 : vector<8x256xf32>
    %c0_6 = arith.constant 0 : index
    %c0_7 = arith.constant 0 : index
    %8 = vector.load %arg7[%c0_6, %c0_7] : memref<8x256xf32, #tpu.memory_space<vmem>>, vector<8x256xf32>
    tpu.vector_store %arg7[%c0_6, %c0_7], %7 {strides = array<i32>} : memref<8x256xf32, #tpu.memory_space<vmem>>, vector<8x256xf32>,
    %c0_i32_8 = arith.constant 0 : i32
    %9 = arith.cmpi eq, %arg2, %c0_i32_8 : i32
    %10 = arith.extui %9 : i1 to i32
    %c0_i32_9 = arith.constant 0 : i32
    %11 = arith.cmpi ne, %10, %c0_i32_9 : i32
    scf.if %11 {
      %c0_10 = arith.constant 0 : index
      %c0_11 = arith.constant 0 : index
      %12 = vector.load %arg7[%c0_10, %c0_11] : memref<8x256xf32, #tpu.memory_space<vmem>>, vector<8x256xf32>
      %c0_12 = arith.constant 0 : index
      %c0_13 = arith.constant 0 : index
      %13 = vector.load %arg5[%c0_12, %c0_13] : memref<1x256xf32, #tpu.memory_space<vmem>>, vector<1x256xf32>
      %14 = vector.broadcast %13 : vector<1x256xf32> to vector<8x256xf32>
      %15 = arith.addf %12, %14 : vector<8x256xf32>
      %16 = arith.truncf %15 : vector<8x256xf32> to vector<8x256xbf16>
      %c0_14 = arith.constant 0 : index
      %c0_15 = arith.constant 0 : index
      %17 = vector.load %arg6[%c0_14, %c0_15] : memref<8x256xbf16, #tpu.memory_space<vmem>>, vector<8x256xbf16>
      tpu.vector_store %arg6[%c0_14, %c0_15], %16 {strides = array<i32>} : memref<8x256xbf16, #tpu.memory_space<vmem>>, vector<8x256xbf16>,
    } else {
    }
    return
  }
  func.func @transform_0(%arg0: i32, %arg1: i32, %arg2: i32) -> (i32, i32) {
    %c0_i32 = arith.constant 0 : i32
    return %arg0, %arg2 : i32, i32
  }
  func.func @transform_1(%arg0: i32, %arg1: i32, %arg2: i32) -> (i32, i32) {
    %c0_i32 = arith.constant 0 : i32
    return %arg2, %arg1 : i32, i32
  }
  func.func @transform_2(%arg0: i32, %arg1: i32, %arg2: i32) -> (i32, i32) {
    %c0_i32 = arith.constant 0 : i32
    %c0_i32_0 = arith.constant 0 : i32
    return %c0_i32, %arg1 : i32, i32
  }
  func.func @transform_3(%arg0: i32, %arg1: i32, %arg2: i32) -> (i32, i32) {
    %c0_i32 = arith.constant 0 : i32
    return %arg0, %arg1 : i32, i32
  }
}

module attributes {stable_mosaic.version = 11 : i64} {
  func.func @_plif_kernel(%arg0: i32, %arg1: i32, %arg2: memref<1x8x128xbf16, #tpu.memory_space<vmem>>, %arg3: memref<1x8x128xbf16, #tpu.memory_space<vmem>>, %arg4: memref<8x128xf32, #tpu.memory_space<vmem>>) attributes {dimension_semantics = [#tpu.dimension_semantics<parallel>, #tpu.dimension_semantics<arbitrary>], iteration_bounds = array<i64: 1, 4>, scalar_prefetch = 0 : i64, scratch_operands = 1 : i64, tpu.core_type = #tpu.core_type<tc>, window_params = [{transform_indices = @transform_0, window_bounds = array<i64: 1, 8, 128>}, {transform_indices = @transform_1, window_bounds = array<i64: 1, 8, 128>}]} {
    %c0_i32 = arith.constant 0 : i32
    %0 = arith.cmpi eq, %arg1, %c0_i32 : i32
    %1 = arith.extui %0 : i1 to i32
    %c0_i32_0 = arith.constant 0 : i32
    %2 = arith.cmpi ne, %1, %c0_i32_0 : i32
    scf.if %2 {
      %cst_14 = arith.constant 0.000000e+00 : f32
      %28 = vector.broadcast %cst_14 : f32 to vector<8x128xf32>
      %c0_15 = arith.constant 0 : index
      %c0_16 = arith.constant 0 : index
      %29 = vector.load %arg4[%c0_15, %c0_16] : memref<8x128xf32, #tpu.memory_space<vmem>>, vector<8x128xf32>
      tpu.vector_store %arg4[%c0_15, %c0_16], %28 {strides = array<i32>} : memref<8x128xf32, #tpu.memory_space<vmem>>, vector<8x128xf32>,
    } else {
    }
    %c0 = arith.constant 0 : index
    %c0_1 = arith.constant 0 : index
    %3 = vector.load %arg4[%c0, %c0_1] : memref<8x128xf32, #tpu.memory_space<vmem>>, vector<8x128xf32>
    %c0_2 = arith.constant 0 : index
    %c0_3 = arith.constant 0 : index
    %c0_4 = arith.constant 0 : index
    %4 = vector.load %arg2[%c0_2, %c0_3, %c0_4] : memref<1x8x128xbf16, #tpu.memory_space<vmem>>, vector<1x8x128xbf16>
    %5 = vector.shape_cast %4 : vector<1x8x128xbf16> to vector<8x128xbf16>
    %6 = arith.extf %5 : vector<8x128xbf16> to vector<8x128xf32>
    %cst = arith.constant 0.000000e+00 : f32
    %7 = vector.broadcast %cst : f32 to vector<8x128xf32>
    %8 = arith.subf %3, %7 : vector<8x128xf32>
    %9 = arith.subf %6, %8 : vector<8x128xf32>
    %cst_5 = arith.constant 5.000000e-01 : f32
    %10 = vector.broadcast %cst_5 : f32 to vector<8x128xf32>
    %11 = arith.mulf %9, %10 : vector<8x128xf32>
    %12 = arith.addf %3, %11 : vector<8x128xf32>
    %cst_6 = arith.constant 1.000000e+00 : f32
    %13 = vector.broadcast %cst_6 : f32 to vector<8x128xf32>
    %14 = arith.cmpf oge, %12, %13 : vector<8x128xf32>
    %15 = arith.extui %14 : vector<8x128xi1> to vector<8x128xi32>
    %16 = arith.sitofp %15 : vector<8x128xi32> to vector<8x128xf32>
    %cst_7 = arith.constant 1.000000e+00 : f32
    %17 = vector.broadcast %cst_7 : f32 to vector<8x128xf32>
    %18 = arith.subf %17, %16 : vector<8x128xf32>
    %19 = arith.mulf %12, %18 : vector<8x128xf32>
    %cst_8 = arith.constant 0.000000e+00 : f32
    %20 = vector.broadcast %cst_8 : f32 to vector<8x128xf32>
    %21 = arith.mulf %20, %16 : vector<8x128xf32>
    %22 = arith.addf %19, %21 : vector<8x128xf32>
    %c0_9 = arith.constant 0 : index
    %c0_10 = arith.constant 0 : index
    %23 = vector.load %arg4[%c0_9, %c0_10] : memref<8x128xf32, #tpu.memory_space<vmem>>, vector<8x128xf32>
    tpu.vector_store %arg4[%c0_9, %c0_10], %22 {strides = array<i32>} : memref<8x128xf32, #tpu.memory_space<vmem>>, vector<8x128xf32>,
    %24 = arith.truncf %16 : vector<8x128xf32> to vector<8x128xbf16>
    %c0_11 = arith.constant 0 : index
    %c0_12 = arith.constant 0 : index
    %c0_13 = arith.constant 0 : index
    %25 = vector.load %arg3[%c0_11, %c0_12, %c0_13] : memref<1x8x128xbf16, #tpu.memory_space<vmem>>, vector<1x8x128xbf16>
    %26 = vector.shape_cast %25 : vector<1x8x128xbf16> to vector<8x128xbf16>
    %27 = vector.shape_cast %24 : vector<8x128xbf16> to vector<1x8x128xbf16>
    tpu.vector_store %arg3[%c0_11, %c0_12, %c0_13], %27 {strides = array<i32>} : memref<1x8x128xbf16, #tpu.memory_space<vmem>>, vector<1x8x128xbf16>,
    return
  }
  func.func @transform_0(%arg0: i32, %arg1: i32) -> (i32, i32, i32) {
    %c0_i32 = arith.constant 0 : i32
    %c0_i32_0 = arith.constant 0 : i32
    return %arg1, %arg0, %c0_i32 : i32, i32, i32
  }
  func.func @transform_1(%arg0: i32, %arg1: i32) -> (i32, i32, i32) {
    %c0_i32 = arith.constant 0 : i32
    %c0_i32_0 = arith.constant 0 : i32
    return %arg1, %arg0, %c0_i32 : i32, i32, i32
  }
}

module attributes {stable_mosaic.version = 11 : i64} {
  func.func @_mm_bias_kernel(%arg0: i32, %arg1: i32, %arg2: i32, %arg3: memref<8x512xbf16, #tpu.memory_space<vmem>>, %arg4: memref<512x128xbf16, #tpu.memory_space<vmem>>, %arg5: memref<1x128xf32, #tpu.memory_space<vmem>>, %arg6: memref<8x128xbf16, #tpu.memory_space<vmem>>, %arg7: memref<8x128xf32, #tpu.memory_space<vmem>>) attributes {dimension_semantics = [#tpu.dimension_semantics<parallel>, #tpu.dimension_semantics<parallel>, #tpu.dimension_semantics<arbitrary>], iteration_bounds = array<i64: 1, 1, 1>, scalar_prefetch = 0 : i64, scratch_operands = 1 : i64, tpu.core_type = #tpu.core_type<tc>, window_params = [{transform_indices = @transform_0, window_bounds = array<i64: 8, 512>}, {transform_indices = @transform_1, window_bounds = array<i64: 512, 128>}, {transform_indices = @transform_2, window_bounds = array<i64: 1, 128>}, {transform_indices = @transform_3, window_bounds = array<i64: 8, 128>}]} {
    %c0_i32 = arith.constant 0 : i32
    %0 = arith.cmpi eq, %arg2, %c0_i32 : i32
    %1 = arith.extui %0 : i1 to i32
    %c0_i32_0 = arith.constant 0 : i32
    %2 = arith.cmpi ne, %1, %c0_i32_0 : i32
    scf.if %2 {
      %cst_10 = arith.constant 0.000000e+00 : f32
      %12 = vector.broadcast %cst_10 : f32 to vector<8x128xf32>
      %c0_11 = arith.constant 0 : index
      %c0_12 = arith.constant 0 : index
      %13 = vector.load %arg7[%c0_11, %c0_12] : memref<8x128xf32, #tpu.memory_space<vmem>>, vector<8x128xf32>
      tpu.vector_store %arg7[%c0_11, %c0_12], %12 {strides = array<i32>} : memref<8x128xf32, #tpu.memory_space<vmem>>, vector<8x128xf32>,
    } else {
    }
    %c0 = arith.constant 0 : index
    %c0_1 = arith.constant 0 : index
    %3 = vector.load %arg7[%c0, %c0_1] : memref<8x128xf32, #tpu.memory_space<vmem>>, vector<8x128xf32>
    %c0_2 = arith.constant 0 : index
    %c0_3 = arith.constant 0 : index
    %4 = vector.load %arg3[%c0_2, %c0_3] : memref<8x512xbf16, #tpu.memory_space<vmem>>, vector<8x512xbf16>
    %c0_4 = arith.constant 0 : index
    %c0_5 = arith.constant 0 : index
    %5 = vector.load %arg4[%c0_4, %c0_5] : memref<512x128xbf16, #tpu.memory_space<vmem>>, vector<512x128xbf16>
    %cst = arith.constant dense<0.000000e+00> : vector<8x128xf32>
    %6 = tpu.matmul %4, %5, %cst {dimension_numbers = #tpu.dot_dimension_numbers<[1], [0], [0], [1], [0, 0, 1, 1], [], []>} : vector<8x512xbf16>, vector<512x128xbf16>, vector<8x128xf32> -> vector<8x128xf32>
    %7 = arith.addf %3, %6 : vector<8x128xf32>
    %c0_6 = arith.constant 0 : index
    %c0_7 = arith.constant 0 : index
    %8 = vector.load %arg7[%c0_6, %c0_7] : memref<8x128xf32, #tpu.memory_space<vmem>>, vector<8x128xf32>
    tpu.vector_store %arg7[%c0_6, %c0_7], %7 {strides = array<i32>} : memref<8x128xf32, #tpu.memory_space<vmem>>, vector<8x128xf32>,
    %c0_i32_8 = arith.constant 0 : i32
    %9 = arith.cmpi eq, %arg2, %c0_i32_8 : i32
    %10 = arith.extui %9 : i1 to i32
    %c0_i32_9 = arith.constant 0 : i32
    %11 = arith.cmpi ne, %10, %c0_i32_9 : i32
    scf.if %11 {
      %c0_10 = arith.constant 0 : index
      %c0_11 = arith.constant 0 : index
      %12 = vector.load %arg7[%c0_10, %c0_11] : memref<8x128xf32, #tpu.memory_space<vmem>>, vector<8x128xf32>
      %c0_12 = arith.constant 0 : index
      %c0_13 = arith.constant 0 : index
      %13 = vector.load %arg5[%c0_12, %c0_13] : memref<1x128xf32, #tpu.memory_space<vmem>>, vector<1x128xf32>
      %14 = vector.broadcast %13 : vector<1x128xf32> to vector<8x128xf32>
      %15 = arith.addf %12, %14 : vector<8x128xf32>
      %16 = arith.truncf %15 : vector<8x128xf32> to vector<8x128xbf16>
      %c0_14 = arith.constant 0 : index
      %c0_15 = arith.constant 0 : index
      %17 = vector.load %arg6[%c0_14, %c0_15] : memref<8x128xbf16, #tpu.memory_space<vmem>>, vector<8x128xbf16>
      tpu.vector_store %arg6[%c0_14, %c0_15], %16 {strides = array<i32>} : memref<8x128xbf16, #tpu.memory_space<vmem>>, vector<8x128xbf16>,
    } else {
    }
    return
  }
  func.func @transform_0(%arg0: i32, %arg1: i32, %arg2: i32) -> (i32, i32) {
    %c0_i32 = arith.constant 0 : i32
    return %arg0, %arg2 : i32, i32
  }
  func.func @transform_1(%arg0: i32, %arg1: i32, %arg2: i32) -> (i32, i32) {
    %c0_i32 = arith.constant 0 : i32
    return %arg2, %arg1 : i32, i32
  }
  func.func @transform_2(%arg0: i32, %arg1: i32, %arg2: i32) -> (i32, i32) {
    %c0_i32 = arith.constant 0 : i32
    %c0_i32_0 = arith.constant 0 : i32
    return %c0_i32, %arg1 : i32, i32
  }
  func.func @transform_3(%arg0: i32, %arg1: i32, %arg2: i32) -> (i32, i32) {
    %c0_i32 = arith.constant 0 : i32
    return %arg0, %arg1 : i32, i32
  }
}

</mosaic_0001>

<bundles_post_ra>
// kernel: multi_step_cifar10dvs_forward.12
= control target key start
LH: loop header
LB: loop body
LE: loop exit
PB: predicated region body
PF: predicated region fallthrough
CT: control target
= control target key end

     0   :  { %s1876_s12 = smov 0   ;;  %s1878_s13 = smov 0   ;;  %s2091_s0 = inlined_call_operand.vmem [shape: bf16[131072,18], index: 0, kind: input, shape index: {}]   ;;  %s2092_s1 = inlined_call_operand.vmem [shape: bf16[18,128], index: 1, kind: input, shape index: {}]   ;;  %s2093_s2 = inlined_call_operand.vmem [shape: f32[1,128], index: 2, kind: input, shape index: {}]   ;;  %s2094_s3 = inlined_call_operand.vmem [shape: bf16[131072,128], index: 3, kind: output, shape index: {}]  }
   0x1   :  { %s1880_s14 = smov 0  }
   0x2 LB: > { %s32_s15 = sadd.s32 1, %s1850_s13  ;;  %p1406_p0 = scmp.ge.s32.totalorder %s1854_s14, 1  ;;  %s1854_s14 = sphi %s1880_s14, %s13_s14   ;;  %s1850_s13 = sphi %s1878_s13, %s2096_s13   ;;  %s1846_s12 = sphi %s1876_s12, %s2095_s12  }
   0x3   : > { %p34_p1 = scmp.ge.s32.totalorder %s32_s15, 256  ;;  %p188_p2 = scmp.lt.s32.totalorder %s1854_s14, 257 }
   0x5   : > { %s2098_s15 = smov (%p34_p1, %s32_s15), 0  ;;  %p189_p3 = pnand %p1406_p0, %p188_p2 }
   0x6   : > { %s1407_s18 = sshll.u32 (!%p189_p3), %s1846_s12, 6 }
   0x7   : > { %192 = sbr.rel (%p189_p3) target bundleno = 284 (0x11c), region = 32  ;;  %p230_p4 = scmp.lt.s32.totalorder (!%p189_p3), %s1407_s18, 16383 }
   0xc   : > { %v458_v0 = vld [vmem:[%s2092_s1 + $0x8] sm:$0x1]  ;;  %vm725_vm0 = vcmask 1040384   ;;  %s2100_s18 = smov (!%p230_p4, %s1407_s18), 16383  ;;  %v1609_v4 = vld [vmem:[%s2092_s1] sm:$0xff]  ;;  %vm628_vm1 = vcmask 146432  }
   0xd   : > { %v624_v1 = vunpack.c.l.b16 %v458_v0  ;;  %s1408_s19 = sshll.u32 %s2100_s18, 2  ;;  %v1977_v39 = vld [vmem:[%s2093_s2] ss:$0 sm:$0xff] }
   0xe   : > { %s1908_s24 = scalar_lea.vmem %s2091_s0, %s1408_s19  ;;  %s1988_s29 = scalar_lea.vmem %s2094_s3, %s1408_s19 }
   0xf   : > { %v626_v2 = vpack.c.b16 %v624_v1, %v624_v1  ;;  %v1577_v5 = vld [vmem:[%s1908_s24] sm:$0xff]  ;;  %v1578_v9 = vld [vmem:[%s1908_s24 + $0x8] sm:$0xff]  ;;  %v1579_v13 = vld [vmem:[%s1908_s24 + $0x10] sm:$0xff] }
  0x10   : > { %v1585_v6 = vld [vmem:[%s1908_s24 + $0x40] sm:$0xff]  ;;  %v1586_v10 = vld [vmem:[%s1908_s24 + $0x48] sm:$0xff]  ;;  %v1587_v14 = vld [vmem:[%s1908_s24 + $0x50] sm:$0xff] }
  0x11   : > { %v727_v3 = vsel %vm725_vm0, %v626_v2, 0  ;;  %v1593_v7 = vld [vmem:[%s1908_s24 + $0x80] sm:$0xff]  ;;  %v1594_v11 = vld [vmem:[%s1908_s24 + $0x88] sm:$0xff]  ;;  %v1595_v15 = vld [vmem:[%s1908_s24 + $0x90] sm:$0xff] }
  0x12   : > { %735 = vmatpush.bf16.msra.mxu0 %v727_v3  ;;  %1801 = vmatpush.bf16.msra.mxu1 %v727_v3  ;;  %v1601_v8 = vld [vmem:[%s1908_s24 + $0xc0] sm:$0xff]  ;;  %v1602_v12 = vld [vmem:[%s1908_s24 + $0xc8] sm:$0xff]  ;;  %v1603_v16 = vld [vmem:[%s1908_s24 + $0xd0] sm:$0xff] }
  0x13   : > { %1802 = vmatpush.bf16.msra.mxu2 %v727_v3  ;;  %1803 = vmatpush.bf16.msra.mxu3 %v727_v3  ;;  %v1580_v17 = vld [vmem:[%s1908_s24 + $0x18] sm:$0xff]  ;;  %v1581_v21 = vld [vmem:[%s1908_s24 + $0x20] sm:$0xff]  ;;  %v1582_v25 = vld [vmem:[%s1908_s24 + $0x28] sm:$0xff] }
  0x14   : > { %v1588_v18 = vld [vmem:[%s1908_s24 + $0x58] sm:$0xff]  ;;  %v1589_v22 = vld [vmem:[%s1908_s24 + $0x60] sm:$0xff]  ;;  %v1590_v26 = vld [vmem:[%s1908_s24 + $0x68] sm:$0xff] }
  0x15   : > { %v1596_v19 = vld [vmem:[%s1908_s24 + $0x98] sm:$0xff]  ;;  %v1597_v23 = vld [vmem:[%s1908_s24 + $0xa0] sm:$0xff]  ;;  %v1598_v27 = vld [vmem:[%s1908_s24 + $0xa8] sm:$0xff] }
  0x16   : > { %736 = vmatpush.bf16.msra.mxu0 %v1609_v4  ;;  %1804 = vmatpush.bf16.msra.mxu1 %v1609_v4  ;;  %v1604_v20 = vld [vmem:[%s1908_s24 + $0xd8] sm:$0xff]  ;;  %v1605_v24 = vld [vmem:[%s1908_s24 + $0xe0] sm:$0xff]  ;;  %v1606_v28 = vld [vmem:[%s1908_s24 + $0xe8] sm:$0xff] }
  0x17   : > { %1805 = vmatpush.bf16.msra.mxu2 %v1609_v4  ;;  %1806 = vmatpush.bf16.msra.mxu3 %v1609_v4  ;;  %v1583_v29 = vld [vmem:[%s1908_s24 + $0x30] sm:$0xff]  ;;  %v1584_v33 = vld [vmem:[%s1908_s24 + $0x38] sm:$0xff] }
  0x18   : > { %v1591_v30 = vld [vmem:[%s1908_s24 + $0x70] sm:$0xff]  ;;  %v1592_v34 = vld [vmem:[%s1908_s24 + $0x78] sm:$0xff] }
  0x19   : > { %1543 = vmatmul.msk.bf16.vlgmr.msra.gmra.mxu0 %vm628_vm1, %v1577_v5  ;;  %1551 = vmatmul.msk.bf16.vlgmr.msra.gmra.mxu1 %vm628_vm1, %v1585_v6  ;;  %v1599_v31 = vld [vmem:[%s1908_s24 + $0xb0] sm:$0xff]  ;;  %v1600_v35 = vld [vmem:[%s1908_s24 + $0xb8] sm:$0xff] }
  0x1a   : > { %1559 = vmatmul.msk.bf16.vlgmr.msra.gmra.mxu2 %vm628_vm1, %v1593_v7  ;;  %1567 = vmatmul.msk.bf16.vlgmr.msra.gmra.mxu3 %vm628_vm1, %v1601_v8  ;;  %v1607_v32 = vld [vmem:[%s1908_s24 + $0xf0] sm:$0xff]  ;;  %v1608_v36 = vld [vmem:[%s1908_s24 + $0xf8] sm:$0xff] }
  0x29   : > { %1544 = vmatmul.msk.bf16.gmra.mxu0 %vm628_vm1, %v1578_v9  ;;  %1552 = vmatmul.msk.bf16.gmra.mxu1 %vm628_vm1, %v1586_v10 }
  0x2a   : > { %1560 = vmatmul.msk.bf16.gmra.mxu2 %vm628_vm1, %v1594_v11  ;;  %1568 = vmatmul.msk.bf16.gmra.mxu3 %vm628_vm1, %v1602_v12 }
  0x39   : > { %1545 = vmatmul.msk.bf16.gmra.mxu0 %vm628_vm1, %v1579_v13  ;;  %1553 = vmatmul.msk.bf16.gmra.mxu1 %vm628_vm1, %v1587_v14 }
  0x3a   : > { %1561 = vmatmul.msk.bf16.gmra.mxu2 %vm628_vm1, %v1595_v15  ;;  %1569 = vmatmul.msk.bf16.gmra.mxu3 %vm628_vm1, %v1603_v16 }
  0x49   : > { %1546 = vmatmul.msk.bf16.gmra.mxu0 %vm628_vm1, %v1580_v17  ;;  %1554 = vmatmul.msk.bf16.gmra.mxu1 %vm628_vm1, %v1588_v18 }
  0x4a   : > { %1562 = vmatmul.msk.bf16.gmra.mxu2 %vm628_vm1, %v1596_v19  ;;  %1570 = vmatmul.msk.bf16.gmra.mxu3 %vm628_vm1, %v1604_v20 }
  0x59   : > { %1547 = vmatmul.msk.bf16.gmra.mxu0 %vm628_vm1, %v1581_v21  ;;  %1555 = vmatmul.msk.bf16.gmra.mxu1 %vm628_vm1, %v1589_v22 }
  0x5a   : > { %1563 = vmatmul.msk.bf16.gmra.mxu2 %vm628_vm1, %v1597_v23  ;;  %1571 = vmatmul.msk.bf16.gmra.mxu3 %vm628_vm1, %v1605_v24 }
  0x69   : > { %1548 = vmatmul.msk.bf16.gmra.mxu0 %vm628_vm1, %v1582_v25  ;;  %1556 = vmatmul.msk.bf16.gmra.mxu1 %vm628_vm1, %v1590_v26 }
  0x6a   : > { %1564 = vmatmul.msk.bf16.gmra.mxu2 %vm628_vm1, %v1598_v27  ;;  %1572 = vmatmul.msk.bf16.gmra.mxu3 %vm628_vm1, %v1606_v28 }
  0x79   : > { %1549 = vmatmul.msk.bf16.gmra.mxu0 %vm628_vm1, %v1583_v29  ;;  %1557 = vmatmul.msk.bf16.gmra.mxu1 %vm628_vm1, %v1591_v30 }
  0x7a   : > { %1565 = vmatmul.msk.bf16.gmra.mxu2 %vm628_vm1, %v1599_v31  ;;  %1573 = vmatmul.msk.bf16.gmra.mxu3 %vm628_vm1, %v1607_v32 }
  0x89   : > { %1550 = vmatmul.msk.bf16.gmra.mxu0 %vm628_vm1, %v1584_v33  ;;  %1558 = vmatmul.msk.bf16.gmra.mxu1 %vm628_vm1, %v1592_v34 }
  0x8a   : > { %1566 = vmatmul.msk.bf16.gmra.mxu2 %vm628_vm1, %v1600_v35  ;;  %1574 = vmatmul.msk.bf16.gmra.mxu3 %vm628_vm1, %v1608_v36 }
  0x96   : > { %v738_v37 = vpop.f32.mrf.mxu0  ;;  %v778_v38 = vpop.f32.mrf.mxu1 }
  0x97   : > { %v1097_v44 = vadd.f32 %v1977_v39, %v738_v37  ;;  %v1113_v45 = vadd.f32 %v1977_v39, %v778_v38 }
  0x9d   : > { %v818_v40 = vpop.f32.mrf.mxu2  ;;  %v858_v41 = vpop.f32.mrf.mxu3 }
  0x9e   : > { %v740_v42 = vpop.f32.mrf.mxu0  ;;  %v780_v43 = vpop.f32.mrf.mxu1  ;;  %v1129_v52 = vadd.f32 %v1977_v39, %v818_v40  ;;  %v1145_v53 = vadd.f32 %v1977_v39, %v858_v41 }
  0x9f   : > { %v1098_v46 = vadd.f32 %v1977_v39, %v740_v42  ;;  %v1114_v47 = vadd.f32 %v1977_v39, %v780_v43 }
  0xa1   : > { %v1613_v48 = vpack.c.bf16 %v1098_v46, %v1097_v44  ;;  %v1653_v49 = vpack.c.bf16 %v1114_v47, %v1113_v45 }
  0xa3   : > { %1614 = vst [vmem:[%s1988_s29] sm:$0xff] %v1613_v48  }
  0xa4   : > { %1777 = vst [vmem:[%s1988_s29 + $0x40] sm:$0xff] %v1653_v49  }
  0xa5   : > { %v820_v50 = vpop.f32.mrf.mxu2  ;;  %v860_v51 = vpop.f32.mrf.mxu3 }
  0xa6   : > { %v1130_v54 = vadd.f32 %v1977_v39, %v820_v50  ;;  %v1146_v55 = vadd.f32 %v1977_v39, %v860_v51  ;;  %v743_v56 = vpop.f32.mrf.mxu0  ;;  %v783_v57 = vpop.f32.mrf.mxu1 }
  0xa7   : > { %v1099_v0 = vadd.f32 %v1977_v39, %v743_v56  ;;  %v1115_v1 = vadd.f32 %v1977_v39, %v783_v57 }
  0xa8   : > { %v1693_v58 = vpack.c.bf16 %v1130_v54, %v1129_v52  ;;  %v1733_v59 = vpack.c.bf16 %v1146_v55, %v1145_v53 }
  0xaa   : > { %1785 = vst [vmem:[%s1988_s29 + $0x80] sm:$0xff] %v1693_v58  }
  0xab   : > { %1793 = vst [vmem:[%s1988_s29 + $0xc0] sm:$0xff] %v1733_v59  }
  0xad   : > { %v823_v60 = vpop.f32.mrf.mxu2  ;;  %v863_v61 = vpop.f32.mrf.mxu3 }
  0xae   : > { %v745_v62 = vpop.f32.mrf.mxu0  ;;  %v785_v63 = vpop.f32.mrf.mxu1  ;;  %v1131_v8 = vadd.f32 %v1977_v39, %v823_v60  ;;  %v1147_v9 = vadd.f32 %v1977_v39, %v863_v61 }
  0xaf   : > { %v1100_v2 = vadd.f32 %v1977_v39, %v745_v62  ;;  %v1116_v3 = vadd.f32 %v1977_v39, %v785_v63 }
  0xb1   : > { %v1618_v4 = vpack.c.bf16 %v1100_v2, %v1099_v0  ;;  %v1658_v5 = vpack.c.bf16 %v1116_v3, %v1115_v1 }
  0xb3   : > { %1770 = vst [vmem:[%s1988_s29 + $0x8] sm:$0xff] %v1618_v4  }
  0xb4   : > { %1778 = vst [vmem:[%s1988_s29 + $0x48] sm:$0xff] %v1658_v5  }
  0xb5   : > { %v825_v6 = vpop.f32.mrf.mxu2  ;;  %v865_v7 = vpop.f32.mrf.mxu3 }
  0xb6   : > { %v1132_v10 = vadd.f32 %v1977_v39, %v825_v6  ;;  %v1148_v11 = vadd.f32 %v1977_v39, %v865_v7  ;;  %v748_v12 = vpop.f32.mrf.mxu0  ;;  %v788_v13 = vpop.f32.mrf.mxu1 }
  0xb7   : > { %v1101_v20 = vadd.f32 %v1977_v39, %v748_v12  ;;  %v1117_v21 = vadd.f32 %v1977_v39, %v788_v13 }
  0xb8   : > { %v1698_v14 = vpack.c.bf16 %v1132_v10, %v1131_v8  ;;  %v1738_v15 = vpack.c.bf16 %v1148_v11, %v1147_v9 }
  0xba   : > { %1786 = vst [vmem:[%s1988_s29 + $0x88] sm:$0xff] %v1698_v14  }
  0xbb   : > { %1794 = vst [vmem:[%s1988_s29 + $0xc8] sm:$0xff] %v1738_v15  }
  0xbd   : > { %v828_v16 = vpop.f32.mrf.mxu2  ;;  %v868_v17 = vpop.f32.mrf.mxu3 }
  0xbe   : > { %v750_v18 = vpop.f32.mrf.mxu0  ;;  %v790_v19 = vpop.f32.mrf.mxu1  ;;  %v1133_v28 = vadd.f32 %v1977_v39, %v828_v16  ;;  %v1149_v29 = vadd.f32 %v1977_v39, %v868_v17 }
  0xbf   : > { %v1102_v22 = vadd.f32 %v1977_v39, %v750_v18  ;;  %v1118_v23 = vadd.f32 %v1977_v39, %v790_v19 }
  0xc1   : > { %v1623_v24 = vpack.c.bf16 %v1102_v22, %v1101_v20  ;;  %v1663_v25 = vpack.c.bf16 %v1118_v23, %v1117_v21 }
  0xc3   : > { %1771 = vst [vmem:[%s1988_s29 + $0x10] sm:$0xff] %v1623_v24  }
  0xc4   : > { %1779 = vst [vmem:[%s1988_s29 + $0x50] sm:$0xff] %v1663_v25  }
  0xc5   : > { %v830_v26 = vpop.f32.mrf.mxu2  ;;  %v870_v27 = vpop.f32.mrf.mxu3 }
  0xc6   : > { %v1134_v30 = vadd.f32 %v1977_v39, %v830_v26  ;;  %v1150_v31 = vadd.f32 %v1977_v39, %v870_v27  ;;  %v753_v32 = vpop.f32.mrf.mxu0  ;;  %v793_v33 = vpop.f32.mrf.mxu1 }
  0xc7   : > { %v1103_v41 = vadd.f32 %v1977_v39, %v753_v32  ;;  %v1119_v42 = vadd.f32 %v1977_v39, %v793_v33 }
  0xc8   : > { %v1703_v34 = vpack.c.bf16 %v1134_v30, %v1133_v28  ;;  %v1743_v35 = vpack.c.bf16 %v1150_v31, %v1149_v29 }
  0xca   : > { %1787 = vst [vmem:[%s1988_s29 + $0x90] sm:$0xff] %v1703_v34  }
  0xcb   : > { %1795 = vst [vmem:[%s1988_s29 + $0xd0] sm:$0xff] %v1743_v35  }
  0xcd   : > { %v833_v36 = vpop.f32.mrf.mxu2  ;;  %v873_v37 = vpop.f32.mrf.mxu3 }
  0xce   : > { %v755_v38 = vpop.f32.mrf.mxu0  ;;  %v795_v40 = vpop.f32.mrf.mxu1  ;;  %v1135_v49 = vadd.f32 %v1977_v39, %v833_v36  ;;  %v1151_v50 = vadd.f32 %v1977_v39, %v873_v37 }
  0xcf   : > { %v1104_v43 = vadd.f32 %v1977_v39, %v755_v38  ;;  %v1120_v44 = vadd.f32 %v1977_v39, %v795_v40 }
  0xd1   : > { %v1628_v45 = vpack.c.bf16 %v1104_v43, %v1103_v41  ;;  %v1668_v46 = vpack.c.bf16 %v1120_v44, %v1119_v42 }
  0xd3   : > { %1772 = vst [vmem:[%s1988_s29 + $0x18] sm:$0xff] %v1628_v45  }
  0xd4   : > { %1780 = vst [vmem:[%s1988_s29 + $0x58] sm:$0xff] %v1668_v46  }
  0xd5   : > { %v835_v47 = vpop.f32.mrf.mxu2  ;;  %v875_v48 = vpop.f32.mrf.mxu3 }
  0xd6   : > { %v1136_v51 = vadd.f32 %v1977_v39, %v835_v47  ;;  %v1152_v52 = vadd.f32 %v1977_v39, %v875_v48  ;;  %v758_v53 = vpop.f32.mrf.mxu0  ;;  %v798_v54 = vpop.f32.mrf.mxu1 }
  0xd7   : > { %v1105_v61 = vadd.f32 %v1977_v39, %v758_v53  ;;  %v1121_v62 = vadd.f32 %v1977_v39, %v798_v54 }
  0xd8   : > { %v1708_v55 = vpack.c.bf16 %v1136_v51, %v1135_v49  ;;  %v1748_v56 = vpack.c.bf16 %v1152_v52, %v1151_v50 }
  0xda   : > { %1788 = vst [vmem:[%s1988_s29 + $0x98] sm:$0xff] %v1708_v55  }
  0xdb   : > { %1796 = vst [vmem:[%s1988_s29 + $0xd8] sm:$0xff] %v1748_v56  }
  0xdd   : > { %v838_v57 = vpop.f32.mrf.mxu2  ;;  %v878_v58 = vpop.f32.mrf.mxu3 }
  0xde   : > { %v760_v59 = vpop.f32.mrf.mxu0  ;;  %v800_v60 = vpop.f32.mrf.mxu1  ;;  %v1137_v5 = vadd.f32 %v1977_v39, %v838_v57  ;;  %v1153_v6 = vadd.f32 %v1977_v39, %v878_v58 }
  0xdf   : > { %v1106_v63 = vadd.f32 %v1977_v39, %v760_v59  ;;  %v1122_v0 = vadd.f32 %v1977_v39, %v800_v60 }
  0xe1   : > { %v1633_v1 = vpack.c.bf16 %v1106_v63, %v1105_v61  ;;  %v1673_v2 = vpack.c.bf16 %v1122_v0, %v1121_v62 }
  0xe3   : > { %1773 = vst [vmem:[%s1988_s29 + $0x20] sm:$0xff] %v1633_v1  }
  0xe4   : > { %1781 = vst [vmem:[%s1988_s29 + $0x60] sm:$0xff] %v1673_v2  }
  0xe5   : > { %v840_v3 = vpop.f32.mrf.mxu2  ;;  %v880_v4 = vpop.f32.mrf.mxu3 }
  0xe6   : > { %v1138_v7 = vadd.f32 %v1977_v39, %v840_v3  ;;  %v1154_v8 = vadd.f32 %v1977_v39, %v880_v4  ;;  %v763_v9 = vpop.f32.mrf.mxu0  ;;  %v803_v10 = vpop.f32.mrf.mxu1 }
  0xe7   : > { %v1107_v17 = vadd.f32 %v1977_v39, %v763_v9  ;;  %v1123_v18 = vadd.f32 %v1977_v39, %v803_v10 }
  0xe8   : > { %v1713_v11 = vpack.c.bf16 %v1138_v7, %v1137_v5  ;;  %v1753_v12 = vpack.c.bf16 %v1154_v8, %v1153_v6 }
  0xea   : > { %1789 = vst [vmem:[%s1988_s29 + $0xa0] sm:$0xff] %v1713_v11  }
  0xeb   : > { %1797 = vst [vmem:[%s1988_s29 + $0xe0] sm:$0xff] %v1753_v12  }
  0xed   : > { %v843_v13 = vpop.f32.mrf.mxu2  ;;  %v883_v14 = vpop.f32.mrf.mxu3 }
  0xee   : > { %v765_v15 = vpop.f32.mrf.mxu0  ;;  %v805_v16 = vpop.f32.mrf.mxu1  ;;  %v1139_v25 = vadd.f32 %v1977_v39, %v843_v13  ;;  %v1155_v26 = vadd.f32 %v1977_v39, %v883_v14 }
  0xef   : > { %v1108_v19 = vadd.f32 %v1977_v39, %v765_v15  ;;  %v1124_v20 = vadd.f32 %v1977_v39, %v805_v16 }
  0xf1   : > { %v1638_v21 = vpack.c.bf16 %v1108_v19, %v1107_v17  ;;  %v1678_v22 = vpack.c.bf16 %v1124_v20, %v1123_v18 }
  0xf3   : > { %1774 = vst [vmem:[%s1988_s29 + $0x28] sm:$0xff] %v1638_v21  }
  0xf4   : > { %1782 = vst [vmem:[%s1988_s29 + $0x68] sm:$0xff] %v1678_v22  }
  0xf5   : > { %v845_v23 = vpop.f32.mrf.mxu2  ;;  %v885_v24 = vpop.f32.mrf.mxu3 }
  0xf6   : > { %v1140_v27 = vadd.f32 %v1977_v39, %v845_v23  ;;  %v1156_v28 = vadd.f32 %v1977_v39, %v885_v24  ;;  %v768_v29 = vpop.f32.mrf.mxu0  ;;  %v808_v30 = vpop.f32.mrf.mxu1 }
  0xf7   : > { %v1109_v37 = vadd.f32 %v1977_v39, %v768_v29  ;;  %v1125_v38 = vadd.f32 %v1977_v39, %v808_v30 }
  0xf8   : > { %v1718_v31 = vpack.c.bf16 %v1140_v27, %v1139_v25  ;;  %v1758_v32 = vpack.c.bf16 %v1156_v28, %v1155_v26 }
  0xfa   : > { %1790 = vst [vmem:[%s1988_s29 + $0xa8] sm:$0xff] %v1718_v31  }
  0xfb   : > { %1798 = vst [vmem:[%s1988_s29 + $0xe8] sm:$0xff] %v1758_v32  }
  0xfd   : > { %v848_v33 = vpop.f32.mrf.mxu2  ;;  %v888_v34 = vpop.f32.mrf.mxu3 }
  0xfe   : > { %v770_v35 = vpop.f32.mrf.mxu0  ;;  %v810_v36 = vpop.f32.mrf.mxu1  ;;  %v1141_v46 = vadd.f32 %v1977_v39, %v848_v33  ;;  %v1157_v47 = vadd.f32 %v1977_v39, %v888_v34 }
  0xff   : > { %v1110_v40 = vadd.f32 %v1977_v39, %v770_v35  ;;  %v1126_v41 = vadd.f32 %v1977_v39, %v810_v36 }
 0x101   : > { %v1643_v42 = vpack.c.bf16 %v1110_v40, %v1109_v37  ;;  %v1683_v43 = vpack.c.bf16 %v1126_v41, %v1125_v38 }
 0x103   : > { %1775 = vst [vmem:[%s1988_s29 + $0x30] sm:$0xff] %v1643_v42  }
 0x104   : > { %1783 = vst [vmem:[%s1988_s29 + $0x70] sm:$0xff] %v1683_v43  }
 0x105   : > { %v850_v44 = vpop.f32.mrf.mxu2  ;;  %v890_v45 = vpop.f32.mrf.mxu3 }
 0x106   : > { %v1142_v48 = vadd.f32 %v1977_v39, %v850_v44  ;;  %v1158_v49 = vadd.f32 %v1977_v39, %v890_v45  ;;  %v773_v50 = vpop.f32.mrf.mxu0  ;;  %v813_v51 = vpop.f32.mrf.mxu1 }
 0x107   : > { %v1111_v58 = vadd.f32 %v1977_v39, %v773_v50  ;;  %v1127_v59 = vadd.f32 %v1977_v39, %v813_v51 }
 0x108   : > { %v1723_v52 = vpack.c.bf16 %v1142_v48, %v1141_v46  ;;  %v1763_v53 = vpack.c.bf16 %v1158_v49, %v1157_v47 }
 0x10a   : > { %1791 = vst [vmem:[%s1988_s29 + $0xb0] sm:$0xff] %v1723_v52  }
 0x10b   : > { %1799 = vst [vmem:[%s1988_s29 + $0xf0] sm:$0xff] %v1763_v53  }
 0x10d   : > { %v853_v54 = vpop.f32.mrf.mxu2  ;;  %v893_v55 = vpop.f32.mrf.mxu3 }
 0x10e   : > { %v775_v56 = vpop.f32.mrf.mxu0  ;;  %v815_v57 = vpop.f32.mrf.mxu1  ;;  %v1143_v2 = vadd.f32 %v1977_v39, %v853_v54  ;;  %v1159_v3 = vadd.f32 %v1977_v39, %v893_v55 }
 0x10f   : > { %v1112_v60 = vadd.f32 %v1977_v39, %v775_v56  ;;  %v1128_v61 = vadd.f32 %v1977_v39, %v815_v57 }
 0x111   : > { %v1648_v62 = vpack.c.bf16 %v1112_v60, %v1111_v58  ;;  %v1688_v63 = vpack.c.bf16 %v1128_v61, %v1127_v59 }
 0x113   : > { %1776 = vst [vmem:[%s1988_s29 + $0x38] sm:$0xff] %v1648_v62  }
 0x114   : > { %1784 = vst [vmem:[%s1988_s29 + $0x78] sm:$0xff] %v1688_v63  }
 0x115   : > { %v855_v0 = vpop.f32.mrf.mxu2  ;;  %v895_v1 = vpop.f32.mrf.mxu3 }
 0x116   : > { %v1144_v4 = vadd.f32 %v1977_v39, %v855_v0  ;;  %v1160_v5 = vadd.f32 %v1977_v39, %v895_v1 }
 0x118   : > { %v1728_v6 = vpack.c.bf16 %v1144_v4, %v1143_v2  ;;  %v1768_v7 = vpack.c.bf16 %v1160_v5, %v1159_v3 }
 0x11a   : > { %1792 = vst [vmem:[%s1988_s29 + $0xb8] sm:$0xff] %v1728_v6  }
 0x11b   : > { %1800 = vst [vmem:[%s1988_s29 + $0xf8] sm:$0xff] %v1768_v7  }
 0x11c PF: > { %s13_s14 = sadd.s32 1, %s1854_s14   ;;  %s2095_s12 = smov %s1850_s13 }
 0x11d   : > { %p10_p5 = scmp.ge.s32.totalorder %s13_s14, 258   ;;  %s2096_s13 = smov %s2098_s15 }
 0x11f   :  { %12 = sbr.rel (!%p10_p5) target bundleno = 2 (0x2), region = 76 }

// kernel: multi_step_cifar10dvs_forward.13
= control target key start
LH: loop header
LB: loop body
LE: loop exit
PB: predicated region body
PF: predicated region fallthrough
CT: control target
= control target key end

     0   :  { %s1076_s6 = smov 0   ;;  %s1078_s7 = smov 0   ;;  %s1343_s0 = inlined_call_operand.vmem [shape: bf16[4,2048,128], index: 0, kind: input, shape index: {}]   ;;  %s1344_s1 = inlined_call_operand.vmem [shape: bf16[4,2048,128], index: 1, kind: output, shape index: {}]  }
   0x1   :  { %s1080_s8 = smov 0   ;;  %s1082_s9 = smov 0  }
   0x2   :  { %s1084_s10 = smov 0  }
   0x3 LB: > { %s20_s11 = sadd.s32 1, %s1054_s8  ;;  %s23_s12 = sadd.s32 1, %s1058_s9  ;;  %s1062_s10 = sphi %s1084_s10, %s11_s10   ;;  %s1058_s9 = sphi %s1082_s9, %s1348_s9   ;;  %s1054_s8 = sphi %s1080_s8, %s1347_s8   ;;  %s1050_s7 = sphi %s1078_s7, %s1346_s7   ;;  %s1046_s6 = sphi %s1076_s6, %s1345_s6  }
   0x4   : > { %p21_p0 = scmp.ge.s32.totalorder %s20_s11, 4  ;;  %p798_p1 = scmp.ge.s32.totalorder %s1062_s10, 1 }
   0x5   : > { %p108_p2 = scmp.lt.s32.totalorder %s1062_s10, 33 }
   0x6   : > { %s1350_s11 = smov (%p21_p0, %s20_s11), 0  ;;  %s1352_s12 = smov (!%p21_p0, %s23_s12), %s1058_s9 }
   0x7   : > { %p109_p3 = pnand %p798_p1, %p108_p2  ;;  %p25_p4 = scmp.ge.s32.totalorder %s1352_s12, 8 }
   0x8   : > { %s799_s13 = sshll.u32 (!%p109_p3), %s1050_s7, 5  ;;  %p137_p5 = scmp.lt.s32.totalorder (!%p109_p3), %s1046_s6, 3 }
   0x9   : > { %s1354_s12 = smov (%p25_p4, %s1352_s12), 0  ;;  %112 = sbr.rel (%p109_p3) target bundleno = 152 (0x98), region = 24 }
   0xa   : > { %p139_p6 = scmp.lt.s32.totalorder (!%p109_p3), %s799_s13, 255  ;;  %p805_p7 = scmp.ne.s32.totalorder (!%p109_p3), %s1046_s6, 0 }
   0xe   : > { %s138_s14 = scalar_select %p137_p5, %s1046_s6, 3 }
   0xf   : > { %s1356_s13 = smov (!%p139_p6, %s799_s13), 255  ;;  %159 = sbr.rel (%p805_p7) target bundleno = 53 (0x35), region = 28 }
  0x10   : > { %s800_s15 = sshll.u32 %s138_s14, 8 }
  0x11   : > { %s142_s16 = sadd.s32 %s800_s15, %s1356_s13 }
  0x12   : > { %s801_s17 = sshll.u32 %s142_s16, 2 }
  0x13   : > { %s1109_s20 = scalar_lea.vmem %s1343_s0, %s801_s17  ;;  %s1114_s23 = scalar_lea.vmem %s1344_s1, %s801_s17 }
  0x14   : > { %v1064_v0 = vmov 0.0  }
  0x15   : > { %160 = vst [vmem:[#allocation2 + $0xb0] sm:$0xff] %v1064_v0 }
  0x16   : > { %161 = vst [vmem:[#allocation2] sm:$0xff] %v1064_v0 }
  0x17   : > { %162 = vst [vmem:[#allocation2 + $0xd8] sm:$0xff] %v1064_v0 }
  0x18   : > { %163 = vst [vmem:[#allocation2 + $0x18] sm:$0xff] %v1064_v0 }
  0x19   : > { %164 = vst [vmem:[#allocation2 + $0x50] sm:$0xff] %v1064_v0 }
  0x1a   : > { %165 = vst [vmem:[#allocation2 + $0x68] sm:$0xff] %v1064_v0 }
  0x1b   : > { %166 = vst [vmem:[#allocation2 + $0x30] sm:$0xff] %v1064_v0 }
  0x1c   : > { %167 = vst [vmem:[#allocation2 + $0x48] sm:$0xff] %v1064_v0 }
  0x1d   : > { %168 = vst [vmem:[#allocation2 + $0x80] sm:$0xff] %v1064_v0 }
  0x1e   : > { %169 = vst [vmem:[#allocation2 + $0x88] sm:$0xff] %v1064_v0 }
  0x1f   : > { %170 = vst [vmem:[#allocation2 + $0xe8] sm:$0xff] %v1064_v0 }
  0x20   : > { %171 = vst [vmem:[#allocation2 + $0xb8] sm:$0xff] %v1064_v0 }
  0x21   : > { %172 = vst [vmem:[#allocation2 + $0x60] sm:$0xff] %v1064_v0 }
  0x22   : > { %173 = vst [vmem:[#allocation2 + $0xf0] sm:$0xff] %v1064_v0 }
  0x23   : > { %174 = vst [vmem:[#allocation2 + $0x8] sm:$0xff] %v1064_v0 }
  0x24   : > { %175 = vst [vmem:[#allocation2 + $0x78] sm:$0xff] %v1064_v0 }
  0x25   : > { %176 = vst [vmem:[#allocation2 + $0x38] sm:$0xff] %v1064_v0 }
  0x26   : > { %177 = vst [vmem:[#allocation2 + $0x58] sm:$0xff] %v1064_v0 }
  0x27   : > { %178 = vst [vmem:[#allocation2 + $0x40] sm:$0xff] %v1064_v0 }
  0x28   : > { %179 = vst [vmem:[#allocation2 + $0xc8] sm:$0xff] %v1064_v0 }
  0x29   : > { %180 = vst [vmem:[#allocation2 + $0xe0] sm:$0xff] %v1064_v0 }
  0x2a   : > { %181 = vst [vmem:[#allocation2 + $0x90] sm:$0xff] %v1064_v0 }
  0x2b   : > { %182 = vst [vmem:[#allocation2 + $0x70] sm:$0xff] %v1064_v0 }
  0x2c   : > { %183 = vst [vmem:[#allocation2 + $0xc0] sm:$0xff] %v1064_v0 }
  0x2d   : > { %184 = vst [vmem:[#allocation2 + $0xa8] sm:$0xff] %v1064_v0 }
  0x2e   : > { %185 = vst [vmem:[#allocation2 + $0xd0] sm:$0xff] %v1064_v0 }
  0x2f   : > { %186 = vst [vmem:[#allocation2 + $0x10] sm:$0xff] %v1064_v0 }
  0x30   : > { %187 = vst [vmem:[#allocation2 + $0x28] sm:$0xff] %v1064_v0 }
  0x31   : > { %188 = vst [vmem:[#allocation2 + $0xa0] sm:$0xff] %v1064_v0 }
  0x32   : > { %189 = vst [vmem:[#allocation2 + $0xf8] sm:$0xff] %v1064_v0 }
  0x33   : > { %190 = vst [vmem:[#allocation2 + $0x20] sm:$0xff] %v1064_v0 }
  0x34   : > { %191 = vst [vmem:[#allocation2 + $0x98] sm:$0xff] %v1064_v0 }
  0x35 PF: > { %v192_v1 = vld [vmem:[#allocation2 + $0xb0] sm:$0xff]  ;;  %v841_v2 = vld [vmem:[%s1109_s20] sm:$0xff]   ;;  %v194_v6 = vld [vmem:[#allocation2 + $0xd8] sm:$0xff]  ;;  %v1065_v43 = vmov 0.0  }
  0x36   : > { %v193_v3 = vld [vmem:[#allocation2] sm:$0xff]  ;;  %v842_v4 = vunpack.c.l.bf16 %v841_v2  ;;  %v843_v5 = vunpack.c.h.bf16 %v841_v2  ;;  %v952_v7 = vld [vmem:[%s1109_s20 + $0x8] sm:$0xff]   ;;  %v195_v8 = vld [vmem:[#allocation2 + $0x18] sm:$0xff] }
  0x37   : > { %v846_v9 = vunpack.c.l.bf16 %v952_v7  ;;  %v847_v10 = vunpack.c.h.bf16 %v952_v7  ;;  %v196_v11 = vld [vmem:[#allocation2 + $0x50] sm:$0xff]  ;;  %v197_v13 = vld [vmem:[#allocation2 + $0x68] sm:$0xff]  ;;  %v954_v19 = vld [vmem:[%s1109_s20 + $0x18] sm:$0xff]  }
  0x38   : > { %v953_v12 = vld [vmem:[%s1109_s20 + $0x10] sm:$0xff]   ;;  %v288_v14 = vsub.f32 %v842_v4, %v192_v1  ;;  %v289_v15 = vsub.f32 %v843_v5, %v193_v3  ;;  %v199_v20 = vld [vmem:[#allocation2 + $0x48] sm:$0xff]  ;;  %v854_v23 = vunpack.c.l.bf16 %v954_v19  ;;  %v855_v24 = vunpack.c.h.bf16 %v954_v19  ;;  %v955_v0 = vld [vmem:[%s1109_s20 + $0x20] sm:$0xff]  }
  0x39   : > { %v850_v16 = vunpack.c.l.bf16 %v953_v12  ;;  %v851_v17 = vunpack.c.h.bf16 %v953_v12  ;;  %v198_v18 = vld [vmem:[#allocation2 + $0x30] sm:$0xff]  ;;  %v290_v21 = vsub.f32 %v846_v9, %v194_v6  ;;  %v291_v22 = vsub.f32 %v847_v10, %v195_v8  ;;  %v956_v5 = vld [vmem:[%s1109_s20 + $0x28] sm:$0xff]   ;;  %v200_v10 = vld [vmem:[#allocation2 + $0x80] sm:$0xff] }
  0x3a   : > { %v320_v25 = vmul.f32 0.5, %v288_v14  ;;  %v321_v26 = vmul.f32 0.5, %v289_v15  ;;  %v294_v31 = vsub.f32 %v854_v23, %v198_v18  ;;  %v295_v32 = vsub.f32 %v855_v24, %v199_v20  ;;  %v957_v23 = vld [vmem:[%s1109_s20 + $0x30] sm:$0xff]  }
  0x3b   : > { %v292_v27 = vsub.f32 %v850_v16, %v196_v11  ;;  %v293_v28 = vsub.f32 %v851_v17, %v197_v13  ;;  %v322_v29 = vmul.f32 0.5, %v290_v21  ;;  %v323_v30 = vmul.f32 0.5, %v291_v22  ;;  %v201_v16 = vld [vmem:[#allocation2 + $0x88] sm:$0xff] }
  0x3c   : > { %v352_v33 = vadd.f32 %v320_v25, %v192_v1  ;;  %v353_v34 = vadd.f32 %v321_v26, %v193_v3  ;;  %v326_v39 = vmul.f32 0.5, %v294_v31  ;;  %v327_v40 = vmul.f32 0.5, %v295_v32  ;;  %v202_v17 = vld [vmem:[#allocation2 + $0xe8] sm:$0xff] }
  0x3d   : > { %v324_v35 = vmul.f32 0.5, %v292_v27  ;;  %v325_v36 = vmul.f32 0.5, %v293_v28  ;;  %v354_v37 = vadd.f32 %v322_v29, %v194_v6  ;;  %v355_v38 = vadd.f32 %v323_v30, %v195_v8  ;;  %v203_v28 = vld [vmem:[#allocation2 + $0xb8] sm:$0xff] }
  0x3e   : > { %vm384_vm0 = vcmp.ge.f32.partialorder %v352_v33, 1.0  ;;  %vm385_vm1 = vcmp.ge.f32.partialorder %v353_v34, 1.0  ;;  %v358_v8 = vadd.f32 %v326_v39, %v198_v18  ;;  %v359_v9 = vadd.f32 %v327_v40, %v199_v20 }
  0x3f   : > { %v356_v41 = vadd.f32 %v324_v35, %v196_v11  ;;  %v357_v42 = vadd.f32 %v325_v36, %v197_v13  ;;  %v1121_v44 = vsel %vm384_vm0, 1.0, %v1065_v43  ;;  %v1124_v45 = vsel %vm385_vm1, 1.0, %v1065_v43 }
  0x40   : > { %vm386_vm2 = vcmp.ge.f32.partialorder %v354_v37, 1.0  ;;  %vm387_vm3 = vcmp.ge.f32.partialorder %v355_v38, 1.0  ;;  %v480_v46 = vsub.f32 1.0, %v1121_v44  ;;  %v544_v47 = vmul.f32 0.0, %v1121_v44 }
  0x41   : > { %v481_v48 = vsub.f32 1.0, %v1124_v45  ;;  %v545_v49 = vmul.f32 0.0, %v1124_v45  ;;  %v1131_v50 = vsel %vm386_vm2, 1.0, %v1065_v43  ;;  %v1134_v51 = vsel %vm387_vm3, 1.0, %v1065_v43 }
  0x42   : > { %vm388_vm4 = vcmp.ge.f32.partialorder %v356_v41, 1.0  ;;  %vm389_vm5 = vcmp.ge.f32.partialorder %v357_v42, 1.0  ;;  %v512_v52 = vmul.f32 %v480_v46, %v352_v33  ;;  %v482_v54 = vsub.f32 1.0, %v1131_v50  ;;  %v204_v33 = vld [vmem:[#allocation2 + $0x60] sm:$0xff]  ;;  %v1164_v46 = vld [vmem:[%s1109_s20 + $0x38] sm:$0xff]  }
  0x43   : > { %v513_v53 = vmul.f32 %v481_v48, %v353_v34  ;;  %v546_v55 = vmul.f32 0.0, %v1131_v50  ;;  %v483_v56 = vsub.f32 1.0, %v1134_v51  ;;  %v547_v57 = vmul.f32 0.0, %v1134_v51  ;;  %v205_v34 = vld [vmem:[#allocation2 + $0xf0] sm:$0xff] }
  0x44   : > { %v1141_v58 = vsel %vm388_vm4, 1.0, %v1065_v43  ;;  %v1144_v59 = vsel %vm389_vm5, 1.0, %v1065_v43  ;;  %v576_v60 = vadd.f32 %v544_v47, %v512_v52  ;;  %v514_v62 = vmul.f32 %v482_v54, %v354_v37 }
  0x45   : > { %v577_v61 = vadd.f32 %v545_v49, %v513_v53  ;;  %v484_v63 = vsub.f32 1.0, %v1141_v58  ;;  %v515_v1 = vmul.f32 %v483_v56, %v355_v38  ;;  %v548_v2 = vmul.f32 0.0, %v1141_v58 }
  0x46   : > { %v485_v3 = vsub.f32 1.0, %v1144_v59  ;;  %v549_v4 = vmul.f32 0.0, %v1144_v59  ;;  %608 = vst [vmem:[#allocation2 + $0xb0] sm:$0xff] %v576_v60  ;;  %v578_v6 = vadd.f32 %v546_v55, %v514_v62  ;;  %v858_v13 = vunpack.c.l.bf16 %v955_v0 }
  0x47   : > { %v516_v7 = vmul.f32 %v484_v63, %v356_v41  ;;  %609 = vst [vmem:[#allocation2] sm:$0xff] %v577_v61  ;;  %v579_v11 = vadd.f32 %v547_v57, %v515_v1  ;;  %v859_v14 = vunpack.c.h.bf16 %v955_v0  ;;  %vm390_vm6 = vcmp.ge.f32.partialorder %v358_v8, 1.0 }
  0x48   : > { %v517_v12 = vmul.f32 %v485_v3, %v357_v42  ;;  %610 = vst [vmem:[#allocation2 + $0xd8] sm:$0xff] %v578_v6  ;;  %vm391_vm7 = vcmp.ge.f32.partialorder %v359_v9, 1.0  ;;  %v862_v19 = vunpack.c.l.bf16 %v956_v5  ;;  %v1153_v22 = vsel %vm390_vm6, 1.0, %v1065_v43 }
  0x49   : > { %v580_v15 = vadd.f32 %v548_v2, %v516_v7  ;;  %611 = vst [vmem:[#allocation2 + $0x18] sm:$0xff] %v579_v11  ;;  %v1156_v18 = vsel %vm391_vm7, 1.0, %v1065_v43  ;;  %v296_v20 = vsub.f32 %v858_v13, %v200_v10  ;;  %v486_v24 = vsub.f32 1.0, %v1153_v22 }
  0x4a   : > { %v581_v21 = vadd.f32 %v549_v4, %v517_v12  ;;  %v550_v25 = vmul.f32 0.0, %v1153_v22  ;;  %v487_v26 = vsub.f32 1.0, %v1156_v18  ;;  %v551_v27 = vmul.f32 0.0, %v1156_v18 }
  0x4b   : > { %612 = vst [vmem:[#allocation2 + $0x50] sm:$0xff] %v580_v15  ;;  %v328_v29 = vmul.f32 0.5, %v296_v20  ;;  %v297_v30 = vsub.f32 %v859_v14, %v201_v16  ;;  %v298_v31 = vsub.f32 %v862_v19, %v202_v17  ;;  %v863_v32 = vunpack.c.h.bf16 %v956_v5  ;;  %v206_v14 = vld [vmem:[#allocation2 + $0x8] sm:$0xff]  ;;  %v959_v19 = vld [vmem:[%s1109_s20 + $0x40] sm:$0xff]  }
  0x4c   : > { %613 = vst [vmem:[#allocation2 + $0x68] sm:$0xff] %v581_v21  ;;  %v518_v35 = vmul.f32 %v486_v24, %v358_v8  ;;  %v519_v36 = vmul.f32 %v487_v26, %v359_v9  ;;  %v866_v37 = vunpack.c.l.bf16 %v957_v23  ;;  %v867_v38 = vunpack.c.h.bf16 %v957_v23 }
  0x4d   : > { %v360_v39 = vadd.f32 %v328_v29, %v200_v10  ;;  %v329_v40 = vmul.f32 0.5, %v297_v30  ;;  %v330_v41 = vmul.f32 0.5, %v298_v31  ;;  %v299_v42 = vsub.f32 %v863_v32, %v203_v28  ;;  %v208_v30 = vld [vmem:[#allocation2 + $0x38] sm:$0xff]  ;;  %v960_v31 = vld [vmem:[%s1109_s20 + $0x48] sm:$0xff]  }
  0x4e   : > { %v582_v47 = vadd.f32 %v550_v25, %v518_v35  ;;  %v583_v48 = vadd.f32 %v551_v27, %v519_v36  ;;  %v300_v49 = vsub.f32 %v866_v37, %v204_v33  ;;  %v301_v52 = vsub.f32 %v867_v38, %v205_v34  ;;  %v207_v25 = vld [vmem:[#allocation2 + $0x78] sm:$0xff] }
  0x4f   : > { %vm392_vm8 = vcmp.ge.f32.partialorder %v360_v39, 1.0  ;;  %v361_v53 = vadd.f32 %v329_v40, %v201_v16  ;;  %v362_v54 = vadd.f32 %v330_v41, %v202_v17  ;;  %v331_v55 = vmul.f32 0.5, %v299_v42  ;;  %v209_v36 = vld [vmem:[#allocation2 + $0x58] sm:$0xff]  ;;  %v210_v41 = vld [vmem:[#allocation2 + $0x40] sm:$0xff]  ;;  %v1201_v42 = vld [vmem:[%s1109_s20 + $0x50] sm:$0xff]  }
  0x50   : > { %614 = vst [vmem:[#allocation2 + $0x30] sm:$0xff] %v582_v47  ;;  %v1167_v56 = vsel %vm392_vm8, 1.0, %v1065_v43  ;;  %v332_v57 = vmul.f32 0.5, %v300_v49  ;;  %v333_v60 = vmul.f32 0.5, %v301_v52  ;;  %v870_v61 = vunpack.c.l.bf16 %v1164_v46  ;;  %v211_v52 = vld [vmem:[#allocation2 + $0xc8] sm:$0xff] }
  0x51   : > { %615 = vst [vmem:[#allocation2 + $0x48] sm:$0xff] %v583_v48  ;;  %v488_v62 = vsub.f32 1.0, %v1167_v56  ;;  %v552_v63 = vmul.f32 0.0, %v1167_v56  ;;  %vm393_vm9 = vcmp.ge.f32.partialorder %v361_v53, 1.0  ;;  %vm394_vm10 = vcmp.ge.f32.partialorder %v362_v54, 1.0 }
  0x52   : > { %v1173_v0 = vsel %vm393_vm9, 1.0, %v1065_v43  ;;  %v1176_v1 = vsel %vm394_vm10, 1.0, %v1065_v43  ;;  %v363_v2 = vadd.f32 %v331_v55, %v203_v28  ;;  %v364_v3 = vadd.f32 %v332_v57, %v204_v33 }
  0x53   : > { %v520_v4 = vmul.f32 %v488_v62, %v360_v39  ;;  %v489_v5 = vsub.f32 1.0, %v1173_v0  ;;  %v553_v6 = vmul.f32 0.0, %v1173_v0  ;;  %v490_v7 = vsub.f32 1.0, %v1176_v1 }
  0x54   : > { %v554_v8 = vmul.f32 0.0, %v1176_v1  ;;  %vm395_vm11 = vcmp.ge.f32.partialorder %v363_v2, 1.0  ;;  %vm396_vm12 = vcmp.ge.f32.partialorder %v364_v3, 1.0  ;;  %v365_v9 = vadd.f32 %v333_v60, %v205_v34  ;;  %v212_v60 = vld [vmem:[#allocation2 + $0xe0] sm:$0xff] }
  0x55   : > { %v584_v10 = vadd.f32 %v552_v63, %v520_v4  ;;  %v521_v11 = vmul.f32 %v489_v5, %v361_v53  ;;  %v522_v12 = vmul.f32 %v490_v7, %v362_v54  ;;  %v1183_v13 = vsel %vm395_vm11, 1.0, %v1065_v43 }
  0x56   : > { %v491_v15 = vsub.f32 1.0, %v1183_v13  ;;  %v555_v16 = vmul.f32 0.0, %v1183_v13  ;;  %v1188_v17 = vsel %vm396_vm12, 1.0, %v1065_v43  ;;  %vm397_vm13 = vcmp.ge.f32.partialorder %v365_v9, 1.0 }
  0x57   : > { %616 = vst [vmem:[#allocation2 + $0x80] sm:$0xff] %v584_v10  ;;  %v585_v21 = vadd.f32 %v553_v6, %v521_v11  ;;  %v586_v20 = vadd.f32 %v554_v8, %v522_v12  ;;  %v492_v23 = vsub.f32 1.0, %v1188_v17  ;;  %v556_v24 = vmul.f32 0.0, %v1188_v17 }
  0x58   : > { %v523_v26 = vmul.f32 %v491_v15, %v363_v2  ;;  %v1194_v27 = vsel %vm397_vm13, 1.0, %v1065_v43  ;;  %v302_v28 = vsub.f32 %v870_v61, %v206_v14  ;;  %v871_v29 = vunpack.c.h.bf16 %v1164_v46 }
  0x59   : > { %617 = vst [vmem:[#allocation2 + $0x88] sm:$0xff] %v585_v21  ;;  %v524_v32 = vmul.f32 %v492_v23, %v364_v3  ;;  %v493_v33 = vsub.f32 1.0, %v1194_v27  ;;  %v557_v34 = vmul.f32 0.0, %v1194_v27  ;;  %v874_v35 = vunpack.c.l.bf16 %v959_v19 }
  0x5a   : > { %618 = vst [vmem:[#allocation2 + $0xe8] sm:$0xff] %v586_v20  ;;  %v587_v37 = vadd.f32 %v555_v16, %v523_v26  ;;  %v334_v38 = vmul.f32 0.5, %v302_v28  ;;  %v303_v39 = vsub.f32 %v871_v29, %v207_v25  ;;  %v875_v40 = vunpack.c.h.bf16 %v959_v19 }
  0x5b   : > { %v588_v47 = vadd.f32 %v556_v24, %v524_v32  ;;  %v525_v46 = vmul.f32 %v493_v33, %v365_v9  ;;  %v304_v48 = vsub.f32 %v874_v35, %v208_v30  ;;  %v878_v49 = vunpack.c.l.bf16 %v960_v31  ;;  %v962_v35 = vld [vmem:[%s1109_s20 + $0x58] sm:$0xff]  }
  0x5c   : > { %619 = vst [vmem:[#allocation2 + $0xb8] sm:$0xff] %v587_v37  ;;  %v366_v53 = vadd.f32 %v334_v38, %v206_v14  ;;  %v335_v54 = vmul.f32 0.5, %v303_v39  ;;  %v305_v55 = vsub.f32 %v875_v40, %v209_v36  ;;  %v879_v57 = vunpack.c.h.bf16 %v960_v31  ;;  %v213_v40 = vld [vmem:[#allocation2 + $0x90] sm:$0xff] }
  0x5d   : > { %620 = vst [vmem:[#allocation2 + $0x60] sm:$0xff] %v588_v47  ;;  %v589_v61 = vadd.f32 %v557_v34, %v525_v46  ;;  %v336_v62 = vmul.f32 0.5, %v304_v48  ;;  %v306_v63 = vsub.f32 %v878_v49, %v210_v41  ;;  %v882_v2 = vunpack.c.l.bf16 %v1201_v42  ;;  %v214_v49 = vld [vmem:[#allocation2 + $0x70] sm:$0xff] }
  0x5e   : > { %vm398_vm14 = vcmp.ge.f32.partialorder %v366_v53, 1.0  ;;  %v367_v3 = vadd.f32 %v335_v54, %v207_v25  ;;  %v337_v4 = vmul.f32 0.5, %v305_v55  ;;  %v307_v5 = vsub.f32 %v879_v57, %v211_v52  ;;  %v215_v55 = vld [vmem:[#allocation2 + $0xc0] sm:$0xff] }
  0x5f   : > { %621 = vst [vmem:[#allocation2 + $0xf0] sm:$0xff] %v589_v61  ;;  %v1205_v6 = vsel %vm398_vm14, 1.0, %v1065_v43  ;;  %v368_v7 = vadd.f32 %v336_v62, %v208_v30  ;;  %v338_v8 = vmul.f32 0.5, %v306_v63  ;;  %v308_v9 = vsub.f32 %v882_v2, %v212_v60  ;;  %v963_v61 = vld [vmem:[%s1109_s20 + $0x60] sm:$0xff]  }
  0x60   : > { %v494_v10 = vsub.f32 1.0, %v1205_v6  ;;  %v558_v11 = vmul.f32 0.0, %v1205_v6  ;;  %vm399_vm15 = vcmp.ge.f32.partialorder %v367_v3, 1.0  ;;  %v369_v12 = vadd.f32 %v337_v4, %v209_v36 }
  0x61   : > { %v1210_v14 = vsel %vm399_vm15, 1.0, %v1065_v43  ;;  %vm400_vm0 = vcmp.ge.f32.partialorder %v368_v7, 1.0  ;;  %v370_v15 = vadd.f32 %v338_v8, %v210_v41  ;;  %v339_v16 = vmul.f32 0.5, %v307_v5  ;;  %v216_v5 = vld [vmem:[#allocation2 + $0xa8] sm:$0xff] }
  0x62   : > { %v526_v19 = vmul.f32 %v494_v10, %v366_v53  ;;  %v495_v21 = vsub.f32 1.0, %v1210_v14  ;;  %v559_v20 = vmul.f32 0.0, %v1210_v14  ;;  %v1215_v23 = vsel %vm400_vm0, 1.0, %v1065_v43  ;;  %v964_v10 = vld [vmem:[%s1109_s20 + $0x68] sm:$0xff]  }
  0x63   : > { %v496_v24 = vsub.f32 1.0, %v1215_v23  ;;  %v560_v25 = vmul.f32 0.0, %v1215_v23  ;;  %vm401_vm1 = vcmp.ge.f32.partialorder %v369_v12, 1.0  ;;  %vm402_vm2 = vcmp.ge.f32.partialorder %v370_v15, 1.0 }
  0x64   : > { %v590_v26 = vadd.f32 %v558_v11, %v526_v19  ;;  %v527_v28 = vmul.f32 %v495_v21, %v367_v3  ;;  %v1220_v29 = vsel %vm401_vm1, 1.0, %v1065_v43  ;;  %v1223_v30 = vsel %vm402_vm2, 1.0, %v1065_v43  ;;  %v217_v19 = vld [vmem:[#allocation2 + $0xd0] sm:$0xff] }
  0x65   : > { %v528_v31 = vmul.f32 %v496_v24, %v368_v7  ;;  %v497_v32 = vsub.f32 1.0, %v1220_v29  ;;  %v561_v33 = vmul.f32 0.0, %v1220_v29  ;;  %v498_v34 = vsub.f32 1.0, %v1223_v30 }
  0x66   : > { %622 = vst [vmem:[#allocation2 + $0x8] sm:$0xff] %v590_v26  ;;  %v591_v36 = vadd.f32 %v559_v20, %v527_v28  ;;  %v562_v37 = vmul.f32 0.0, %v1223_v30  ;;  %v371_v38 = vadd.f32 %v339_v16, %v211_v52  ;;  %v340_v39 = vmul.f32 0.5, %v308_v9  ;;  %v218_v26 = vld [vmem:[#allocation2 + $0x10] sm:$0xff] }
  0x67   : > { %v592_v41 = vadd.f32 %v560_v25, %v528_v31  ;;  %v529_v47 = vmul.f32 %v497_v32, %v369_v12  ;;  %v530_v46 = vmul.f32 %v498_v34, %v370_v15  ;;  %v883_v48 = vunpack.c.h.bf16 %v1201_v42 }
  0x68   : > { %623 = vst [vmem:[#allocation2 + $0x78] sm:$0xff] %v591_v36  ;;  %vm403_vm3 = vcmp.ge.f32.partialorder %v371_v38, 1.0  ;;  %v372_v53 = vadd.f32 %v340_v39, %v212_v60  ;;  %v886_v54 = vunpack.c.l.bf16 %v962_v35  ;;  %v887_v57 = vunpack.c.h.bf16 %v962_v35 }
  0x69   : > { %624 = vst [vmem:[#allocation2 + $0x38] sm:$0xff] %v592_v41  ;;  %v593_v62 = vadd.f32 %v561_v33, %v529_v47  ;;  %v594_v63 = vadd.f32 %v562_v37, %v530_v46  ;;  %v1233_v52 = vsel %vm403_vm3, 1.0, %v1065_v43  ;;  %v309_v2 = vsub.f32 %v883_v48, %v213_v40 }
  0x6a   : > { %v499_v3 = vsub.f32 1.0, %v1233_v52  ;;  %v563_v42 = vmul.f32 0.0, %v1233_v52  ;;  %vm404_vm4 = vcmp.ge.f32.partialorder %v372_v53, 1.0  ;;  %v310_v4 = vsub.f32 %v886_v54, %v214_v49 }
  0x6b   : > { %625 = vst [vmem:[#allocation2 + $0x58] sm:$0xff] %v593_v62  ;;  %v1238_v60 = vsel %vm404_vm4, 1.0, %v1065_v43  ;;  %v341_v7 = vmul.f32 0.5, %v309_v2  ;;  %v311_v8 = vsub.f32 %v887_v57, %v215_v55  ;;  %v890_v9 = vunpack.c.l.bf16 %v963_v61  ;;  %v219_v2 = vld [vmem:[#allocation2 + $0x28] sm:$0xff] }
  0x6c   : > { %626 = vst [vmem:[#allocation2 + $0x40] sm:$0xff] %v594_v63  ;;  %v531_v11 = vmul.f32 %v499_v3, %v371_v38  ;;  %v500_v12 = vsub.f32 1.0, %v1238_v60  ;;  %v564_v15 = vmul.f32 0.0, %v1238_v60  ;;  %v342_v16 = vmul.f32 0.5, %v310_v4 }
  0x6d   : > { %v373_v21 = vadd.f32 %v341_v7, %v213_v40  ;;  %v343_v20 = vmul.f32 0.5, %v311_v8  ;;  %v312_v24 = vsub.f32 %v890_v9, %v216_v5  ;;  %v891_v25 = vunpack.c.h.bf16 %v963_v61 }
  0x6e   : > { %v595_v28 = vadd.f32 %v563_v42, %v531_v11  ;;  %v532_v31 = vmul.f32 %v500_v12, %v372_v53  ;;  %v374_v32 = vadd.f32 %v342_v16, %v214_v49  ;;  %v894_v33 = vunpack.c.l.bf16 %v964_v10  ;;  %v965_v42 = vld [vmem:[%s1109_s20 + $0x70] sm:$0xff]  }
  0x6f   : > { %vm405_vm5 = vcmp.ge.f32.partialorder %v373_v21, 1.0  ;;  %v375_v34 = vadd.f32 %v343_v20, %v215_v55  ;;  %v344_v35 = vmul.f32 0.5, %v312_v24  ;;  %v313_v36 = vsub.f32 %v891_v25, %v217_v19  ;;  %v220_v20 = vld [vmem:[#allocation2 + $0xa0] sm:$0xff] }
  0x70   : > { %627 = vst [vmem:[#allocation2 + $0xc8] sm:$0xff] %v595_v28  ;;  %v596_v37 = vadd.f32 %v564_v15, %v532_v31  ;;  %v1244_v38 = vsel %vm405_vm5, 1.0, %v1065_v43  ;;  %vm406_vm6 = vcmp.ge.f32.partialorder %v374_v32, 1.0  ;;  %v314_v39 = vsub.f32 %v894_v33, %v218_v26  ;;  %v966_v31 = vld [vmem:[%s1109_s20 + $0x78] sm:$0xff]  }
  0x71   : > { %v501_v40 = vsub.f32 1.0, %v1244_v38  ;;  %v565_v41 = vmul.f32 0.0, %v1244_v38  ;;  %v1249_v47 = vsel %vm406_vm6, 1.0, %v1065_v43  ;;  %vm407_vm7 = vcmp.ge.f32.partialorder %v375_v34, 1.0 }
  0x72   : > { %628 = vst [vmem:[#allocation2 + $0xe0] sm:$0xff] %v596_v37  ;;  %v502_v46 = vsub.f32 1.0, %v1249_v47  ;;  %v566_v48 = vmul.f32 0.0, %v1249_v47  ;;  %v1254_v49 = vsel %vm407_vm7, 1.0, %v1065_v43  ;;  %v376_v53 = vadd.f32 %v344_v35, %v216_v5 }
  0x73   : > { %v533_v54 = vmul.f32 %v501_v40, %v373_v21  ;;  %v503_v55 = vsub.f32 1.0, %v1254_v49  ;;  %v567_v57 = vmul.f32 0.0, %v1254_v49  ;;  %v345_v61 = vmul.f32 0.5, %v313_v36  ;;  %v222_v40 = vld [vmem:[#allocation2 + $0x20] sm:$0xff] }
  0x74   : > { %v534_v62 = vmul.f32 %v502_v46, %v374_v32  ;;  %vm408_vm8 = vcmp.ge.f32.partialorder %v376_v53, 1.0  ;;  %v346_v63 = vmul.f32 0.5, %v314_v39  ;;  %v895_v3 = vunpack.c.h.bf16 %v964_v10 }
  0x75   : > { %v597_v4 = vadd.f32 %v565_v41, %v533_v54  ;;  %v535_v7 = vmul.f32 %v503_v55, %v375_v34  ;;  %v1260_v8 = vsel %vm408_vm8, 1.0, %v1065_v43  ;;  %v377_v9 = vadd.f32 %v345_v61, %v217_v19  ;;  %v221_v19 = vld [vmem:[#allocation2 + $0xf8] sm:$0xff] }
  0x76   : > { %v598_v11 = vadd.f32 %v566_v48, %v534_v62  ;;  %v504_v5 = vsub.f32 1.0, %v1260_v8  ;;  %v568_v12 = vmul.f32 0.0, %v1260_v8  ;;  %v378_v15 = vadd.f32 %v346_v63, %v218_v26  ;;  %v223_v54 = vld [vmem:[#allocation2 + $0x98] sm:$0xff] }
  0x77   : > { %629 = vst [vmem:[#allocation2 + $0x90] sm:$0xff] %v597_v4  ;;  %v599_v16 = vadd.f32 %v567_v57, %v535_v7  ;;  %vm409_vm9 = vcmp.ge.f32.partialorder %v377_v9, 1.0  ;;  %v315_v21 = vsub.f32 %v895_v3, %v219_v2  ;;  %v898_v10 = vunpack.c.l.bf16 %v965_v42 }
  0x78   : > { %630 = vst [vmem:[#allocation2 + $0x70] sm:$0xff] %v598_v11  ;;  %v536_v24 = vmul.f32 %v504_v5, %v376_v53  ;;  %v1265_v25 = vsel %vm409_vm9, 1.0, %v1065_v43  ;;  %vm410_vm10 = vcmp.ge.f32.partialorder %v378_v15, 1.0  ;;  %v899_v28 = vunpack.c.h.bf16 %v965_v42 }
  0x79   : > { %631 = vst [vmem:[#allocation2 + $0xc0] sm:$0xff] %v599_v16  ;;  %v505_v32 = vsub.f32 1.0, %v1265_v25  ;;  %v569_v26 = vmul.f32 0.0, %v1265_v25  ;;  %v1271_v33 = vsel %vm410_vm10, 1.0, %v1065_v43  ;;  %v347_v34 = vmul.f32 0.5, %v315_v21 }
  0x7a   : > { %v600_v35 = vadd.f32 %v568_v12, %v536_v24  ;;  %v506_v36 = vsub.f32 1.0, %v1271_v33  ;;  %v570_v37 = vmul.f32 0.0, %v1271_v33  ;;  %v316_v39 = vsub.f32 %v898_v10, %v220_v20 }
  0x7b   : > { %v537_v41 = vmul.f32 %v505_v32, %v377_v9  ;;  %v379_v46 = vadd.f32 %v347_v34, %v219_v2  ;;  %v317_v48 = vsub.f32 %v899_v28, %v221_v19  ;;  %v902_v53 = vunpack.c.l.bf16 %v966_v31 }
  0x7c   : > { %632 = vst [vmem:[#allocation2 + $0xa8] sm:$0xff] %v600_v35  ;;  %v538_v55 = vmul.f32 %v506_v36, %v378_v15  ;;  %v348_v57 = vmul.f32 0.5, %v316_v39  ;;  %v903_v61 = vunpack.c.h.bf16 %v966_v31  ;;  %v905_v62 = vpack.c.bf16 %v1124_v45, %v1121_v44 }
  0x7d   : > { %v601_v63 = vadd.f32 %v569_v26, %v537_v41  ;;  %vm411_vm11 = vcmp.ge.f32.partialorder %v379_v46, 1.0  ;;  %v349_v3 = vmul.f32 0.5, %v317_v48  ;;  %v318_v42 = vsub.f32 %v902_v53, %v222_v40 }
  0x7e   : > { %v602_v4 = vadd.f32 %v570_v37, %v538_v55  ;;  %v1278_v7 = vsel %vm411_vm11, 1.0, %v1065_v43  ;;  %v380_v2 = vadd.f32 %v348_v57, %v220_v20  ;;  %v319_v9 = vsub.f32 %v903_v61, %v223_v54  ;;  %906 = vst [vmem:[%s1114_s23] sm:$0xff] %v905_v62  }
  0x7f   : > { %633 = vst [vmem:[#allocation2 + $0xd0] sm:$0xff] %v601_v63  ;;  %v507_v11 = vsub.f32 1.0, %v1278_v7  ;;  %v571_v5 = vmul.f32 0.0, %v1278_v7  ;;  %v381_v12 = vadd.f32 %v349_v3, %v221_v19  ;;  %v350_v15 = vmul.f32 0.5, %v318_v42 }
  0x80   : > { %634 = vst [vmem:[#allocation2 + $0x10] sm:$0xff] %v602_v4  ;;  %vm412_vm12 = vcmp.ge.f32.partialorder %v380_v2, 1.0  ;;  %v351_v44 = vmul.f32 0.5, %v319_v9  ;;  %v908_v45 = vpack.c.bf16 %v1134_v51, %v1131_v50  ;;  %v911_v16 = vpack.c.bf16 %v1144_v59, %v1141_v58 }
  0x81   : > { %v539_v21 = vmul.f32 %v507_v11, %v379_v46  ;;  %v834_v20 = vsel %vm412_vm12, 1.0, %v1065_v43  ;;  %vm413_vm13 = vcmp.ge.f32.partialorder %v381_v12, 1.0  ;;  %v382_v10 = vadd.f32 %v350_v15, %v222_v40 }
  0x82   : > { %v508_v24 = vsub.f32 1.0, %v834_v20  ;;  %v572_v28 = vmul.f32 0.0, %v834_v20  ;;  %v835_v19 = vsel %vm413_vm13, 1.0, %v1065_v43  ;;  %v383_v31 = vadd.f32 %v351_v44, %v223_v54  ;;  %967 = vst [vmem:[%s1114_s23 + $0x8] sm:$0xff] %v908_v45  }
  0x83   : > { %v603_v32 = vadd.f32 %v571_v5, %v539_v21  ;;  %v509_v26 = vsub.f32 1.0, %v835_v19  ;;  %v573_v34 = vmul.f32 0.0, %v835_v19  ;;  %vm414_vm14 = vcmp.ge.f32.partialorder %v382_v10, 1.0  ;;  %968 = vst [vmem:[%s1114_s23 + $0x10] sm:$0xff] %v911_v16  }
  0x84   : > { %v540_v50 = vmul.f32 %v508_v24, %v380_v2  ;;  %v836_v51 = vsel %vm414_vm14, 1.0, %v1065_v43  ;;  %vm415_vm15 = vcmp.ge.f32.partialorder %v383_v31, 1.0  ;;  %v914_v58 = vpack.c.bf16 %v1156_v18, %v1153_v22 }
  0x85   : > { %635 = vst [vmem:[#allocation2 + $0x28] sm:$0xff] %v603_v32  ;;  %v541_v59 = vmul.f32 %v509_v26, %v381_v12  ;;  %v510_v35 = vsub.f32 1.0, %v836_v51  ;;  %v574_v36 = vmul.f32 0.0, %v836_v51  ;;  %v837_v37 = vsel %vm415_vm15, 1.0, %v1065_v43 }
  0x86   : > { %v604_v39 = vadd.f32 %v572_v28, %v540_v50  ;;  %v511_v40 = vsub.f32 1.0, %v837_v37  ;;  %v575_v41 = vmul.f32 0.0, %v837_v37  ;;  %969 = vst [vmem:[%s1114_s23 + $0x18] sm:$0xff] %v914_v58   ;;  %v917_v46 = vpack.c.bf16 %v1173_v0, %v1167_v56 }
  0x87   : > { %v605_v48 = vadd.f32 %v573_v34, %v541_v59  ;;  %v542_v53 = vmul.f32 %v510_v35, %v382_v10  ;;  %v920_v43 = vpack.c.bf16 %v1183_v13, %v1176_v1  ;;  %v923_v55 = vpack.c.bf16 %v1194_v27, %v1188_v17 }
  0x88   : > { %636 = vst [vmem:[#allocation2 + $0xa0] sm:$0xff] %v604_v39  ;;  %v543_v22 = vmul.f32 %v511_v40, %v383_v31  ;;  %v926_v56 = vpack.c.bf16 %v1210_v14, %v1205_v6  ;;  %v929_v0 = vpack.c.bf16 %v1220_v29, %v1215_v23  ;;  %v932_v1 = vpack.c.bf16 %v1233_v52, %v1223_v30 }
  0x89   : > { %637 = vst [vmem:[#allocation2 + $0xf8] sm:$0xff] %v605_v48  ;;  %v606_v18 = vadd.f32 %v574_v36, %v542_v53  ;;  %v935_v13 = vpack.c.bf16 %v1244_v38, %v1238_v60  ;;  %v938_v17 = vpack.c.bf16 %v1254_v49, %v1249_v47  ;;  %v941_v27 = vpack.c.bf16 %v1265_v25, %v1260_v8 }
  0x8a   : > { %v607_v54 = vadd.f32 %v575_v41, %v543_v22  ;;  %970 = vst [vmem:[%s1114_s23 + $0x20] sm:$0xff] %v917_v46   ;;  %v944_v6 = vpack.c.bf16 %v1278_v7, %v1271_v33  ;;  %v947_v14 = vpack.c.bf16 %v835_v19, %v834_v20  ;;  %v950_v23 = vpack.c.bf16 %v837_v37, %v836_v51 }
  0x8b   : > { %638 = vst [vmem:[#allocation2 + $0x20] sm:$0xff] %v606_v18 }
  0x8c   : > { %639 = vst [vmem:[#allocation2 + $0x98] sm:$0xff] %v607_v54 }
  0x8d   : > { %971 = vst [vmem:[%s1114_s23 + $0x28] sm:$0xff] %v920_v43  }
  0x8e   : > { %972 = vst [vmem:[%s1114_s23 + $0x30] sm:$0xff] %v923_v55  }
  0x8f   : > { %973 = vst [vmem:[%s1114_s23 + $0x38] sm:$0xff] %v926_v56  }
  0x90   : > { %974 = vst [vmem:[%s1114_s23 + $0x40] sm:$0xff] %v929_v0  }
  0x91   : > { %975 = vst [vmem:[%s1114_s23 + $0x48] sm:$0xff] %v932_v1  }
  0x92   : > { %976 = vst [vmem:[%s1114_s23 + $0x50] sm:$0xff] %v935_v13  }
  0x93   : > { %977 = vst [vmem:[%s1114_s23 + $0x58] sm:$0xff] %v938_v17  }
  0x94   : > { %978 = vst [vmem:[%s1114_s23 + $0x60] sm:$0xff] %v941_v27  }
  0x95   : > { %979 = vst [vmem:[%s1114_s23 + $0x68] sm:$0xff] %v944_v6  }
  0x96   : > { %980 = vst [vmem:[%s1114_s23 + $0x70] sm:$0xff] %v947_v14  }
  0x97   : > { %981 = vst [vmem:[%s1114_s23 + $0x78] sm:$0xff] %v950_v23  }
  0x98 PF: > { %s11_s10 = sadd.s32 1, %s1062_s10   ;;  %s1345_s6 = smov %s1054_s8 }
  0x99   : > { %p8_p8 = scmp.ge.s32.totalorder %s11_s10, 34   ;;  %s1346_s7 = smov %s1058_s9 }
  0x9a   : > { %s1347_s8 = smov %s1350_s11  ;;  %s1348_s9 = smov %s1354_s12 }
  0x9b   :  { %10 = sbr.rel (!%p8_p8) target bundleno = 3 (0x3), region = 58 }

// kernel: multi_step_cifar10dvs_forward.14
= control target key start
LH: loop header
LB: loop body
LE: loop exit
PB: predicated region body
PF: predicated region fallthrough
CT: control target
= control target key end

     0   :  { %s1924_s12 = smov 0   ;;  %s1926_s13 = smov 0   ;;  %s2148_s0 = inlined_call_operand.vmem [shape: bf16[32768,72], index: 0, kind: input, shape index: {}]   ;;  %s2149_s1 = inlined_call_operand.vmem [shape: bf16[72,128], index: 1, kind: input, shape index: {}]   ;;  %s2150_s2 = inlined_call_operand.vmem [shape: f32[1,128], index: 2, kind: input, shape index: {}]   ;;  %s2151_s3 = inlined_call_operand.vmem [shape: bf16[32768,128], index: 3, kind: output, shape index: {}]  }
   0x1   :  { %s1928_s14 = smov 0  }
   0x2 LB: > { %s32_s15 = sadd.s32 1, %s1898_s13  ;;  %p1430_p0 = scmp.ge.s32.totalorder %s1902_s14, 1  ;;  %s1902_s14 = sphi %s1928_s14, %s13_s14   ;;  %s1898_s13 = sphi %s1926_s13, %s2153_s13   ;;  %s1894_s12 = sphi %s1924_s12, %s2152_s12  }
   0x3   : > { %p34_p1 = scmp.ge.s32.totalorder %s32_s15, 64  ;;  %p188_p2 = scmp.lt.s32.totalorder %s1902_s14, 65 }
   0x5   : > { %s2155_s15 = smov (%p34_p1, %s32_s15), 0  ;;  %p189_p3 = pnand %p1430_p0, %p188_p2 }
   0x6   : > { %s1431_s18 = sshll.u32 (!%p189_p3), %s1894_s12, 6 }
   0x7   : > { %192 = sbr.rel (%p189_p3) target bundleno = 296 (0x128), region = 32  ;;  %p230_p4 = scmp.lt.s32.totalorder (!%p189_p3), %s1431_s18, 4095 }
   0xc   : > { %v464_v0 = vld [vmem:[%s2149_s1 + $0x20] sm:$0xf]  ;;  %vm749_vm0 = vcmask 1043456   ;;  %v1648_v4 = vld [vmem:[%s2149_s1 + $0x18] sm:$0xff]  ;;  %v1647_v5 = vld [vmem:[%s2149_s1 + $0x10] sm:$0xff]  ;;  %s2157_s18 = smov (!%p230_p4, %s1431_s18), 4095 }
   0xd   : > { %v642_v1 = vunpack.c.l.b16 %v464_v0  ;;  %v1646_v6 = vld [vmem:[%s2149_s1 + $0x8] sm:$0xff]  ;;  %s1432_s25 = sshll.u32 %s2157_s18, 2  ;;  %v1645_v7 = vld [vmem:[%s2149_s1] sm:$0xff]  ;;  %vm652_vm1 = vcmask 588800  }
   0xe   : > { %s1965_s30 = scalar_lea.vmem %s2148_s0, %s1432_s25  ;;  %v2034_v42 = vld [vmem:[%s2150_s2] ss:$0 sm:$0xff]  ;;  %s2045_s8 = scalar_lea.vmem %s2151_s3, %s1432_s25 }
   0xf   : > { %v647_v2 = vpack.c.b16 %v642_v1, %v642_v1  ;;  %v1613_v8 = vld [vmem:[%s1965_s30] sm:$0xff]  ;;  %v1614_v12 = vld [vmem:[%s1965_s30 + $0x8] sm:$0xff]  ;;  %v1615_v16 = vld [vmem:[%s1965_s30 + $0x10] sm:$0xff] }
  0x10   : > { %v1621_v9 = vld [vmem:[%s1965_s30 + $0x40] sm:$0xff]  ;;  %v1622_v13 = vld [vmem:[%s1965_s30 + $0x48] sm:$0xff]  ;;  %v1623_v17 = vld [vmem:[%s1965_s30 + $0x50] sm:$0xff] }
  0x11   : > { %v751_v3 = vsel %vm749_vm0, %v647_v2, 0  ;;  %v1629_v10 = vld [vmem:[%s1965_s30 + $0x80] sm:$0xff]  ;;  %v1630_v14 = vld [vmem:[%s1965_s30 + $0x88] sm:$0xff]  ;;  %v1631_v18 = vld [vmem:[%s1965_s30 + $0x90] sm:$0xff] }
  0x12   : > { %756 = vmatpush.bf16.msra.mxu0 %v751_v3  ;;  %1840 = vmatpush.bf16.msra.mxu1 %v751_v3  ;;  %v1637_v11 = vld [vmem:[%s1965_s30 + $0xc0] sm:$0xff]  ;;  %v1638_v15 = vld [vmem:[%s1965_s30 + $0xc8] sm:$0xff]  ;;  %v1639_v19 = vld [vmem:[%s1965_s30 + $0xd0] sm:$0xff] }
  0x13   : > { %1841 = vmatpush.bf16.msra.mxu2 %v751_v3  ;;  %1842 = vmatpush.bf16.msra.mxu3 %v751_v3  ;;  %v1616_v20 = vld [vmem:[%s1965_s30 + $0x18] sm:$0xff]  ;;  %v1617_v24 = vld [vmem:[%s1965_s30 + $0x20] sm:$0xff]  ;;  %v1618_v28 = vld [vmem:[%s1965_s30 + $0x28] sm:$0xff] }
  0x14   : > { %v1624_v21 = vld [vmem:[%s1965_s30 + $0x58] sm:$0xff]  ;;  %v1625_v25 = vld [vmem:[%s1965_s30 + $0x60] sm:$0xff]  ;;  %v1626_v29 = vld [vmem:[%s1965_s30 + $0x68] sm:$0xff] }
  0x15   : > { %v1632_v22 = vld [vmem:[%s1965_s30 + $0x98] sm:$0xff]  ;;  %v1633_v26 = vld [vmem:[%s1965_s30 + $0xa0] sm:$0xff]  ;;  %v1634_v30 = vld [vmem:[%s1965_s30 + $0xa8] sm:$0xff] }
  0x16   : > { %757 = vmatpush.bf16.msra.mxu0 %v1648_v4  ;;  %1843 = vmatpush.bf16.msra.mxu1 %v1648_v4  ;;  %v1640_v23 = vld [vmem:[%s1965_s30 + $0xd8] sm:$0xff]  ;;  %v1641_v27 = vld [vmem:[%s1965_s30 + $0xe0] sm:$0xff]  ;;  %v1642_v31 = vld [vmem:[%s1965_s30 + $0xe8] sm:$0xff] }
  0x17   : > { %1844 = vmatpush.bf16.msra.mxu2 %v1648_v4  ;;  %1845 = vmatpush.bf16.msra.mxu3 %v1648_v4  ;;  %v1619_v32 = vld [vmem:[%s1965_s30 + $0x30] sm:$0xff]  ;;  %v1620_v36 = vld [vmem:[%s1965_s30 + $0x38] sm:$0xff] }
  0x18   : > { %v1627_v33 = vld [vmem:[%s1965_s30 + $0x70] sm:$0xff]  ;;  %v1628_v37 = vld [vmem:[%s1965_s30 + $0x78] sm:$0xff] }
  0x19   : > { %v1635_v34 = vld [vmem:[%s1965_s30 + $0xb0] sm:$0xff]  ;;  %v1636_v38 = vld [vmem:[%s1965_s30 + $0xb8] sm:$0xff] }
  0x1a   : > { %758 = vmatpush.bf16.msra.mxu0 %v1647_v5  ;;  %1846 = vmatpush.bf16.msra.mxu1 %v1647_v5  ;;  %v1643_v35 = vld [vmem:[%s1965_s30 + $0xf0] sm:$0xff]  ;;  %v1644_v39 = vld [vmem:[%s1965_s30 + $0xf8] sm:$0xff] }
  0x1b   : > { %1847 = vmatpush.bf16.msra.mxu2 %v1647_v5  ;;  %1848 = vmatpush.bf16.msra.mxu3 %v1647_v5 }
  0x1e   : > { %759 = vmatpush.bf16.msra.mxu0 %v1646_v6  ;;  %1849 = vmatpush.bf16.msra.mxu1 %v1646_v6 }
  0x1f   : > { %1850 = vmatpush.bf16.msra.mxu2 %v1646_v6  ;;  %1851 = vmatpush.bf16.msra.mxu3 %v1646_v6 }
  0x22   : > { %760 = vmatpush.bf16.msra.mxu0 %v1645_v7  ;;  %1852 = vmatpush.bf16.msra.mxu1 %v1645_v7 }
  0x23   : > { %1853 = vmatpush.bf16.msra.mxu2 %v1645_v7  ;;  %1854 = vmatpush.bf16.msra.mxu3 %v1645_v7 }
  0x25   : > { %1579 = vmatmul.msk.bf16.vlgmr.msra.gmra.mxu0 %vm652_vm1, %v1613_v8  ;;  %1587 = vmatmul.msk.bf16.vlgmr.msra.gmra.mxu1 %vm652_vm1, %v1621_v9 }
  0x26   : > { %1595 = vmatmul.msk.bf16.vlgmr.msra.gmra.mxu2 %vm652_vm1, %v1629_v10  ;;  %1603 = vmatmul.msk.bf16.vlgmr.msra.gmra.mxu3 %vm652_vm1, %v1637_v11 }
  0x35   : > { %1580 = vmatmul.msk.bf16.gmra.mxu0 %vm652_vm1, %v1614_v12  ;;  %1588 = vmatmul.msk.bf16.gmra.mxu1 %vm652_vm1, %v1622_v13 }
  0x36   : > { %1596 = vmatmul.msk.bf16.gmra.mxu2 %vm652_vm1, %v1630_v14  ;;  %1604 = vmatmul.msk.bf16.gmra.mxu3 %vm652_vm1, %v1638_v15 }
  0x45   : > { %1581 = vmatmul.msk.bf16.gmra.mxu0 %vm652_vm1, %v1615_v16  ;;  %1589 = vmatmul.msk.bf16.gmra.mxu1 %vm652_vm1, %v1623_v17 }
  0x46   : > { %1597 = vmatmul.msk.bf16.gmra.mxu2 %vm652_vm1, %v1631_v18  ;;  %1605 = vmatmul.msk.bf16.gmra.mxu3 %vm652_vm1, %v1639_v19 }
  0x55   : > { %1582 = vmatmul.msk.bf16.gmra.mxu0 %vm652_vm1, %v1616_v20  ;;  %1590 = vmatmul.msk.bf16.gmra.mxu1 %vm652_vm1, %v1624_v21 }
  0x56   : > { %1598 = vmatmul.msk.bf16.gmra.mxu2 %vm652_vm1, %v1632_v22  ;;  %1606 = vmatmul.msk.bf16.gmra.mxu3 %vm652_vm1, %v1640_v23 }
  0x65   : > { %1583 = vmatmul.msk.bf16.gmra.mxu0 %vm652_vm1, %v1617_v24  ;;  %1591 = vmatmul.msk.bf16.gmra.mxu1 %vm652_vm1, %v1625_v25 }
  0x66   : > { %1599 = vmatmul.msk.bf16.gmra.mxu2 %vm652_vm1, %v1633_v26  ;;  %1607 = vmatmul.msk.bf16.gmra.mxu3 %vm652_vm1, %v1641_v27 }
  0x75   : > { %1584 = vmatmul.msk.bf16.gmra.mxu0 %vm652_vm1, %v1618_v28  ;;  %1592 = vmatmul.msk.bf16.gmra.mxu1 %vm652_vm1, %v1626_v29 }
  0x76   : > { %1600 = vmatmul.msk.bf16.gmra.mxu2 %vm652_vm1, %v1634_v30  ;;  %1608 = vmatmul.msk.bf16.gmra.mxu3 %vm652_vm1, %v1642_v31 }
  0x85   : > { %1585 = vmatmul.msk.bf16.gmra.mxu0 %vm652_vm1, %v1619_v32  ;;  %1593 = vmatmul.msk.bf16.gmra.mxu1 %vm652_vm1, %v1627_v33 }
  0x86   : > { %1601 = vmatmul.msk.bf16.gmra.mxu2 %vm652_vm1, %v1635_v34  ;;  %1609 = vmatmul.msk.bf16.gmra.mxu3 %vm652_vm1, %v1643_v35 }
  0x95   : > { %1586 = vmatmul.msk.bf16.gmra.mxu0 %vm652_vm1, %v1620_v36  ;;  %1594 = vmatmul.msk.bf16.gmra.mxu1 %vm652_vm1, %v1628_v37 }
  0x96   : > { %1602 = vmatmul.msk.bf16.gmra.mxu2 %vm652_vm1, %v1636_v38  ;;  %1610 = vmatmul.msk.bf16.gmra.mxu3 %vm652_vm1, %v1644_v39 }
  0xa2   : > { %v762_v40 = vpop.f32.mrf.mxu0  ;;  %v802_v41 = vpop.f32.mrf.mxu1 }
  0xa3   : > { %v1121_v47 = vadd.f32 %v2034_v42, %v762_v40  ;;  %v1137_v48 = vadd.f32 %v2034_v42, %v802_v41 }
  0xa9   : > { %v842_v43 = vpop.f32.mrf.mxu2  ;;  %v882_v44 = vpop.f32.mrf.mxu3 }
  0xaa   : > { %v764_v45 = vpop.f32.mrf.mxu0  ;;  %v804_v46 = vpop.f32.mrf.mxu1  ;;  %v1153_v55 = vadd.f32 %v2034_v42, %v842_v43  ;;  %v1169_v56 = vadd.f32 %v2034_v42, %v882_v44 }
  0xab   : > { %v1122_v49 = vadd.f32 %v2034_v42, %v764_v45  ;;  %v1138_v50 = vadd.f32 %v2034_v42, %v804_v46 }
  0xad   : > { %v1652_v51 = vpack.c.bf16 %v1122_v49, %v1121_v47  ;;  %v1692_v52 = vpack.c.bf16 %v1138_v50, %v1137_v48 }
  0xaf   : > { %1653 = vst [vmem:[%s2045_s8] sm:$0xff] %v1652_v51  }
  0xb0   : > { %1816 = vst [vmem:[%s2045_s8 + $0x40] sm:$0xff] %v1692_v52  }
  0xb1   : > { %v844_v53 = vpop.f32.mrf.mxu2  ;;  %v884_v54 = vpop.f32.mrf.mxu3 }
  0xb2   : > { %v1154_v57 = vadd.f32 %v2034_v42, %v844_v53  ;;  %v1170_v58 = vadd.f32 %v2034_v42, %v884_v54  ;;  %v767_v59 = vpop.f32.mrf.mxu0  ;;  %v807_v60 = vpop.f32.mrf.mxu1 }
  0xb3   : > { %v1123_v3 = vadd.f32 %v2034_v42, %v767_v59  ;;  %v1139_v4 = vadd.f32 %v2034_v42, %v807_v60 }
  0xb4   : > { %v1732_v61 = vpack.c.bf16 %v1154_v57, %v1153_v55  ;;  %v1772_v62 = vpack.c.bf16 %v1170_v58, %v1169_v56 }
  0xb6   : > { %1824 = vst [vmem:[%s2045_s8 + $0x80] sm:$0xff] %v1732_v61  }
  0xb7   : > { %1832 = vst [vmem:[%s2045_s8 + $0xc0] sm:$0xff] %v1772_v62  }
  0xb9   : > { %v847_v63 = vpop.f32.mrf.mxu2  ;;  %v887_v0 = vpop.f32.mrf.mxu3 }
  0xba   : > { %v769_v1 = vpop.f32.mrf.mxu0  ;;  %v809_v2 = vpop.f32.mrf.mxu1  ;;  %v1155_v11 = vadd.f32 %v2034_v42, %v847_v63  ;;  %v1171_v12 = vadd.f32 %v2034_v42, %v887_v0 }
  0xbb   : > { %v1124_v5 = vadd.f32 %v2034_v42, %v769_v1  ;;  %v1140_v6 = vadd.f32 %v2034_v42, %v809_v2 }
  0xbd   : > { %v1657_v7 = vpack.c.bf16 %v1124_v5, %v1123_v3  ;;  %v1697_v8 = vpack.c.bf16 %v1140_v6, %v1139_v4 }
  0xbf   : > { %1809 = vst [vmem:[%s2045_s8 + $0x8] sm:$0xff] %v1657_v7  }
  0xc0   : > { %1817 = vst [vmem:[%s2045_s8 + $0x48] sm:$0xff] %v1697_v8  }
  0xc1   : > { %v849_v9 = vpop.f32.mrf.mxu2  ;;  %v889_v10 = vpop.f32.mrf.mxu3 }
  0xc2   : > { %v1156_v13 = vadd.f32 %v2034_v42, %v849_v9  ;;  %v1172_v14 = vadd.f32 %v2034_v42, %v889_v10  ;;  %v772_v15 = vpop.f32.mrf.mxu0  ;;  %v812_v16 = vpop.f32.mrf.mxu1 }
  0xc3   : > { %v1125_v23 = vadd.f32 %v2034_v42, %v772_v15  ;;  %v1141_v24 = vadd.f32 %v2034_v42, %v812_v16 }
  0xc4   : > { %v1737_v17 = vpack.c.bf16 %v1156_v13, %v1155_v11  ;;  %v1777_v18 = vpack.c.bf16 %v1172_v14, %v1171_v12 }
  0xc6   : > { %1825 = vst [vmem:[%s2045_s8 + $0x88] sm:$0xff] %v1737_v17  }
  0xc7   : > { %1833 = vst [vmem:[%s2045_s8 + $0xc8] sm:$0xff] %v1777_v18  }
  0xc9   : > { %v852_v19 = vpop.f32.mrf.mxu2  ;;  %v892_v20 = vpop.f32.mrf.mxu3 }
  0xca   : > { %v774_v21 = vpop.f32.mrf.mxu0  ;;  %v814_v22 = vpop.f32.mrf.mxu1  ;;  %v1157_v31 = vadd.f32 %v2034_v42, %v852_v19  ;;  %v1173_v32 = vadd.f32 %v2034_v42, %v892_v20 }
  0xcb   : > { %v1126_v25 = vadd.f32 %v2034_v42, %v774_v21  ;;  %v1142_v26 = vadd.f32 %v2034_v42, %v814_v22 }
  0xcd   : > { %v1662_v27 = vpack.c.bf16 %v1126_v25, %v1125_v23  ;;  %v1702_v28 = vpack.c.bf16 %v1142_v26, %v1141_v24 }
  0xcf   : > { %1810 = vst [vmem:[%s2045_s8 + $0x10] sm:$0xff] %v1662_v27  }
  0xd0   : > { %1818 = vst [vmem:[%s2045_s8 + $0x50] sm:$0xff] %v1702_v28  }
  0xd1   : > { %v854_v29 = vpop.f32.mrf.mxu2  ;;  %v894_v30 = vpop.f32.mrf.mxu3 }
  0xd2   : > { %v1158_v33 = vadd.f32 %v2034_v42, %v854_v29  ;;  %v1174_v34 = vadd.f32 %v2034_v42, %v894_v30  ;;  %v777_v35 = vpop.f32.mrf.mxu0  ;;  %v817_v36 = vpop.f32.mrf.mxu1 }
  0xd3   : > { %v1127_v44 = vadd.f32 %v2034_v42, %v777_v35  ;;  %v1143_v45 = vadd.f32 %v2034_v42, %v817_v36 }
  0xd4   : > { %v1742_v37 = vpack.c.bf16 %v1158_v33, %v1157_v31  ;;  %v1782_v38 = vpack.c.bf16 %v1174_v34, %v1173_v32 }
  0xd6   : > { %1826 = vst [vmem:[%s2045_s8 + $0x90] sm:$0xff] %v1742_v37  }
  0xd7   : > { %1834 = vst [vmem:[%s2045_s8 + $0xd0] sm:$0xff] %v1782_v38  }
  0xd9   : > { %v857_v39 = vpop.f32.mrf.mxu2  ;;  %v897_v40 = vpop.f32.mrf.mxu3 }
  0xda   : > { %v779_v41 = vpop.f32.mrf.mxu0  ;;  %v819_v43 = vpop.f32.mrf.mxu1  ;;  %v1159_v52 = vadd.f32 %v2034_v42, %v857_v39  ;;  %v1175_v53 = vadd.f32 %v2034_v42, %v897_v40 }
  0xdb   : > { %v1128_v46 = vadd.f32 %v2034_v42, %v779_v41  ;;  %v1144_v47 = vadd.f32 %v2034_v42, %v819_v43 }
  0xdd   : > { %v1667_v48 = vpack.c.bf16 %v1128_v46, %v1127_v44  ;;  %v1707_v49 = vpack.c.bf16 %v1144_v47, %v1143_v45 }
  0xdf   : > { %1811 = vst [vmem:[%s2045_s8 + $0x18] sm:$0xff] %v1667_v48  }
  0xe0   : > { %1819 = vst [vmem:[%s2045_s8 + $0x58] sm:$0xff] %v1707_v49  }
  0xe1   : > { %v859_v50 = vpop.f32.mrf.mxu2  ;;  %v899_v51 = vpop.f32.mrf.mxu3 }
  0xe2   : > { %v1160_v54 = vadd.f32 %v2034_v42, %v859_v50  ;;  %v1176_v55 = vadd.f32 %v2034_v42, %v899_v51  ;;  %v782_v56 = vpop.f32.mrf.mxu0  ;;  %v822_v57 = vpop.f32.mrf.mxu1 }
  0xe3   : > { %v1129_v0 = vadd.f32 %v2034_v42, %v782_v56  ;;  %v1145_v1 = vadd.f32 %v2034_v42, %v822_v57 }
  0xe4   : > { %v1747_v58 = vpack.c.bf16 %v1160_v54, %v1159_v52  ;;  %v1787_v59 = vpack.c.bf16 %v1176_v55, %v1175_v53 }
  0xe6   : > { %1827 = vst [vmem:[%s2045_s8 + $0x98] sm:$0xff] %v1747_v58  }
  0xe7   : > { %1835 = vst [vmem:[%s2045_s8 + $0xd8] sm:$0xff] %v1787_v59  }
  0xe9   : > { %v862_v60 = vpop.f32.mrf.mxu2  ;;  %v902_v61 = vpop.f32.mrf.mxu3 }
  0xea   : > { %v784_v62 = vpop.f32.mrf.mxu0  ;;  %v824_v63 = vpop.f32.mrf.mxu1  ;;  %v1161_v8 = vadd.f32 %v2034_v42, %v862_v60  ;;  %v1177_v9 = vadd.f32 %v2034_v42, %v902_v61 }
  0xeb   : > { %v1130_v2 = vadd.f32 %v2034_v42, %v784_v62  ;;  %v1146_v3 = vadd.f32 %v2034_v42, %v824_v63 }
  0xed   : > { %v1672_v4 = vpack.c.bf16 %v1130_v2, %v1129_v0  ;;  %v1712_v5 = vpack.c.bf16 %v1146_v3, %v1145_v1 }
  0xef   : > { %1812 = vst [vmem:[%s2045_s8 + $0x20] sm:$0xff] %v1672_v4  }
  0xf0   : > { %1820 = vst [vmem:[%s2045_s8 + $0x60] sm:$0xff] %v1712_v5  }
  0xf1   : > { %v864_v6 = vpop.f32.mrf.mxu2  ;;  %v904_v7 = vpop.f32.mrf.mxu3 }
  0xf2   : > { %v1162_v10 = vadd.f32 %v2034_v42, %v864_v6  ;;  %v1178_v11 = vadd.f32 %v2034_v42, %v904_v7  ;;  %v787_v12 = vpop.f32.mrf.mxu0  ;;  %v827_v13 = vpop.f32.mrf.mxu1 }
  0xf3   : > { %v1131_v20 = vadd.f32 %v2034_v42, %v787_v12  ;;  %v1147_v21 = vadd.f32 %v2034_v42, %v827_v13 }
  0xf4   : > { %v1752_v14 = vpack.c.bf16 %v1162_v10, %v1161_v8  ;;  %v1792_v15 = vpack.c.bf16 %v1178_v11, %v1177_v9 }
  0xf6   : > { %1828 = vst [vmem:[%s2045_s8 + $0xa0] sm:$0xff] %v1752_v14  }
  0xf7   : > { %1836 = vst [vmem:[%s2045_s8 + $0xe0] sm:$0xff] %v1792_v15  }
  0xf9   : > { %v867_v16 = vpop.f32.mrf.mxu2  ;;  %v907_v17 = vpop.f32.mrf.mxu3 }
  0xfa   : > { %v789_v18 = vpop.f32.mrf.mxu0  ;;  %v829_v19 = vpop.f32.mrf.mxu1  ;;  %v1163_v28 = vadd.f32 %v2034_v42, %v867_v16  ;;  %v1179_v29 = vadd.f32 %v2034_v42, %v907_v17 }
  0xfb   : > { %v1132_v22 = vadd.f32 %v2034_v42, %v789_v18  ;;  %v1148_v23 = vadd.f32 %v2034_v42, %v829_v19 }
  0xfd   : > { %v1677_v24 = vpack.c.bf16 %v1132_v22, %v1131_v20  ;;  %v1717_v25 = vpack.c.bf16 %v1148_v23, %v1147_v21 }
  0xff   : > { %1813 = vst [vmem:[%s2045_s8 + $0x28] sm:$0xff] %v1677_v24  }
 0x100   : > { %1821 = vst [vmem:[%s2045_s8 + $0x68] sm:$0xff] %v1717_v25  }
 0x101   : > { %v869_v26 = vpop.f32.mrf.mxu2  ;;  %v909_v27 = vpop.f32.mrf.mxu3 }
 0x102   : > { %v1164_v30 = vadd.f32 %v2034_v42, %v869_v26  ;;  %v1180_v31 = vadd.f32 %v2034_v42, %v909_v27  ;;  %v792_v32 = vpop.f32.mrf.mxu0  ;;  %v832_v33 = vpop.f32.mrf.mxu1 }
 0x103   : > { %v1133_v40 = vadd.f32 %v2034_v42, %v792_v32  ;;  %v1149_v41 = vadd.f32 %v2034_v42, %v832_v33 }
 0x104   : > { %v1757_v34 = vpack.c.bf16 %v1164_v30, %v1163_v28  ;;  %v1797_v35 = vpack.c.bf16 %v1180_v31, %v1179_v29 }
 0x106   : > { %1829 = vst [vmem:[%s2045_s8 + $0xa8] sm:$0xff] %v1757_v34  }
 0x107   : > { %1837 = vst [vmem:[%s2045_s8 + $0xe8] sm:$0xff] %v1797_v35  }
 0x109   : > { %v872_v36 = vpop.f32.mrf.mxu2  ;;  %v912_v37 = vpop.f32.mrf.mxu3 }
 0x10a   : > { %v794_v38 = vpop.f32.mrf.mxu0  ;;  %v834_v39 = vpop.f32.mrf.mxu1  ;;  %v1165_v49 = vadd.f32 %v2034_v42, %v872_v36  ;;  %v1181_v50 = vadd.f32 %v2034_v42, %v912_v37 }
 0x10b   : > { %v1134_v43 = vadd.f32 %v2034_v42, %v794_v38  ;;  %v1150_v44 = vadd.f32 %v2034_v42, %v834_v39 }
 0x10d   : > { %v1682_v45 = vpack.c.bf16 %v1134_v43, %v1133_v40  ;;  %v1722_v46 = vpack.c.bf16 %v1150_v44, %v1149_v41 }
 0x10f   : > { %1814 = vst [vmem:[%s2045_s8 + $0x30] sm:$0xff] %v1682_v45  }
 0x110   : > { %1822 = vst [vmem:[%s2045_s8 + $0x70] sm:$0xff] %v1722_v46  }
 0x111   : > { %v874_v47 = vpop.f32.mrf.mxu2  ;;  %v914_v48 = vpop.f32.mrf.mxu3 }
 0x112   : > { %v1166_v51 = vadd.f32 %v2034_v42, %v874_v47  ;;  %v1182_v52 = vadd.f32 %v2034_v42, %v914_v48  ;;  %v797_v53 = vpop.f32.mrf.mxu0  ;;  %v837_v54 = vpop.f32.mrf.mxu1 }
 0x113   : > { %v1135_v61 = vadd.f32 %v2034_v42, %v797_v53  ;;  %v1151_v62 = vadd.f32 %v2034_v42, %v837_v54 }
 0x114   : > { %v1762_v55 = vpack.c.bf16 %v1166_v51, %v1165_v49  ;;  %v1802_v56 = vpack.c.bf16 %v1182_v52, %v1181_v50 }
 0x116   : > { %1830 = vst [vmem:[%s2045_s8 + $0xb0] sm:$0xff] %v1762_v55  }
 0x117   : > { %1838 = vst [vmem:[%s2045_s8 + $0xf0] sm:$0xff] %v1802_v56  }
 0x119   : > { %v877_v57 = vpop.f32.mrf.mxu2  ;;  %v917_v58 = vpop.f32.mrf.mxu3 }
 0x11a   : > { %v799_v59 = vpop.f32.mrf.mxu0  ;;  %v839_v60 = vpop.f32.mrf.mxu1  ;;  %v1167_v5 = vadd.f32 %v2034_v42, %v877_v57  ;;  %v1183_v6 = vadd.f32 %v2034_v42, %v917_v58 }
 0x11b   : > { %v1136_v63 = vadd.f32 %v2034_v42, %v799_v59  ;;  %v1152_v0 = vadd.f32 %v2034_v42, %v839_v60 }
 0x11d   : > { %v1687_v1 = vpack.c.bf16 %v1136_v63, %v1135_v61  ;;  %v1727_v2 = vpack.c.bf16 %v1152_v0, %v1151_v62 }
 0x11f   : > { %1815 = vst [vmem:[%s2045_s8 + $0x38] sm:$0xff] %v1687_v1  }
 0x120   : > { %1823 = vst [vmem:[%s2045_s8 + $0x78] sm:$0xff] %v1727_v2  }
 0x121   : > { %v879_v3 = vpop.f32.mrf.mxu2  ;;  %v919_v4 = vpop.f32.mrf.mxu3 }
 0x122   : > { %v1168_v7 = vadd.f32 %v2034_v42, %v879_v3  ;;  %v1184_v8 = vadd.f32 %v2034_v42, %v919_v4 }
 0x124   : > { %v1767_v9 = vpack.c.bf16 %v1168_v7, %v1167_v5  ;;  %v1807_v10 = vpack.c.bf16 %v1184_v8, %v1183_v6 }
 0x126   : > { %1831 = vst [vmem:[%s2045_s8 + $0xb8] sm:$0xff] %v1767_v9  }
 0x127   : > { %1839 = vst [vmem:[%s2045_s8 + $0xf8] sm:$0xff] %v1807_v10  }
 0x128 PF: > { %s13_s14 = sadd.s32 1, %s1902_s14   ;;  %s2152_s12 = smov %s1898_s13 }
 0x129   : > { %p10_p5 = scmp.ge.s32.totalorder %s13_s14, 66   ;;  %s2153_s13 = smov %s2155_s15 }
 0x12b   :  { %12 = sbr.rel (!%p10_p5) target bundleno = 2 (0x2), region = 76 }

// kernel: multi_step_cifar10dvs_forward.15
= control target key start
LH: loop header
LB: loop body
LE: loop exit
PB: predicated region body
PF: predicated region fallthrough
CT: control target
= control target key end

     0   :  { %s1076_s6 = smov 0   ;;  %s1078_s7 = smov 0   ;;  %s1343_s0 = inlined_call_operand.vmem [shape: bf16[4,512,128], index: 0, kind: input, shape index: {}]   ;;  %s1344_s1 = inlined_call_operand.vmem [shape: bf16[4,512,128], index: 1, kind: output, shape index: {}]  }
   0x1   :  { %s1080_s8 = smov 0   ;;  %s1082_s9 = smov 0  }
   0x2   :  { %s1084_s10 = smov 0  }
   0x3 LB: > { %s20_s11 = sadd.s32 1, %s1054_s8  ;;  %s23_s12 = sadd.s32 1, %s1058_s9  ;;  %s1062_s10 = sphi %s1084_s10, %s11_s10   ;;  %s1058_s9 = sphi %s1082_s9, %s1348_s9   ;;  %s1054_s8 = sphi %s1080_s8, %s1347_s8   ;;  %s1050_s7 = sphi %s1078_s7, %s1346_s7   ;;  %s1046_s6 = sphi %s1076_s6, %s1345_s6  }
   0x4   : > { %p21_p0 = scmp.ge.s32.totalorder %s20_s11, 4  ;;  %p798_p1 = scmp.ge.s32.totalorder %s1062_s10, 1 }
   0x5   : > { %p108_p2 = scmp.lt.s32.totalorder %s1062_s10, 9 }
   0x6   : > { %s1350_s11 = smov (%p21_p0, %s20_s11), 0  ;;  %s1352_s12 = smov (!%p21_p0, %s23_s12), %s1058_s9 }
   0x7   : > { %p109_p3 = pnand %p798_p1, %p108_p2  ;;  %p25_p4 = scmp.ge.s32.totalorder %s1352_s12, 2 }
   0x8   : > { %s799_s13 = sshll.u32 (!%p109_p3), %s1050_s7, 5  ;;  %p137_p5 = scmp.lt.s32.totalorder (!%p109_p3), %s1046_s6, 3 }
   0x9   : > { %s1354_s12 = smov (%p25_p4, %s1352_s12), 0  ;;  %112 = sbr.rel (%p109_p3) target bundleno = 152 (0x98), region = 24 }
   0xa   : > { %p139_p6 = scmp.lt.s32.totalorder (!%p109_p3), %s799_s13, 63  ;;  %p805_p7 = scmp.ne.s32.totalorder (!%p109_p3), %s1046_s6, 0 }
   0xe   : > { %s138_s14 = scalar_select %p137_p5, %s1046_s6, 3 }
   0xf   : > { %s1356_s13 = smov (!%p139_p6, %s799_s13), 63  ;;  %159 = sbr.rel (%p805_p7) target bundleno = 53 (0x35), region = 28 }
  0x10   : > { %s800_s15 = sshll.u32 %s138_s14, 6 }
  0x11   : > { %s142_s16 = sadd.s32 %s800_s15, %s1356_s13 }
  0x12   : > { %s801_s17 = sshll.u32 %s142_s16, 2 }
  0x13   : > { %s1109_s20 = scalar_lea.vmem %s1343_s0, %s801_s17  ;;  %s1114_s23 = scalar_lea.vmem %s1344_s1, %s801_s17 }
  0x14   : > { %v1064_v0 = vmov 0.0  }
  0x15   : > { %160 = vst [vmem:[#allocation2 + $0xb0] sm:$0xff] %v1064_v0 }
  0x16   : > { %161 = vst [vmem:[#allocation2] sm:$0xff] %v1064_v0 }
  0x17   : > { %162 = vst [vmem:[#allocation2 + $0xd8] sm:$0xff] %v1064_v0 }
  0x18   : > { %163 = vst [vmem:[#allocation2 + $0x18] sm:$0xff] %v1064_v0 }
  0x19   : > { %164 = vst [vmem:[#allocation2 + $0x50] sm:$0xff] %v1064_v0 }
  0x1a   : > { %165 = vst [vmem:[#allocation2 + $0x68] sm:$0xff] %v1064_v0 }
  0x1b   : > { %166 = vst [vmem:[#allocation2 + $0x30] sm:$0xff] %v1064_v0 }
  0x1c   : > { %167 = vst [vmem:[#allocation2 + $0x48] sm:$0xff] %v1064_v0 }
  0x1d   : > { %168 = vst [vmem:[#allocation2 + $0x80] sm:$0xff] %v1064_v0 }
  0x1e   : > { %169 = vst [vmem:[#allocation2 + $0x88] sm:$0xff] %v1064_v0 }
  0x1f   : > { %170 = vst [vmem:[#allocation2 + $0xe8] sm:$0xff] %v1064_v0 }
  0x20   : > { %171 = vst [vmem:[#allocation2 + $0xb8] sm:$0xff] %v1064_v0 }
  0x21   : > { %172 = vst [vmem:[#allocation2 + $0x60] sm:$0xff] %v1064_v0 }
  0x22   : > { %173 = vst [vmem:[#allocation2 + $0xf0] sm:$0xff] %v1064_v0 }
  0x23   : > { %174 = vst [vmem:[#allocation2 + $0x8] sm:$0xff] %v1064_v0 }
  0x24   : > { %175 = vst [vmem:[#allocation2 + $0x78] sm:$0xff] %v1064_v0 }
  0x25   : > { %176 = vst [vmem:[#allocation2 + $0x38] sm:$0xff] %v1064_v0 }
  0x26   : > { %177 = vst [vmem:[#allocation2 + $0x58] sm:$0xff] %v1064_v0 }
  0x27   : > { %178 = vst [vmem:[#allocation2 + $0x40] sm:$0xff] %v1064_v0 }
  0x28   : > { %179 = vst [vmem:[#allocation2 + $0xc8] sm:$0xff] %v1064_v0 }
  0x29   : > { %180 = vst [vmem:[#allocation2 + $0xe0] sm:$0xff] %v1064_v0 }
  0x2a   : > { %181 = vst [vmem:[#allocation2 + $0x90] sm:$0xff] %v1064_v0 }
  0x2b   : > { %182 = vst [vmem:[#allocation2 + $0x70] sm:$0xff] %v1064_v0 }
  0x2c   : > { %183 = vst [vmem:[#allocation2 + $0xc0] sm:$0xff] %v1064_v0 }
  0x2d   : > { %184 = vst [vmem:[#allocation2 + $0xa8] sm:$0xff] %v1064_v0 }
  0x2e   : > { %185 = vst [vmem:[#allocation2 + $0xd0] sm:$0xff] %v1064_v0 }
  0x2f   : > { %186 = vst [vmem:[#allocation2 + $0x10] sm:$0xff] %v1064_v0 }
  0x30   : > { %187 = vst [vmem:[#allocation2 + $0x28] sm:$0xff] %v1064_v0 }
  0x31   : > { %188 = vst [vmem:[#allocation2 + $0xa0] sm:$0xff] %v1064_v0 }
  0x32   : > { %189 = vst [vmem:[#allocation2 + $0xf8] sm:$0xff] %v1064_v0 }
  0x33   : > { %190 = vst [vmem:[#allocation2 + $0x20] sm:$0xff] %v1064_v0 }
  0x34   : > { %191 = vst [vmem:[#allocation2 + $0x98] sm:$0xff] %v1064_v0 }
  0x35 PF: > { %v192_v1 = vld [vmem:[#allocation2 + $0xb0] sm:$0xff]  ;;  %v841_v2 = vld [vmem:[%s1109_s20] sm:$0xff]   ;;  %v194_v6 = vld [vmem:[#allocation2 + $0xd8] sm:$0xff]  ;;  %v1065_v43 = vmov 0.0  }
  0x36   : > { %v193_v3 = vld [vmem:[#allocation2] sm:$0xff]  ;;  %v842_v4 = vunpack.c.l.bf16 %v841_v2  ;;  %v843_v5 = vunpack.c.h.bf16 %v841_v2  ;;  %v952_v7 = vld [vmem:[%s1109_s20 + $0x8] sm:$0xff]   ;;  %v195_v8 = vld [vmem:[#allocation2 + $0x18] sm:$0xff] }
  0x37   : > { %v846_v9 = vunpack.c.l.bf16 %v952_v7  ;;  %v847_v10 = vunpack.c.h.bf16 %v952_v7  ;;  %v196_v11 = vld [vmem:[#allocation2 + $0x50] sm:$0xff]  ;;  %v197_v13 = vld [vmem:[#allocation2 + $0x68] sm:$0xff]  ;;  %v954_v19 = vld [vmem:[%s1109_s20 + $0x18] sm:$0xff]  }
  0x38   : > { %v953_v12 = vld [vmem:[%s1109_s20 + $0x10] sm:$0xff]   ;;  %v288_v14 = vsub.f32 %v842_v4, %v192_v1  ;;  %v289_v15 = vsub.f32 %v843_v5, %v193_v3  ;;  %v199_v20 = vld [vmem:[#allocation2 + $0x48] sm:$0xff]  ;;  %v854_v23 = vunpack.c.l.bf16 %v954_v19  ;;  %v855_v24 = vunpack.c.h.bf16 %v954_v19  ;;  %v955_v0 = vld [vmem:[%s1109_s20 + $0x20] sm:$0xff]  }
  0x39   : > { %v850_v16 = vunpack.c.l.bf16 %v953_v12  ;;  %v851_v17 = vunpack.c.h.bf16 %v953_v12  ;;  %v198_v18 = vld [vmem:[#allocation2 + $0x30] sm:$0xff]  ;;  %v290_v21 = vsub.f32 %v846_v9, %v194_v6  ;;  %v291_v22 = vsub.f32 %v847_v10, %v195_v8  ;;  %v956_v5 = vld [vmem:[%s1109_s20 + $0x28] sm:$0xff]   ;;  %v200_v10 = vld [vmem:[#allocation2 + $0x80] sm:$0xff] }
  0x3a   : > { %v320_v25 = vmul.f32 0.5, %v288_v14  ;;  %v321_v26 = vmul.f32 0.5, %v289_v15  ;;  %v294_v31 = vsub.f32 %v854_v23, %v198_v18  ;;  %v295_v32 = vsub.f32 %v855_v24, %v199_v20  ;;  %v957_v23 = vld [vmem:[%s1109_s20 + $0x30] sm:$0xff]  }
  0x3b   : > { %v292_v27 = vsub.f32 %v850_v16, %v196_v11  ;;  %v293_v28 = vsub.f32 %v851_v17, %v197_v13  ;;  %v322_v29 = vmul.f32 0.5, %v290_v21  ;;  %v323_v30 = vmul.f32 0.5, %v291_v22  ;;  %v201_v16 = vld [vmem:[#allocation2 + $0x88] sm:$0xff] }
  0x3c   : > { %v352_v33 = vadd.f32 %v320_v25, %v192_v1  ;;  %v353_v34 = vadd.f32 %v321_v26, %v193_v3  ;;  %v326_v39 = vmul.f32 0.5, %v294_v31  ;;  %v327_v40 = vmul.f32 0.5, %v295_v32  ;;  %v202_v17 = vld [vmem:[#allocation2 + $0xe8] sm:$0xff] }
  0x3d   : > { %v324_v35 = vmul.f32 0.5, %v292_v27  ;;  %v325_v36 = vmul.f32 0.5, %v293_v28  ;;  %v354_v37 = vadd.f32 %v322_v29, %v194_v6  ;;  %v355_v38 = vadd.f32 %v323_v30, %v195_v8  ;;  %v203_v28 = vld [vmem:[#allocation2 + $0xb8] sm:$0xff] }
  0x3e   : > { %vm384_vm0 = vcmp.ge.f32.partialorder %v352_v33, 1.0  ;;  %vm385_vm1 = vcmp.ge.f32.partialorder %v353_v34, 1.0  ;;  %v358_v8 = vadd.f32 %v326_v39, %v198_v18  ;;  %v359_v9 = vadd.f32 %v327_v40, %v199_v20 }
  0x3f   : > { %v356_v41 = vadd.f32 %v324_v35, %v196_v11  ;;  %v357_v42 = vadd.f32 %v325_v36, %v197_v13  ;;  %v1121_v44 = vsel %vm384_vm0, 1.0, %v1065_v43  ;;  %v1124_v45 = vsel %vm385_vm1, 1.0, %v1065_v43 }
  0x40   : > { %vm386_vm2 = vcmp.ge.f32.partialorder %v354_v37, 1.0  ;;  %vm387_vm3 = vcmp.ge.f32.partialorder %v355_v38, 1.0  ;;  %v480_v46 = vsub.f32 1.0, %v1121_v44  ;;  %v544_v47 = vmul.f32 0.0, %v1121_v44 }
  0x41   : > { %v481_v48 = vsub.f32 1.0, %v1124_v45  ;;  %v545_v49 = vmul.f32 0.0, %v1124_v45  ;;  %v1131_v50 = vsel %vm386_vm2, 1.0, %v1065_v43  ;;  %v1134_v51 = vsel %vm387_vm3, 1.0, %v1065_v43 }
  0x42   : > { %vm388_vm4 = vcmp.ge.f32.partialorder %v356_v41, 1.0  ;;  %vm389_vm5 = vcmp.ge.f32.partialorder %v357_v42, 1.0  ;;  %v512_v52 = vmul.f32 %v480_v46, %v352_v33  ;;  %v482_v54 = vsub.f32 1.0, %v1131_v50  ;;  %v204_v33 = vld [vmem:[#allocation2 + $0x60] sm:$0xff]  ;;  %v1164_v46 = vld [vmem:[%s1109_s20 + $0x38] sm:$0xff]  }
  0x43   : > { %v513_v53 = vmul.f32 %v481_v48, %v353_v34  ;;  %v546_v55 = vmul.f32 0.0, %v1131_v50  ;;  %v483_v56 = vsub.f32 1.0, %v1134_v51  ;;  %v547_v57 = vmul.f32 0.0, %v1134_v51  ;;  %v205_v34 = vld [vmem:[#allocation2 + $0xf0] sm:$0xff] }
  0x44   : > { %v1141_v58 = vsel %vm388_vm4, 1.0, %v1065_v43  ;;  %v1144_v59 = vsel %vm389_vm5, 1.0, %v1065_v43  ;;  %v576_v60 = vadd.f32 %v544_v47, %v512_v52  ;;  %v514_v62 = vmul.f32 %v482_v54, %v354_v37 }
  0x45   : > { %v577_v61 = vadd.f32 %v545_v49, %v513_v53  ;;  %v484_v63 = vsub.f32 1.0, %v1141_v58  ;;  %v515_v1 = vmul.f32 %v483_v56, %v355_v38  ;;  %v548_v2 = vmul.f32 0.0, %v1141_v58 }
  0x46   : > { %v485_v3 = vsub.f32 1.0, %v1144_v59  ;;  %v549_v4 = vmul.f32 0.0, %v1144_v59  ;;  %608 = vst [vmem:[#allocation2 + $0xb0] sm:$0xff] %v576_v60  ;;  %v578_v6 = vadd.f32 %v546_v55, %v514_v62  ;;  %v858_v13 = vunpack.c.l.bf16 %v955_v0 }
  0x47   : > { %v516_v7 = vmul.f32 %v484_v63, %v356_v41  ;;  %609 = vst [vmem:[#allocation2] sm:$0xff] %v577_v61  ;;  %v579_v11 = vadd.f32 %v547_v57, %v515_v1  ;;  %v859_v14 = vunpack.c.h.bf16 %v955_v0  ;;  %vm390_vm6 = vcmp.ge.f32.partialorder %v358_v8, 1.0 }
  0x48   : > { %v517_v12 = vmul.f32 %v485_v3, %v357_v42  ;;  %610 = vst [vmem:[#allocation2 + $0xd8] sm:$0xff] %v578_v6  ;;  %vm391_vm7 = vcmp.ge.f32.partialorder %v359_v9, 1.0  ;;  %v862_v19 = vunpack.c.l.bf16 %v956_v5  ;;  %v1153_v22 = vsel %vm390_vm6, 1.0, %v1065_v43 }
  0x49   : > { %v580_v15 = vadd.f32 %v548_v2, %v516_v7  ;;  %611 = vst [vmem:[#allocation2 + $0x18] sm:$0xff] %v579_v11  ;;  %v1156_v18 = vsel %vm391_vm7, 1.0, %v1065_v43  ;;  %v296_v20 = vsub.f32 %v858_v13, %v200_v10  ;;  %v486_v24 = vsub.f32 1.0, %v1153_v22 }
  0x4a   : > { %v581_v21 = vadd.f32 %v549_v4, %v517_v12  ;;  %v550_v25 = vmul.f32 0.0, %v1153_v22  ;;  %v487_v26 = vsub.f32 1.0, %v1156_v18  ;;  %v551_v27 = vmul.f32 0.0, %v1156_v18 }
  0x4b   : > { %612 = vst [vmem:[#allocation2 + $0x50] sm:$0xff] %v580_v15  ;;  %v328_v29 = vmul.f32 0.5, %v296_v20  ;;  %v297_v30 = vsub.f32 %v859_v14, %v201_v16  ;;  %v298_v31 = vsub.f32 %v862_v19, %v202_v17  ;;  %v863_v32 = vunpack.c.h.bf16 %v956_v5  ;;  %v206_v14 = vld [vmem:[#allocation2 + $0x8] sm:$0xff]  ;;  %v959_v19 = vld [vmem:[%s1109_s20 + $0x40] sm:$0xff]  }
  0x4c   : > { %613 = vst [vmem:[#allocation2 + $0x68] sm:$0xff] %v581_v21  ;;  %v518_v35 = vmul.f32 %v486_v24, %v358_v8  ;;  %v519_v36 = vmul.f32 %v487_v26, %v359_v9  ;;  %v866_v37 = vunpack.c.l.bf16 %v957_v23  ;;  %v867_v38 = vunpack.c.h.bf16 %v957_v23 }
  0x4d   : > { %v360_v39 = vadd.f32 %v328_v29, %v200_v10  ;;  %v329_v40 = vmul.f32 0.5, %v297_v30  ;;  %v330_v41 = vmul.f32 0.5, %v298_v31  ;;  %v299_v42 = vsub.f32 %v863_v32, %v203_v28  ;;  %v208_v30 = vld [vmem:[#allocation2 + $0x38] sm:$0xff]  ;;  %v960_v31 = vld [vmem:[%s1109_s20 + $0x48] sm:$0xff]  }
  0x4e   : > { %v582_v47 = vadd.f32 %v550_v25, %v518_v35  ;;  %v583_v48 = vadd.f32 %v551_v27, %v519_v36  ;;  %v300_v49 = vsub.f32 %v866_v37, %v204_v33  ;;  %v301_v52 = vsub.f32 %v867_v38, %v205_v34  ;;  %v207_v25 = vld [vmem:[#allocation2 + $0x78] sm:$0xff] }
  0x4f   : > { %vm392_vm8 = vcmp.ge.f32.partialorder %v360_v39, 1.0  ;;  %v361_v53 = vadd.f32 %v329_v40, %v201_v16  ;;  %v362_v54 = vadd.f32 %v330_v41, %v202_v17  ;;  %v331_v55 = vmul.f32 0.5, %v299_v42  ;;  %v209_v36 = vld [vmem:[#allocation2 + $0x58] sm:$0xff]  ;;  %v210_v41 = vld [vmem:[#allocation2 + $0x40] sm:$0xff]  ;;  %v1201_v42 = vld [vmem:[%s1109_s20 + $0x50] sm:$0xff]  }
  0x50   : > { %614 = vst [vmem:[#allocation2 + $0x30] sm:$0xff] %v582_v47  ;;  %v1167_v56 = vsel %vm392_vm8, 1.0, %v1065_v43  ;;  %v332_v57 = vmul.f32 0.5, %v300_v49  ;;  %v333_v60 = vmul.f32 0.5, %v301_v52  ;;  %v870_v61 = vunpack.c.l.bf16 %v1164_v46  ;;  %v211_v52 = vld [vmem:[#allocation2 + $0xc8] sm:$0xff] }
  0x51   : > { %615 = vst [vmem:[#allocation2 + $0x48] sm:$0xff] %v583_v48  ;;  %v488_v62 = vsub.f32 1.0, %v1167_v56  ;;  %v552_v63 = vmul.f32 0.0, %v1167_v56  ;;  %vm393_vm9 = vcmp.ge.f32.partialorder %v361_v53, 1.0  ;;  %vm394_vm10 = vcmp.ge.f32.partialorder %v362_v54, 1.0 }
  0x52   : > { %v1173_v0 = vsel %vm393_vm9, 1.0, %v1065_v43  ;;  %v1176_v1 = vsel %vm394_vm10, 1.0, %v1065_v43  ;;  %v363_v2 = vadd.f32 %v331_v55, %v203_v28  ;;  %v364_v3 = vadd.f32 %v332_v57, %v204_v33 }
  0x53   : > { %v520_v4 = vmul.f32 %v488_v62, %v360_v39  ;;  %v489_v5 = vsub.f32 1.0, %v1173_v0  ;;  %v553_v6 = vmul.f32 0.0, %v1173_v0  ;;  %v490_v7 = vsub.f32 1.0, %v1176_v1 }
  0x54   : > { %v554_v8 = vmul.f32 0.0, %v1176_v1  ;;  %vm395_vm11 = vcmp.ge.f32.partialorder %v363_v2, 1.0  ;;  %vm396_vm12 = vcmp.ge.f32.partialorder %v364_v3, 1.0  ;;  %v365_v9 = vadd.f32 %v333_v60, %v205_v34  ;;  %v212_v60 = vld [vmem:[#allocation2 + $0xe0] sm:$0xff] }
  0x55   : > { %v584_v10 = vadd.f32 %v552_v63, %v520_v4  ;;  %v521_v11 = vmul.f32 %v489_v5, %v361_v53  ;;  %v522_v12 = vmul.f32 %v490_v7, %v362_v54  ;;  %v1183_v13 = vsel %vm395_vm11, 1.0, %v1065_v43 }
  0x56   : > { %v491_v15 = vsub.f32 1.0, %v1183_v13  ;;  %v555_v16 = vmul.f32 0.0, %v1183_v13  ;;  %v1188_v17 = vsel %vm396_vm12, 1.0, %v1065_v43  ;;  %vm397_vm13 = vcmp.ge.f32.partialorder %v365_v9, 1.0 }
  0x57   : > { %616 = vst [vmem:[#allocation2 + $0x80] sm:$0xff] %v584_v10  ;;  %v585_v21 = vadd.f32 %v553_v6, %v521_v11  ;;  %v586_v20 = vadd.f32 %v554_v8, %v522_v12  ;;  %v492_v23 = vsub.f32 1.0, %v1188_v17  ;;  %v556_v24 = vmul.f32 0.0, %v1188_v17 }
  0x58   : > { %v523_v26 = vmul.f32 %v491_v15, %v363_v2  ;;  %v1194_v27 = vsel %vm397_vm13, 1.0, %v1065_v43  ;;  %v302_v28 = vsub.f32 %v870_v61, %v206_v14  ;;  %v871_v29 = vunpack.c.h.bf16 %v1164_v46 }
  0x59   : > { %617 = vst [vmem:[#allocation2 + $0x88] sm:$0xff] %v585_v21  ;;  %v524_v32 = vmul.f32 %v492_v23, %v364_v3  ;;  %v493_v33 = vsub.f32 1.0, %v1194_v27  ;;  %v557_v34 = vmul.f32 0.0, %v1194_v27  ;;  %v874_v35 = vunpack.c.l.bf16 %v959_v19 }
  0x5a   : > { %618 = vst [vmem:[#allocation2 + $0xe8] sm:$0xff] %v586_v20  ;;  %v587_v37 = vadd.f32 %v555_v16, %v523_v26  ;;  %v334_v38 = vmul.f32 0.5, %v302_v28  ;;  %v303_v39 = vsub.f32 %v871_v29, %v207_v25  ;;  %v875_v40 = vunpack.c.h.bf16 %v959_v19 }
  0x5b   : > { %v588_v47 = vadd.f32 %v556_v24, %v524_v32  ;;  %v525_v46 = vmul.f32 %v493_v33, %v365_v9  ;;  %v304_v48 = vsub.f32 %v874_v35, %v208_v30  ;;  %v878_v49 = vunpack.c.l.bf16 %v960_v31  ;;  %v962_v35 = vld [vmem:[%s1109_s20 + $0x58] sm:$0xff]  }
  0x5c   : > { %619 = vst [vmem:[#allocation2 + $0xb8] sm:$0xff] %v587_v37  ;;  %v366_v53 = vadd.f32 %v334_v38, %v206_v14  ;;  %v335_v54 = vmul.f32 0.5, %v303_v39  ;;  %v305_v55 = vsub.f32 %v875_v40, %v209_v36  ;;  %v879_v57 = vunpack.c.h.bf16 %v960_v31  ;;  %v213_v40 = vld [vmem:[#allocation2 + $0x90] sm:$0xff] }
  0x5d   : > { %620 = vst [vmem:[#allocation2 + $0x60] sm:$0xff] %v588_v47  ;;  %v589_v61 = vadd.f32 %v557_v34, %v525_v46  ;;  %v336_v62 = vmul.f32 0.5, %v304_v48  ;;  %v306_v63 = vsub.f32 %v878_v49, %v210_v41  ;;  %v882_v2 = vunpack.c.l.bf16 %v1201_v42  ;;  %v214_v49 = vld [vmem:[#allocation2 + $0x70] sm:$0xff] }
  0x5e   : > { %vm398_vm14 = vcmp.ge.f32.partialorder %v366_v53, 1.0  ;;  %v367_v3 = vadd.f32 %v335_v54, %v207_v25  ;;  %v337_v4 = vmul.f32 0.5, %v305_v55  ;;  %v307_v5 = vsub.f32 %v879_v57, %v211_v52  ;;  %v215_v55 = vld [vmem:[#allocation2 + $0xc0] sm:$0xff] }
  0x5f   : > { %621 = vst [vmem:[#allocation2 + $0xf0] sm:$0xff] %v589_v61  ;;  %v1205_v6 = vsel %vm398_vm14, 1.0, %v1065_v43  ;;  %v368_v7 = vadd.f32 %v336_v62, %v208_v30  ;;  %v338_v8 = vmul.f32 0.5, %v306_v63  ;;  %v308_v9 = vsub.f32 %v882_v2, %v212_v60  ;;  %v963_v61 = vld [vmem:[%s1109_s20 + $0x60] sm:$0xff]  }
  0x60   : > { %v494_v10 = vsub.f32 1.0, %v1205_v6  ;;  %v558_v11 = vmul.f32 0.0, %v1205_v6  ;;  %vm399_vm15 = vcmp.ge.f32.partialorder %v367_v3, 1.0  ;;  %v369_v12 = vadd.f32 %v337_v4, %v209_v36 }
  0x61   : > { %v1210_v14 = vsel %vm399_vm15, 1.0, %v1065_v43  ;;  %vm400_vm0 = vcmp.ge.f32.partialorder %v368_v7, 1.0  ;;  %v370_v15 = vadd.f32 %v338_v8, %v210_v41  ;;  %v339_v16 = vmul.f32 0.5, %v307_v5  ;;  %v216_v5 = vld [vmem:[#allocation2 + $0xa8] sm:$0xff] }
  0x62   : > { %v526_v19 = vmul.f32 %v494_v10, %v366_v53  ;;  %v495_v21 = vsub.f32 1.0, %v1210_v14  ;;  %v559_v20 = vmul.f32 0.0, %v1210_v14  ;;  %v1215_v23 = vsel %vm400_vm0, 1.0, %v1065_v43  ;;  %v964_v10 = vld [vmem:[%s1109_s20 + $0x68] sm:$0xff]  }
  0x63   : > { %v496_v24 = vsub.f32 1.0, %v1215_v23  ;;  %v560_v25 = vmul.f32 0.0, %v1215_v23  ;;  %vm401_vm1 = vcmp.ge.f32.partialorder %v369_v12, 1.0  ;;  %vm402_vm2 = vcmp.ge.f32.partialorder %v370_v15, 1.0 }
  0x64   : > { %v590_v26 = vadd.f32 %v558_v11, %v526_v19  ;;  %v527_v28 = vmul.f32 %v495_v21, %v367_v3  ;;  %v1220_v29 = vsel %vm401_vm1, 1.0, %v1065_v43  ;;  %v1223_v30 = vsel %vm402_vm2, 1.0, %v1065_v43  ;;  %v217_v19 = vld [vmem:[#allocation2 + $0xd0] sm:$0xff] }
  0x65   : > { %v528_v31 = vmul.f32 %v496_v24, %v368_v7  ;;  %v497_v32 = vsub.f32 1.0, %v1220_v29  ;;  %v561_v33 = vmul.f32 0.0, %v1220_v29  ;;  %v498_v34 = vsub.f32 1.0, %v1223_v30 }
  0x66   : > { %622 = vst [vmem:[#allocation2 + $0x8] sm:$0xff] %v590_v26  ;;  %v591_v36 = vadd.f32 %v559_v20, %v527_v28  ;;  %v562_v37 = vmul.f32 0.0, %v1223_v30  ;;  %v371_v38 = vadd.f32 %v339_v16, %v211_v52  ;;  %v340_v39 = vmul.f32 0.5, %v308_v9  ;;  %v218_v26 = vld [vmem:[#allocation2 + $0x10] sm:$0xff] }
  0x67   : > { %v592_v41 = vadd.f32 %v560_v25, %v528_v31  ;;  %v529_v47 = vmul.f32 %v497_v32, %v369_v12  ;;  %v530_v46 = vmul.f32 %v498_v34, %v370_v15  ;;  %v883_v48 = vunpack.c.h.bf16 %v1201_v42 }
  0x68   : > { %623 = vst [vmem:[#allocation2 + $0x78] sm:$0xff] %v591_v36  ;;  %vm403_vm3 = vcmp.ge.f32.partialorder %v371_v38, 1.0  ;;  %v372_v53 = vadd.f32 %v340_v39, %v212_v60  ;;  %v886_v54 = vunpack.c.l.bf16 %v962_v35  ;;  %v887_v57 = vunpack.c.h.bf16 %v962_v35 }
  0x69   : > { %624 = vst [vmem:[#allocation2 + $0x38] sm:$0xff] %v592_v41  ;;  %v593_v62 = vadd.f32 %v561_v33, %v529_v47  ;;  %v594_v63 = vadd.f32 %v562_v37, %v530_v46  ;;  %v1233_v52 = vsel %vm403_vm3, 1.0, %v1065_v43  ;;  %v309_v2 = vsub.f32 %v883_v48, %v213_v40 }
  0x6a   : > { %v499_v3 = vsub.f32 1.0, %v1233_v52  ;;  %v563_v42 = vmul.f32 0.0, %v1233_v52  ;;  %vm404_vm4 = vcmp.ge.f32.partialorder %v372_v53, 1.0  ;;  %v310_v4 = vsub.f32 %v886_v54, %v214_v49 }
  0x6b   : > { %625 = vst [vmem:[#allocation2 + $0x58] sm:$0xff] %v593_v62  ;;  %v1238_v60 = vsel %vm404_vm4, 1.0, %v1065_v43  ;;  %v341_v7 = vmul.f32 0.5, %v309_v2  ;;  %v311_v8 = vsub.f32 %v887_v57, %v215_v55  ;;  %v890_v9 = vunpack.c.l.bf16 %v963_v61  ;;  %v219_v2 = vld [vmem:[#allocation2 + $0x28] sm:$0xff] }
  0x6c   : > { %626 = vst [vmem:[#allocation2 + $0x40] sm:$0xff] %v594_v63  ;;  %v531_v11 = vmul.f32 %v499_v3, %v371_v38  ;;  %v500_v12 = vsub.f32 1.0, %v1238_v60  ;;  %v564_v15 = vmul.f32 0.0, %v1238_v60  ;;  %v342_v16 = vmul.f32 0.5, %v310_v4 }
  0x6d   : > { %v373_v21 = vadd.f32 %v341_v7, %v213_v40  ;;  %v343_v20 = vmul.f32 0.5, %v311_v8  ;;  %v312_v24 = vsub.f32 %v890_v9, %v216_v5  ;;  %v891_v25 = vunpack.c.h.bf16 %v963_v61 }
  0x6e   : > { %v595_v28 = vadd.f32 %v563_v42, %v531_v11  ;;  %v532_v31 = vmul.f32 %v500_v12, %v372_v53  ;;  %v374_v32 = vadd.f32 %v342_v16, %v214_v49  ;;  %v894_v33 = vunpack.c.l.bf16 %v964_v10  ;;  %v965_v42 = vld [vmem:[%s1109_s20 + $0x70] sm:$0xff]  }
  0x6f   : > { %vm405_vm5 = vcmp.ge.f32.partialorder %v373_v21, 1.0  ;;  %v375_v34 = vadd.f32 %v343_v20, %v215_v55  ;;  %v344_v35 = vmul.f32 0.5, %v312_v24  ;;  %v313_v36 = vsub.f32 %v891_v25, %v217_v19  ;;  %v220_v20 = vld [vmem:[#allocation2 + $0xa0] sm:$0xff] }
  0x70   : > { %627 = vst [vmem:[#allocation2 + $0xc8] sm:$0xff] %v595_v28  ;;  %v596_v37 = vadd.f32 %v564_v15, %v532_v31  ;;  %v1244_v38 = vsel %vm405_vm5, 1.0, %v1065_v43  ;;  %vm406_vm6 = vcmp.ge.f32.partialorder %v374_v32, 1.0  ;;  %v314_v39 = vsub.f32 %v894_v33, %v218_v26  ;;  %v966_v31 = vld [vmem:[%s1109_s20 + $0x78] sm:$0xff]  }
  0x71   : > { %v501_v40 = vsub.f32 1.0, %v1244_v38  ;;  %v565_v41 = vmul.f32 0.0, %v1244_v38  ;;  %v1249_v47 = vsel %vm406_vm6, 1.0, %v1065_v43  ;;  %vm407_vm7 = vcmp.ge.f32.partialorder %v375_v34, 1.0 }
  0x72   : > { %628 = vst [vmem:[#allocation2 + $0xe0] sm:$0xff] %v596_v37  ;;  %v502_v46 = vsub.f32 1.0, %v1249_v47  ;;  %v566_v48 = vmul.f32 0.0, %v1249_v47  ;;  %v1254_v49 = vsel %vm407_vm7, 1.0, %v1065_v43  ;;  %v376_v53 = vadd.f32 %v344_v35, %v216_v5 }
  0x73   : > { %v533_v54 = vmul.f32 %v501_v40, %v373_v21  ;;  %v503_v55 = vsub.f32 1.0, %v1254_v49  ;;  %v567_v57 = vmul.f32 0.0, %v1254_v49  ;;  %v345_v61 = vmul.f32 0.5, %v313_v36  ;;  %v222_v40 = vld [vmem:[#allocation2 + $0x20] sm:$0xff] }
  0x74   : > { %v534_v62 = vmul.f32 %v502_v46, %v374_v32  ;;  %vm408_vm8 = vcmp.ge.f32.partialorder %v376_v53, 1.0  ;;  %v346_v63 = vmul.f32 0.5, %v314_v39  ;;  %v895_v3 = vunpack.c.h.bf16 %v964_v10 }
  0x75   : > { %v597_v4 = vadd.f32 %v565_v41, %v533_v54  ;;  %v535_v7 = vmul.f32 %v503_v55, %v375_v34  ;;  %v1260_v8 = vsel %vm408_vm8, 1.0, %v1065_v43  ;;  %v377_v9 = vadd.f32 %v345_v61, %v217_v19  ;;  %v221_v19 = vld [vmem:[#allocation2 + $0xf8] sm:$0xff] }
  0x76   : > { %v598_v11 = vadd.f32 %v566_v48, %v534_v62  ;;  %v504_v5 = vsub.f32 1.0, %v1260_v8  ;;  %v568_v12 = vmul.f32 0.0, %v1260_v8  ;;  %v378_v15 = vadd.f32 %v346_v63, %v218_v26  ;;  %v223_v54 = vld [vmem:[#allocation2 + $0x98] sm:$0xff] }
  0x77   : > { %629 = vst [vmem:[#allocation2 + $0x90] sm:$0xff] %v597_v4  ;;  %v599_v16 = vadd.f32 %v567_v57, %v535_v7  ;;  %vm409_vm9 = vcmp.ge.f32.partialorder %v377_v9, 1.0  ;;  %v315_v21 = vsub.f32 %v895_v3, %v219_v2  ;;  %v898_v10 = vunpack.c.l.bf16 %v965_v42 }
  0x78   : > { %630 = vst [vmem:[#allocation2 + $0x70] sm:$0xff] %v598_v11  ;;  %v536_v24 = vmul.f32 %v504_v5, %v376_v53  ;;  %v1265_v25 = vsel %vm409_vm9, 1.0, %v1065_v43  ;;  %vm410_vm10 = vcmp.ge.f32.partialorder %v378_v15, 1.0  ;;  %v899_v28 = vunpack.c.h.bf16 %v965_v42 }
  0x79   : > { %631 = vst [vmem:[#allocation2 + $0xc0] sm:$0xff] %v599_v16  ;;  %v505_v32 = vsub.f32 1.0, %v1265_v25  ;;  %v569_v26 = vmul.f32 0.0, %v1265_v25  ;;  %v1271_v33 = vsel %vm410_vm10, 1.0, %v1065_v43  ;;  %v347_v34 = vmul.f32 0.5, %v315_v21 }
  0x7a   : > { %v600_v35 = vadd.f32 %v568_v12, %v536_v24  ;;  %v506_v36 = vsub.f32 1.0, %v1271_v33  ;;  %v570_v37 = vmul.f32 0.0, %v1271_v33  ;;  %v316_v39 = vsub.f32 %v898_v10, %v220_v20 }
  0x7b   : > { %v537_v41 = vmul.f32 %v505_v32, %v377_v9  ;;  %v379_v46 = vadd.f32 %v347_v34, %v219_v2  ;;  %v317_v48 = vsub.f32 %v899_v28, %v221_v19  ;;  %v902_v53 = vunpack.c.l.bf16 %v966_v31 }
  0x7c   : > { %632 = vst [vmem:[#allocation2 + $0xa8] sm:$0xff] %v600_v35  ;;  %v538_v55 = vmul.f32 %v506_v36, %v378_v15  ;;  %v348_v57 = vmul.f32 0.5, %v316_v39  ;;  %v903_v61 = vunpack.c.h.bf16 %v966_v31  ;;  %v905_v62 = vpack.c.bf16 %v1124_v45, %v1121_v44 }
  0x7d   : > { %v601_v63 = vadd.f32 %v569_v26, %v537_v41  ;;  %vm411_vm11 = vcmp.ge.f32.partialorder %v379_v46, 1.0  ;;  %v349_v3 = vmul.f32 0.5, %v317_v48  ;;  %v318_v42 = vsub.f32 %v902_v53, %v222_v40 }
  0x7e   : > { %v602_v4 = vadd.f32 %v570_v37, %v538_v55  ;;  %v1278_v7 = vsel %vm411_vm11, 1.0, %v1065_v43  ;;  %v380_v2 = vadd.f32 %v348_v57, %v220_v20  ;;  %v319_v9 = vsub.f32 %v903_v61, %v223_v54  ;;  %906 = vst [vmem:[%s1114_s23] sm:$0xff] %v905_v62  }
  0x7f   : > { %633 = vst [vmem:[#allocation2 + $0xd0] sm:$0xff] %v601_v63  ;;  %v507_v11 = vsub.f32 1.0, %v1278_v7  ;;  %v571_v5 = vmul.f32 0.0, %v1278_v7  ;;  %v381_v12 = vadd.f32 %v349_v3, %v221_v19  ;;  %v350_v15 = vmul.f32 0.5, %v318_v42 }
  0x80   : > { %634 = vst [vmem:[#allocation2 + $0x10] sm:$0xff] %v602_v4  ;;  %vm412_vm12 = vcmp.ge.f32.partialorder %v380_v2, 1.0  ;;  %v351_v44 = vmul.f32 0.5, %v319_v9  ;;  %v908_v45 = vpack.c.bf16 %v1134_v51, %v1131_v50  ;;  %v911_v16 = vpack.c.bf16 %v1144_v59, %v1141_v58 }
  0x81   : > { %v539_v21 = vmul.f32 %v507_v11, %v379_v46  ;;  %v834_v20 = vsel %vm412_vm12, 1.0, %v1065_v43  ;;  %vm413_vm13 = vcmp.ge.f32.partialorder %v381_v12, 1.0  ;;  %v382_v10 = vadd.f32 %v350_v15, %v222_v40 }
  0x82   : > { %v508_v24 = vsub.f32 1.0, %v834_v20  ;;  %v572_v28 = vmul.f32 0.0, %v834_v20  ;;  %v835_v19 = vsel %vm413_vm13, 1.0, %v1065_v43  ;;  %v383_v31 = vadd.f32 %v351_v44, %v223_v54  ;;  %967 = vst [vmem:[%s1114_s23 + $0x8] sm:$0xff] %v908_v45  }
  0x83   : > { %v603_v32 = vadd.f32 %v571_v5, %v539_v21  ;;  %v509_v26 = vsub.f32 1.0, %v835_v19  ;;  %v573_v34 = vmul.f32 0.0, %v835_v19  ;;  %vm414_vm14 = vcmp.ge.f32.partialorder %v382_v10, 1.0  ;;  %968 = vst [vmem:[%s1114_s23 + $0x10] sm:$0xff] %v911_v16  }
  0x84   : > { %v540_v50 = vmul.f32 %v508_v24, %v380_v2  ;;  %v836_v51 = vsel %vm414_vm14, 1.0, %v1065_v43  ;;  %vm415_vm15 = vcmp.ge.f32.partialorder %v383_v31, 1.0  ;;  %v914_v58 = vpack.c.bf16 %v1156_v18, %v1153_v22 }
  0x85   : > { %635 = vst [vmem:[#allocation2 + $0x28] sm:$0xff] %v603_v32  ;;  %v541_v59 = vmul.f32 %v509_v26, %v381_v12  ;;  %v510_v35 = vsub.f32 1.0, %v836_v51  ;;  %v574_v36 = vmul.f32 0.0, %v836_v51  ;;  %v837_v37 = vsel %vm415_vm15, 1.0, %v1065_v43 }
  0x86   : > { %v604_v39 = vadd.f32 %v572_v28, %v540_v50  ;;  %v511_v40 = vsub.f32 1.0, %v837_v37  ;;  %v575_v41 = vmul.f32 0.0, %v837_v37  ;;  %969 = vst [vmem:[%s1114_s23 + $0x18] sm:$0xff] %v914_v58   ;;  %v917_v46 = vpack.c.bf16 %v1173_v0, %v1167_v56 }
  0x87   : > { %v605_v48 = vadd.f32 %v573_v34, %v541_v59  ;;  %v542_v53 = vmul.f32 %v510_v35, %v382_v10  ;;  %v920_v43 = vpack.c.bf16 %v1183_v13, %v1176_v1  ;;  %v923_v55 = vpack.c.bf16 %v1194_v27, %v1188_v17 }
  0x88   : > { %636 = vst [vmem:[#allocation2 + $0xa0] sm:$0xff] %v604_v39  ;;  %v543_v22 = vmul.f32 %v511_v40, %v383_v31  ;;  %v926_v56 = vpack.c.bf16 %v1210_v14, %v1205_v6  ;;  %v929_v0 = vpack.c.bf16 %v1220_v29, %v1215_v23  ;;  %v932_v1 = vpack.c.bf16 %v1233_v52, %v1223_v30 }
  0x89   : > { %637 = vst [vmem:[#allocation2 + $0xf8] sm:$0xff] %v605_v48  ;;  %v606_v18 = vadd.f32 %v574_v36, %v542_v53  ;;  %v935_v13 = vpack.c.bf16 %v1244_v38, %v1238_v60  ;;  %v938_v17 = vpack.c.bf16 %v1254_v49, %v1249_v47  ;;  %v941_v27 = vpack.c.bf16 %v1265_v25, %v1260_v8 }
  0x8a   : > { %v607_v54 = vadd.f32 %v575_v41, %v543_v22  ;;  %970 = vst [vmem:[%s1114_s23 + $0x20] sm:$0xff] %v917_v46   ;;  %v944_v6 = vpack.c.bf16 %v1278_v7, %v1271_v33  ;;  %v947_v14 = vpack.c.bf16 %v835_v19, %v834_v20  ;;  %v950_v23 = vpack.c.bf16 %v837_v37, %v836_v51 }
  0x8b   : > { %638 = vst [vmem:[#allocation2 + $0x20] sm:$0xff] %v606_v18 }
  0x8c   : > { %639 = vst [vmem:[#allocation2 + $0x98] sm:$0xff] %v607_v54 }
  0x8d   : > { %971 = vst [vmem:[%s1114_s23 + $0x28] sm:$0xff] %v920_v43  }
  0x8e   : > { %972 = vst [vmem:[%s1114_s23 + $0x30] sm:$0xff] %v923_v55  }
  0x8f   : > { %973 = vst [vmem:[%s1114_s23 + $0x38] sm:$0xff] %v926_v56  }
  0x90   : > { %974 = vst [vmem:[%s1114_s23 + $0x40] sm:$0xff] %v929_v0  }
  0x91   : > { %975 = vst [vmem:[%s1114_s23 + $0x48] sm:$0xff] %v932_v1  }
  0x92   : > { %976 = vst [vmem:[%s1114_s23 + $0x50] sm:$0xff] %v935_v13  }
  0x93   : > { %977 = vst [vmem:[%s1114_s23 + $0x58] sm:$0xff] %v938_v17  }
  0x94   : > { %978 = vst [vmem:[%s1114_s23 + $0x60] sm:$0xff] %v941_v27  }
  0x95   : > { %979 = vst [vmem:[%s1114_s23 + $0x68] sm:$0xff] %v944_v6  }
  0x96   : > { %980 = vst [vmem:[%s1114_s23 + $0x70] sm:$0xff] %v947_v14  }
  0x97   : > { %981 = vst [vmem:[%s1114_s23 + $0x78] sm:$0xff] %v950_v23  }
  0x98 PF: > { %s11_s10 = sadd.s32 1, %s1062_s10   ;;  %s1345_s6 = smov %s1054_s8 }
  0x99   : > { %p8_p8 = scmp.ge.s32.totalorder %s11_s10, 10   ;;  %s1346_s7 = smov %s1058_s9 }
  0x9a   : > { %s1347_s8 = smov %s1350_s11  ;;  %s1348_s9 = smov %s1354_s12 }
  0x9b   :  { %10 = sbr.rel (!%p8_p8) target bundleno = 3 (0x3), region = 58 }

// kernel: multi_step_cifar10dvs_forward.16
= control target key start
LH: loop header
LB: loop body
LE: loop exit
PB: predicated region body
PF: predicated region fallthrough
CT: control target
= control target key end

     0   :  { %s1924_s12 = smov 0   ;;  %s1926_s13 = smov 0   ;;  %s2148_s0 = inlined_call_operand.vmem [shape: bf16[8192,72], index: 0, kind: input, shape index: {}]   ;;  %s2149_s1 = inlined_call_operand.vmem [shape: bf16[72,128], index: 1, kind: input, shape index: {}]   ;;  %s2150_s2 = inlined_call_operand.vmem [shape: f32[1,128], index: 2, kind: input, shape index: {}]   ;;  %s2151_s3 = inlined_call_operand.vmem [shape: bf16[8192,128], index: 3, kind: output, shape index: {}]  }
   0x1   :  { %s1928_s14 = smov 0  }
   0x2 LB: > { %s32_s15 = sadd.s32 1, %s1898_s13  ;;  %p1430_p0 = scmp.ge.s32.totalorder %s1902_s14, 1  ;;  %s1902_s14 = sphi %s1928_s14, %s13_s14   ;;  %s1898_s13 = sphi %s1926_s13, %s2153_s13   ;;  %s1894_s12 = sphi %s1924_s12, %s2152_s12  }
   0x3   : > { %p34_p1 = scmp.ge.s32.totalorder %s32_s15, 16  ;;  %p188_p2 = scmp.lt.s32.totalorder %s1902_s14, 17 }
   0x5   : > { %s2155_s15 = smov (%p34_p1, %s32_s15), 0  ;;  %p189_p3 = pnand %p1430_p0, %p188_p2 }
   0x6   : > { %s1431_s18 = sshll.u32 (!%p189_p3), %s1894_s12, 6 }
   0x7   : > { %192 = sbr.rel (%p189_p3) target bundleno = 296 (0x128), region = 32  ;;  %p230_p4 = scmp.lt.s32.totalorder (!%p189_p3), %s1431_s18, 1023 }
   0xc   : > { %v464_v0 = vld [vmem:[%s2149_s1 + $0x20] sm:$0xf]  ;;  %vm749_vm0 = vcmask 1043456   ;;  %v1648_v4 = vld [vmem:[%s2149_s1 + $0x18] sm:$0xff]  ;;  %v1647_v5 = vld [vmem:[%s2149_s1 + $0x10] sm:$0xff]  ;;  %s2157_s18 = smov (!%p230_p4, %s1431_s18), 1023 }
   0xd   : > { %v642_v1 = vunpack.c.l.b16 %v464_v0  ;;  %v1646_v6 = vld [vmem:[%s2149_s1 + $0x8] sm:$0xff]  ;;  %s1432_s25 = sshll.u32 %s2157_s18, 2  ;;  %v1645_v7 = vld [vmem:[%s2149_s1] sm:$0xff]  ;;  %vm652_vm1 = vcmask 588800  }
   0xe   : > { %s1965_s30 = scalar_lea.vmem %s2148_s0, %s1432_s25  ;;  %v2034_v42 = vld [vmem:[%s2150_s2] ss:$0 sm:$0xff]  ;;  %s2045_s8 = scalar_lea.vmem %s2151_s3, %s1432_s25 }
   0xf   : > { %v647_v2 = vpack.c.b16 %v642_v1, %v642_v1  ;;  %v1613_v8 = vld [vmem:[%s1965_s30] sm:$0xff]  ;;  %v1614_v12 = vld [vmem:[%s1965_s30 + $0x8] sm:$0xff]  ;;  %v1615_v16 = vld [vmem:[%s1965_s30 + $0x10] sm:$0xff] }
  0x10   : > { %v1621_v9 = vld [vmem:[%s1965_s30 + $0x40] sm:$0xff]  ;;  %v1622_v13 = vld [vmem:[%s1965_s30 + $0x48] sm:$0xff]  ;;  %v1623_v17 = vld [vmem:[%s1965_s30 + $0x50] sm:$0xff] }
  0x11   : > { %v751_v3 = vsel %vm749_vm0, %v647_v2, 0  ;;  %v1629_v10 = vld [vmem:[%s1965_s30 + $0x80] sm:$0xff]  ;;  %v1630_v14 = vld [vmem:[%s1965_s30 + $0x88] sm:$0xff]  ;;  %v1631_v18 = vld [vmem:[%s1965_s30 + $0x90] sm:$0xff] }
  0x12   : > { %756 = vmatpush.bf16.msra.mxu0 %v751_v3  ;;  %1840 = vmatpush.bf16.msra.mxu1 %v751_v3  ;;  %v1637_v11 = vld [vmem:[%s1965_s30 + $0xc0] sm:$0xff]  ;;  %v1638_v15 = vld [vmem:[%s1965_s30 + $0xc8] sm:$0xff]  ;;  %v1639_v19 = vld [vmem:[%s1965_s30 + $0xd0] sm:$0xff] }
  0x13   : > { %1841 = vmatpush.bf16.msra.mxu2 %v751_v3  ;;  %1842 = vmatpush.bf16.msra.mxu3 %v751_v3  ;;  %v1616_v20 = vld [vmem:[%s1965_s30 + $0x18] sm:$0xff]  ;;  %v1617_v24 = vld [vmem:[%s1965_s30 + $0x20] sm:$0xff]  ;;  %v1618_v28 = vld [vmem:[%s1965_s30 + $0x28] sm:$0xff] }
  0x14   : > { %v1624_v21 = vld [vmem:[%s1965_s30 + $0x58] sm:$0xff]  ;;  %v1625_v25 = vld [vmem:[%s1965_s30 + $0x60] sm:$0xff]  ;;  %v1626_v29 = vld [vmem:[%s1965_s30 + $0x68] sm:$0xff] }
  0x15   : > { %v1632_v22 = vld [vmem:[%s1965_s30 + $0x98] sm:$0xff]  ;;  %v1633_v26 = vld [vmem:[%s1965_s30 + $0xa0] sm:$0xff]  ;;  %v1634_v30 = vld [vmem:[%s1965_s30 + $0xa8] sm:$0xff] }
  0x16   : > { %757 = vmatpush.bf16.msra.mxu0 %v1648_v4  ;;  %1843 = vmatpush.bf16.msra.mxu1 %v1648_v4  ;;  %v1640_v23 = vld [vmem:[%s1965_s30 + $0xd8] sm:$0xff]  ;;  %v1641_v27 = vld [vmem:[%s1965_s30 + $0xe0] sm:$0xff]  ;;  %v1642_v31 = vld [vmem:[%s1965_s30 + $0xe8] sm:$0xff] }
  0x17   : > { %1844 = vmatpush.bf16.msra.mxu2 %v1648_v4  ;;  %1845 = vmatpush.bf16.msra.mxu3 %v1648_v4  ;;  %v1619_v32 = vld [vmem:[%s1965_s30 + $0x30] sm:$0xff]  ;;  %v1620_v36 = vld [vmem:[%s1965_s30 + $0x38] sm:$0xff] }
  0x18   : > { %v1627_v33 = vld [vmem:[%s1965_s30 + $0x70] sm:$0xff]  ;;  %v1628_v37 = vld [vmem:[%s1965_s30 + $0x78] sm:$0xff] }
  0x19   : > { %v1635_v34 = vld [vmem:[%s1965_s30 + $0xb0] sm:$0xff]  ;;  %v1636_v38 = vld [vmem:[%s1965_s30 + $0xb8] sm:$0xff] }
  0x1a   : > { %758 = vmatpush.bf16.msra.mxu0 %v1647_v5  ;;  %1846 = vmatpush.bf16.msra.mxu1 %v1647_v5  ;;  %v1643_v35 = vld [vmem:[%s1965_s30 + $0xf0] sm:$0xff]  ;;  %v1644_v39 = vld [vmem:[%s1965_s30 + $0xf8] sm:$0xff] }
  0x1b   : > { %1847 = vmatpush.bf16.msra.mxu2 %v1647_v5  ;;  %1848 = vmatpush.bf16.msra.mxu3 %v1647_v5 }
  0x1e   : > { %759 = vmatpush.bf16.msra.mxu0 %v1646_v6  ;;  %1849 = vmatpush.bf16.msra.mxu1 %v1646_v6 }
  0x1f   : > { %1850 = vmatpush.bf16.msra.mxu2 %v1646_v6  ;;  %1851 = vmatpush.bf16.msra.mxu3 %v1646_v6 }
  0x22   : > { %760 = vmatpush.bf16.msra.mxu0 %v1645_v7  ;;  %1852 = vmatpush.bf16.msra.mxu1 %v1645_v7 }
  0x23   : > { %1853 = vmatpush.bf16.msra.mxu2 %v1645_v7  ;;  %1854 = vmatpush.bf16.msra.mxu3 %v1645_v7 }
  0x25   : > { %1579 = vmatmul.msk.bf16.vlgmr.msra.gmra.mxu0 %vm652_vm1, %v1613_v8  ;;  %1587 = vmatmul.msk.bf16.vlgmr.msra.gmra.mxu1 %vm652_vm1, %v1621_v9 }
  0x26   : > { %1595 = vmatmul.msk.bf16.vlgmr.msra.gmra.mxu2 %vm652_vm1, %v1629_v10  ;;  %1603 = vmatmul.msk.bf16.vlgmr.msra.gmra.mxu3 %vm652_vm1, %v1637_v11 }
  0x35   : > { %1580 = vmatmul.msk.bf16.gmra.mxu0 %vm652_vm1, %v1614_v12  ;;  %1588 = vmatmul.msk.bf16.gmra.mxu1 %vm652_vm1, %v1622_v13 }
  0x36   : > { %1596 = vmatmul.msk.bf16.gmra.mxu2 %vm652_vm1, %v1630_v14  ;;  %1604 = vmatmul.msk.bf16.gmra.mxu3 %vm652_vm1, %v1638_v15 }
  0x45   : > { %1581 = vmatmul.msk.bf16.gmra.mxu0 %vm652_vm1, %v1615_v16  ;;  %1589 = vmatmul.msk.bf16.gmra.mxu1 %vm652_vm1, %v1623_v17 }
  0x46   : > { %1597 = vmatmul.msk.bf16.gmra.mxu2 %vm652_vm1, %v1631_v18  ;;  %1605 = vmatmul.msk.bf16.gmra.mxu3 %vm652_vm1, %v1639_v19 }
  0x55   : > { %1582 = vmatmul.msk.bf16.gmra.mxu0 %vm652_vm1, %v1616_v20  ;;  %1590 = vmatmul.msk.bf16.gmra.mxu1 %vm652_vm1, %v1624_v21 }
  0x56   : > { %1598 = vmatmul.msk.bf16.gmra.mxu2 %vm652_vm1, %v1632_v22  ;;  %1606 = vmatmul.msk.bf16.gmra.mxu3 %vm652_vm1, %v1640_v23 }
  0x65   : > { %1583 = vmatmul.msk.bf16.gmra.mxu0 %vm652_vm1, %v1617_v24  ;;  %1591 = vmatmul.msk.bf16.gmra.mxu1 %vm652_vm1, %v1625_v25 }
  0x66   : > { %1599 = vmatmul.msk.bf16.gmra.mxu2 %vm652_vm1, %v1633_v26  ;;  %1607 = vmatmul.msk.bf16.gmra.mxu3 %vm652_vm1, %v1641_v27 }
  0x75   : > { %1584 = vmatmul.msk.bf16.gmra.mxu0 %vm652_vm1, %v1618_v28  ;;  %1592 = vmatmul.msk.bf16.gmra.mxu1 %vm652_vm1, %v1626_v29 }
  0x76   : > { %1600 = vmatmul.msk.bf16.gmra.mxu2 %vm652_vm1, %v1634_v30  ;;  %1608 = vmatmul.msk.bf16.gmra.mxu3 %vm652_vm1, %v1642_v31 }
  0x85   : > { %1585 = vmatmul.msk.bf16.gmra.mxu0 %vm652_vm1, %v1619_v32  ;;  %1593 = vmatmul.msk.bf16.gmra.mxu1 %vm652_vm1, %v1627_v33 }
  0x86   : > { %1601 = vmatmul.msk.bf16.gmra.mxu2 %vm652_vm1, %v1635_v34  ;;  %1609 = vmatmul.msk.bf16.gmra.mxu3 %vm652_vm1, %v1643_v35 }
  0x95   : > { %1586 = vmatmul.msk.bf16.gmra.mxu0 %vm652_vm1, %v1620_v36  ;;  %1594 = vmatmul.msk.bf16.gmra.mxu1 %vm652_vm1, %v1628_v37 }
  0x96   : > { %1602 = vmatmul.msk.bf16.gmra.mxu2 %vm652_vm1, %v1636_v38  ;;  %1610 = vmatmul.msk.bf16.gmra.mxu3 %vm652_vm1, %v1644_v39 }
  0xa2   : > { %v762_v40 = vpop.f32.mrf.mxu0  ;;  %v802_v41 = vpop.f32.mrf.mxu1 }
  0xa3   : > { %v1121_v47 = vadd.f32 %v2034_v42, %v762_v40  ;;  %v1137_v48 = vadd.f32 %v2034_v42, %v802_v41 }
  0xa9   : > { %v842_v43 = vpop.f32.mrf.mxu2  ;;  %v882_v44 = vpop.f32.mrf.mxu3 }
  0xaa   : > { %v764_v45 = vpop.f32.mrf.mxu0  ;;  %v804_v46 = vpop.f32.mrf.mxu1  ;;  %v1153_v55 = vadd.f32 %v2034_v42, %v842_v43  ;;  %v1169_v56 = vadd.f32 %v2034_v42, %v882_v44 }
  0xab   : > { %v1122_v49 = vadd.f32 %v2034_v42, %v764_v45  ;;  %v1138_v50 = vadd.f32 %v2034_v42, %v804_v46 }
  0xad   : > { %v1652_v51 = vpack.c.bf16 %v1122_v49, %v1121_v47  ;;  %v1692_v52 = vpack.c.bf16 %v1138_v50, %v1137_v48 }
  0xaf   : > { %1653 = vst [vmem:[%s2045_s8] sm:$0xff] %v1652_v51  }
  0xb0   : > { %1816 = vst [vmem:[%s2045_s8 + $0x40] sm:$0xff] %v1692_v52  }
  0xb1   : > { %v844_v53 = vpop.f32.mrf.mxu2  ;;  %v884_v54 = vpop.f32.mrf.mxu3 }
  0xb2   : > { %v1154_v57 = vadd.f32 %v2034_v42, %v844_v53  ;;  %v1170_v58 = vadd.f32 %v2034_v42, %v884_v54  ;;  %v767_v59 = vpop.f32.mrf.mxu0  ;;  %v807_v60 = vpop.f32.mrf.mxu1 }
  0xb3   : > { %v1123_v3 = vadd.f32 %v2034_v42, %v767_v59  ;;  %v1139_v4 = vadd.f32 %v2034_v42, %v807_v60 }
  0xb4   : > { %v1732_v61 = vpack.c.bf16 %v1154_v57, %v1153_v55  ;;  %v1772_v62 = vpack.c.bf16 %v1170_v58, %v1169_v56 }
  0xb6   : > { %1824 = vst [vmem:[%s2045_s8 + $0x80] sm:$0xff] %v1732_v61  }
  0xb7   : > { %1832 = vst [vmem:[%s2045_s8 + $0xc0] sm:$0xff] %v1772_v62  }
  0xb9   : > { %v847_v63 = vpop.f32.mrf.mxu2  ;;  %v887_v0 = vpop.f32.mrf.mxu3 }
  0xba   : > { %v769_v1 = vpop.f32.mrf.mxu0  ;;  %v809_v2 = vpop.f32.mrf.mxu1  ;;  %v1155_v11 = vadd.f32 %v2034_v42, %v847_v63  ;;  %v1171_v12 = vadd.f32 %v2034_v42, %v887_v0 }
  0xbb   : > { %v1124_v5 = vadd.f32 %v2034_v42, %v769_v1  ;;  %v1140_v6 = vadd.f32 %v2034_v42, %v809_v2 }
  0xbd   : > { %v1657_v7 = vpack.c.bf16 %v1124_v5, %v1123_v3  ;;  %v1697_v8 = vpack.c.bf16 %v1140_v6, %v1139_v4 }
  0xbf   : > { %1809 = vst [vmem:[%s2045_s8 + $0x8] sm:$0xff] %v1657_v7  }
  0xc0   : > { %1817 = vst [vmem:[%s2045_s8 + $0x48] sm:$0xff] %v1697_v8  }
  0xc1   : > { %v849_v9 = vpop.f32.mrf.mxu2  ;;  %v889_v10 = vpop.f32.mrf.mxu3 }
  0xc2   : > { %v1156_v13 = vadd.f32 %v2034_v42, %v849_v9  ;;  %v1172_v14 = vadd.f32 %v2034_v42, %v889_v10  ;;  %v772_v15 = vpop.f32.mrf.mxu0  ;;  %v812_v16 = vpop.f32.mrf.mxu1 }
  0xc3   : > { %v1125_v23 = vadd.f32 %v2034_v42, %v772_v15  ;;  %v1141_v24 = vadd.f32 %v2034_v42, %v812_v16 }
  0xc4   : > { %v1737_v17 = vpack.c.bf16 %v1156_v13, %v1155_v11  ;;  %v1777_v18 = vpack.c.bf16 %v1172_v14, %v1171_v12 }
  0xc6   : > { %1825 = vst [vmem:[%s2045_s8 + $0x88] sm:$0xff] %v1737_v17  }
  0xc7   : > { %1833 = vst [vmem:[%s2045_s8 + $0xc8] sm:$0xff] %v1777_v18  }
  0xc9   : > { %v852_v19 = vpop.f32.mrf.mxu2  ;;  %v892_v20 = vpop.f32.mrf.mxu3 }
  0xca   : > { %v774_v21 = vpop.f32.mrf.mxu0  ;;  %v814_v22 = vpop.f32.mrf.mxu1  ;;  %v1157_v31 = vadd.f32 %v2034_v42, %v852_v19  ;;  %v1173_v32 = vadd.f32 %v2034_v42, %v892_v20 }
  0xcb   : > { %v1126_v25 = vadd.f32 %v2034_v42, %v774_v21  ;;  %v1142_v26 = vadd.f32 %v2034_v42, %v814_v22 }
  0xcd   : > { %v1662_v27 = vpack.c.bf16 %v1126_v25, %v1125_v23  ;;  %v1702_v28 = vpack.c.bf16 %v1142_v26, %v1141_v24 }
  0xcf   : > { %1810 = vst [vmem:[%s2045_s8 + $0x10] sm:$0xff] %v1662_v27  }
  0xd0   : > { %1818 = vst [vmem:[%s2045_s8 + $0x50] sm:$0xff] %v1702_v28  }
  0xd1   : > { %v854_v29 = vpop.f32.mrf.mxu2  ;;  %v894_v30 = vpop.f32.mrf.mxu3 }
  0xd2   : > { %v1158_v33 = vadd.f32 %v2034_v42, %v854_v29  ;;  %v1174_v34 = vadd.f32 %v2034_v42, %v894_v30  ;;  %v777_v35 = vpop.f32.mrf.mxu0  ;;  %v817_v36 = vpop.f32.mrf.mxu1 }
  0xd3   : > { %v1127_v44 = vadd.f32 %v2034_v42, %v777_v35  ;;  %v1143_v45 = vadd.f32 %v2034_v42, %v817_v36 }
  0xd4   : > { %v1742_v37 = vpack.c.bf16 %v1158_v33, %v1157_v31  ;;  %v1782_v38 = vpack.c.bf16 %v1174_v34, %v1173_v32 }
  0xd6   : > { %1826 = vst [vmem:[%s2045_s8 + $0x90] sm:$0xff] %v1742_v37  }
  0xd7   : > { %1834 = vst [vmem:[%s2045_s8 + $0xd0] sm:$0xff] %v1782_v38  }
  0xd9   : > { %v857_v39 = vpop.f32.mrf.mxu2  ;;  %v897_v40 = vpop.f32.mrf.mxu3 }
  0xda   : > { %v779_v41 = vpop.f32.mrf.mxu0  ;;  %v819_v43 = vpop.f32.mrf.mxu1  ;;  %v1159_v52 = vadd.f32 %v2034_v42, %v857_v39  ;;  %v1175_v53 = vadd.f32 %v2034_v42, %v897_v40 }
  0xdb   : > { %v1128_v46 = vadd.f32 %v2034_v42, %v779_v41  ;;  %v1144_v47 = vadd.f32 %v2034_v42, %v819_v43 }
  0xdd   : > { %v1667_v48 = vpack.c.bf16 %v1128_v46, %v1127_v44  ;;  %v1707_v49 = vpack.c.bf16 %v1144_v47, %v1143_v45 }
  0xdf   : > { %1811 = vst [vmem:[%s2045_s8 + $0x18] sm:$0xff] %v1667_v48  }
  0xe0   : > { %1819 = vst [vmem:[%s2045_s8 + $0x58] sm:$0xff] %v1707_v49  }
  0xe1   : > { %v859_v50 = vpop.f32.mrf.mxu2  ;;  %v899_v51 = vpop.f32.mrf.mxu3 }
  0xe2   : > { %v1160_v54 = vadd.f32 %v2034_v42, %v859_v50  ;;  %v1176_v55 = vadd.f32 %v2034_v42, %v899_v51  ;;  %v782_v56 = vpop.f32.mrf.mxu0  ;;  %v822_v57 = vpop.f32.mrf.mxu1 }
  0xe3   : > { %v1129_v0 = vadd.f32 %v2034_v42, %v782_v56  ;;  %v1145_v1 = vadd.f32 %v2034_v42, %v822_v57 }
  0xe4   : > { %v1747_v58 = vpack.c.bf16 %v1160_v54, %v1159_v52  ;;  %v1787_v59 = vpack.c.bf16 %v1176_v55, %v1175_v53 }
  0xe6   : > { %1827 = vst [vmem:[%s2045_s8 + $0x98] sm:$0xff] %v1747_v58  }
  0xe7   : > { %1835 = vst [vmem:[%s2045_s8 + $0xd8] sm:$0xff] %v1787_v59  }
  0xe9   : > { %v862_v60 = vpop.f32.mrf.mxu2  ;;  %v902_v61 = vpop.f32.mrf.mxu3 }
  0xea   : > { %v784_v62 = vpop.f32.mrf.mxu0  ;;  %v824_v63 = vpop.f32.mrf.mxu1  ;;  %v1161_v8 = vadd.f32 %v2034_v42, %v862_v60  ;;  %v1177_v9 = vadd.f32 %v2034_v42, %v902_v61 }
  0xeb   : > { %v1130_v2 = vadd.f32 %v2034_v42, %v784_v62  ;;  %v1146_v3 = vadd.f32 %v2034_v42, %v824_v63 }
  0xed   : > { %v1672_v4 = vpack.c.bf16 %v1130_v2, %v1129_v0  ;;  %v1712_v5 = vpack.c.bf16 %v1146_v3, %v1145_v1 }
  0xef   : > { %1812 = vst [vmem:[%s2045_s8 + $0x20] sm:$0xff] %v1672_v4  }
  0xf0   : > { %1820 = vst [vmem:[%s2045_s8 + $0x60] sm:$0xff] %v1712_v5  }
  0xf1   : > { %v864_v6 = vpop.f32.mrf.mxu2  ;;  %v904_v7 = vpop.f32.mrf.mxu3 }
  0xf2   : > { %v1162_v10 = vadd.f32 %v2034_v42, %v864_v6  ;;  %v1178_v11 = vadd.f32 %v2034_v42, %v904_v7  ;;  %v787_v12 = vpop.f32.mrf.mxu0  ;;  %v827_v13 = vpop.f32.mrf.mxu1 }
  0xf3   : > { %v1131_v20 = vadd.f32 %v2034_v42, %v787_v12  ;;  %v1147_v21 = vadd.f32 %v2034_v42, %v827_v13 }
  0xf4   : > { %v1752_v14 = vpack.c.bf16 %v1162_v10, %v1161_v8  ;;  %v1792_v15 = vpack.c.bf16 %v1178_v11, %v1177_v9 }
  0xf6   : > { %1828 = vst [vmem:[%s2045_s8 + $0xa0] sm:$0xff] %v1752_v14  }
  0xf7   : > { %1836 = vst [vmem:[%s2045_s8 + $0xe0] sm:$0xff] %v1792_v15  }
  0xf9   : > { %v867_v16 = vpop.f32.mrf.mxu2  ;;  %v907_v17 = vpop.f32.mrf.mxu3 }
  0xfa   : > { %v789_v18 = vpop.f32.mrf.mxu0  ;;  %v829_v19 = vpop.f32.mrf.mxu1  ;;  %v1163_v28 = vadd.f32 %v2034_v42, %v867_v16  ;;  %v1179_v29 = vadd.f32 %v2034_v42, %v907_v17 }
  0xfb   : > { %v1132_v22 = vadd.f32 %v2034_v42, %v789_v18  ;;  %v1148_v23 = vadd.f32 %v2034_v42, %v829_v19 }
  0xfd   : > { %v1677_v24 = vpack.c.bf16 %v1132_v22, %v1131_v20  ;;  %v1717_v25 = vpack.c.bf16 %v1148_v23, %v1147_v21 }
  0xff   : > { %1813 = vst [vmem:[%s2045_s8 + $0x28] sm:$0xff] %v1677_v24  }
 0x100   : > { %1821 = vst [vmem:[%s2045_s8 + $0x68] sm:$0xff] %v1717_v25  }
 0x101   : > { %v869_v26 = vpop.f32.mrf.mxu2  ;;  %v909_v27 = vpop.f32.mrf.mxu3 }
 0x102   : > { %v1164_v30 = vadd.f32 %v2034_v42, %v869_v26  ;;  %v1180_v31 = vadd.f32 %v2034_v42, %v909_v27  ;;  %v792_v32 = vpop.f32.mrf.mxu0  ;;  %v832_v33 = vpop.f32.mrf.mxu1 }
 0x103   : > { %v1133_v40 = vadd.f32 %v2034_v42, %v792_v32  ;;  %v1149_v41 = vadd.f32 %v2034_v42, %v832_v33 }
 0x104   : > { %v1757_v34 = vpack.c.bf16 %v1164_v30, %v1163_v28  ;;  %v1797_v35 = vpack.c.bf16 %v1180_v31, %v1179_v29 }
 0x106   : > { %1829 = vst [vmem:[%s2045_s8 + $0xa8] sm:$0xff] %v1757_v34  }
 0x107   : > { %1837 = vst [vmem:[%s2045_s8 + $0xe8] sm:$0xff] %v1797_v35  }
 0x109   : > { %v872_v36 = vpop.f32.mrf.mxu2  ;;  %v912_v37 = vpop.f32.mrf.mxu3 }
 0x10a   : > { %v794_v38 = vpop.f32.mrf.mxu0  ;;  %v834_v39 = vpop.f32.mrf.mxu1  ;;  %v1165_v49 = vadd.f32 %v2034_v42, %v872_v36  ;;  %v1181_v50 = vadd.f32 %v2034_v42, %v912_v37 }
 0x10b   : > { %v1134_v43 = vadd.f32 %v2034_v42, %v794_v38  ;;  %v1150_v44 = vadd.f32 %v2034_v42, %v834_v39 }
 0x10d   : > { %v1682_v45 = vpack.c.bf16 %v1134_v43, %v1133_v40  ;;  %v1722_v46 = vpack.c.bf16 %v1150_v44, %v1149_v41 }
 0x10f   : > { %1814 = vst [vmem:[%s2045_s8 + $0x30] sm:$0xff] %v1682_v45  }
 0x110   : > { %1822 = vst [vmem:[%s2045_s8 + $0x70] sm:$0xff] %v1722_v46  }
 0x111   : > { %v874_v47 = vpop.f32.mrf.mxu2  ;;  %v914_v48 = vpop.f32.mrf.mxu3 }
 0x112   : > { %v1166_v51 = vadd.f32 %v2034_v42, %v874_v47  ;;  %v1182_v52 = vadd.f32 %v2034_v42, %v914_v48  ;;  %v797_v53 = vpop.f32.mrf.mxu0  ;;  %v837_v54 = vpop.f32.mrf.mxu1 }
 0x113   : > { %v1135_v61 = vadd.f32 %v2034_v42, %v797_v53  ;;  %v1151_v62 = vadd.f32 %v2034_v42, %v837_v54 }
 0x114   : > { %v1762_v55 = vpack.c.bf16 %v1166_v51, %v1165_v49  ;;  %v1802_v56 = vpack.c.bf16 %v1182_v52, %v1181_v50 }
 0x116   : > { %1830 = vst [vmem:[%s2045_s8 + $0xb0] sm:$0xff] %v1762_v55  }
 0x117   : > { %1838 = vst [vmem:[%s2045_s8 + $0xf0] sm:$0xff] %v1802_v56  }
 0x119   : > { %v877_v57 = vpop.f32.mrf.mxu2  ;;  %v917_v58 = vpop.f32.mrf.mxu3 }
 0x11a   : > { %v799_v59 = vpop.f32.mrf.mxu0  ;;  %v839_v60 = vpop.f32.mrf.mxu1  ;;  %v1167_v5 = vadd.f32 %v2034_v42, %v877_v57  ;;  %v1183_v6 = vadd.f32 %v2034_v42, %v917_v58 }
 0x11b   : > { %v1136_v63 = vadd.f32 %v2034_v42, %v799_v59  ;;  %v1152_v0 = vadd.f32 %v2034_v42, %v839_v60 }
 0x11d   : > { %v1687_v1 = vpack.c.bf16 %v1136_v63, %v1135_v61  ;;  %v1727_v2 = vpack.c.bf16 %v1152_v0, %v1151_v62 }
 0x11f   : > { %1815 = vst [vmem:[%s2045_s8 + $0x38] sm:$0xff] %v1687_v1  }
 0x120   : > { %1823 = vst [vmem:[%s2045_s8 + $0x78] sm:$0xff] %v1727_v2  }
 0x121   : > { %v879_v3 = vpop.f32.mrf.mxu2  ;;  %v919_v4 = vpop.f32.mrf.mxu3 }
 0x122   : > { %v1168_v7 = vadd.f32 %v2034_v42, %v879_v3  ;;  %v1184_v8 = vadd.f32 %v2034_v42, %v919_v4 }
 0x124   : > { %v1767_v9 = vpack.c.bf16 %v1168_v7, %v1167_v5  ;;  %v1807_v10 = vpack.c.bf16 %v1184_v8, %v1183_v6 }
 0x126   : > { %1831 = vst [vmem:[%s2045_s8 + $0xb8] sm:$0xff] %v1767_v9  }
 0x127   : > { %1839 = vst [vmem:[%s2045_s8 + $0xf8] sm:$0xff] %v1807_v10  }
 0x128 PF: > { %s13_s14 = sadd.s32 1, %s1902_s14   ;;  %s2152_s12 = smov %s1898_s13 }
 0x129   : > { %p10_p5 = scmp.ge.s32.totalorder %s13_s14, 18   ;;  %s2153_s13 = smov %s2155_s15 }
 0x12b   :  { %12 = sbr.rel (!%p10_p5) target bundleno = 2 (0x2), region = 76 }

// kernel: multi_step_cifar10dvs_forward.17
= control target key start
LH: loop header
LB: loop body
LE: loop exit
PB: predicated region body
PF: predicated region fallthrough
CT: control target
= control target key end

     0   :  { %s681_s6 = smov 0   ;;  %s683_s7 = smov 0   ;;  %s805_s0 = inlined_call_operand.vmem [shape: bf16[4,128,128], index: 0, kind: input, shape index: {}]   ;;  %s806_s1 = inlined_call_operand.vmem [shape: bf16[4,128,128], index: 1, kind: output, shape index: {}]  }
   0x1   :  { %s685_s8 = smov 0  }
   0x2 LB: > { %s20_s9 = sadd.s32 1, %s663_s7  ;;  %p523_p0 = scmp.ge.s32.totalorder %s667_s8, 1  ;;  %s667_s8 = sphi %s685_s8, %s11_s8   ;;  %s663_s7 = sphi %s683_s7, %s808_s7   ;;  %s659_s6 = sphi %s681_s6, %s807_s6  }
   0x3   : > { %p21_p1 = scmp.ge.s32.totalorder %s20_s9, 4  ;;  %p108_p2 = scmp.lt.s32.totalorder %s667_s8, 5 }
   0x5   : > { %s810_s9 = smov (%p21_p1, %s20_s9), 0  ;;  %p109_p3 = pnand %p523_p0, %p108_p2 }
   0x6   : > { %p137_p4 = scmp.lt.s32.totalorder (!%p109_p3), %s659_s6, 3  ;;  %p528_p5 = scmp.ne.s32.totalorder (!%p109_p3), %s659_s6, 0 }
   0x7   : > { %112 = sbr.rel (%p109_p3) target bundleno = 87 (0x57), region = 24 }
   0xc   : > { %s138_s10 = scalar_select %p137_p4, %s659_s6, 3 }
   0xd   : > { %159 = sbr.rel (%p528_p5) target bundleno = 35 (0x23), region = 28 }
   0xe   : > { %s547_s11 = sshll.u32 %s138_s10, 6 }
   0xf   : > { %s702_s14 = scalar_lea.vmem %s805_s0, %s547_s11  ;;  %s707_s17 = scalar_lea.vmem %s806_s1, %s547_s11 }
  0x12   : > { %v669_v0 = vmov 0.0  }
  0x13   : > { %160 = vst [vmem:[#allocation2 + $0x30] sm:$0xff] %v669_v0 }
  0x14   : > { %161 = vst [vmem:[#allocation2] sm:$0xff] %v669_v0 }
  0x15   : > { %162 = vst [vmem:[#allocation2 + $0x58] sm:$0xff] %v669_v0 }
  0x16   : > { %163 = vst [vmem:[#allocation2 + $0x18] sm:$0xff] %v669_v0 }
  0x17   : > { %164 = vst [vmem:[#allocation2 + $0x50] sm:$0xff] %v669_v0 }
  0x18   : > { %165 = vst [vmem:[#allocation2 + $0x68] sm:$0xff] %v669_v0 }
  0x19   : > { %166 = vst [vmem:[#allocation2 + $0x8] sm:$0xff] %v669_v0 }
  0x1a   : > { %167 = vst [vmem:[#allocation2 + $0x48] sm:$0xff] %v669_v0 }
  0x1b   : > { %168 = vst [vmem:[#allocation2 + $0x40] sm:$0xff] %v669_v0 }
  0x1c   : > { %169 = vst [vmem:[#allocation2 + $0x20] sm:$0xff] %v669_v0 }
  0x1d   : > { %170 = vst [vmem:[#allocation2 + $0x10] sm:$0xff] %v669_v0 }
  0x1e   : > { %171 = vst [vmem:[#allocation2 + $0x38] sm:$0xff] %v669_v0 }
  0x1f   : > { %172 = vst [vmem:[#allocation2 + $0x60] sm:$0xff] %v669_v0 }
  0x20   : > { %173 = vst [vmem:[#allocation2 + $0x70] sm:$0xff] %v669_v0 }
  0x21   : > { %174 = vst [vmem:[#allocation2 + $0x78] sm:$0xff] %v669_v0 }
  0x22   : > { %175 = vst [vmem:[#allocation2 + $0x28] sm:$0xff] %v669_v0 }
  0x23 PF: > { %v176_v1 = vld [vmem:[#allocation2 + $0x30] sm:$0xff]  ;;  %v550_v2 = vld [vmem:[%s702_s14] sm:$0xff]   ;;  %v178_v6 = vld [vmem:[#allocation2 + $0x58] sm:$0xff]  ;;  %v670_v43 = vmov 0.0  }
  0x24   : > { %v177_v3 = vld [vmem:[#allocation2] sm:$0xff]  ;;  %v551_v4 = vunpack.c.l.bf16 %v550_v2  ;;  %v552_v5 = vunpack.c.h.bf16 %v550_v2  ;;  %v605_v7 = vld [vmem:[%s702_s14 + $0x8] sm:$0xff]   ;;  %v179_v8 = vld [vmem:[#allocation2 + $0x18] sm:$0xff] }
  0x25   : > { %v555_v9 = vunpack.c.l.bf16 %v605_v7  ;;  %v556_v10 = vunpack.c.h.bf16 %v605_v7  ;;  %v180_v11 = vld [vmem:[#allocation2 + $0x50] sm:$0xff]  ;;  %v181_v13 = vld [vmem:[#allocation2 + $0x68] sm:$0xff]  ;;  %v607_v19 = vld [vmem:[%s702_s14 + $0x18] sm:$0xff]  }
  0x26   : > { %v606_v12 = vld [vmem:[%s702_s14 + $0x10] sm:$0xff]   ;;  %v224_v14 = vsub.f32 %v551_v4, %v176_v1  ;;  %v225_v15 = vsub.f32 %v552_v5, %v177_v3  ;;  %v182_v18 = vld [vmem:[#allocation2 + $0x8] sm:$0xff]  ;;  %v563_v23 = vunpack.c.l.bf16 %v607_v19  ;;  %v564_v24 = vunpack.c.h.bf16 %v607_v19  ;;  %v608_v0 = vld [vmem:[%s702_s14 + $0x20] sm:$0xff]  }
  0x27   : > { %v559_v16 = vunpack.c.l.bf16 %v606_v12  ;;  %v560_v17 = vunpack.c.h.bf16 %v606_v12  ;;  %v183_v20 = vld [vmem:[#allocation2 + $0x48] sm:$0xff]  ;;  %v226_v21 = vsub.f32 %v555_v9, %v178_v6  ;;  %v227_v22 = vsub.f32 %v556_v10, %v179_v8  ;;  %v184_v10 = vld [vmem:[#allocation2 + $0x40] sm:$0xff] }
  0x28   : > { %v240_v25 = vmul.f32 0.5, %v224_v14  ;;  %v241_v26 = vmul.f32 0.5, %v225_v15  ;;  %v230_v31 = vsub.f32 %v563_v23, %v182_v18  ;;  %v231_v32 = vsub.f32 %v564_v24, %v183_v20  ;;  %v609_v5 = vld [vmem:[%s702_s14 + $0x28] sm:$0xff]   ;;  %v610_v23 = vld [vmem:[%s702_s14 + $0x30] sm:$0xff]  }
  0x29   : > { %v228_v27 = vsub.f32 %v559_v16, %v180_v11  ;;  %v229_v28 = vsub.f32 %v560_v17, %v181_v13  ;;  %v242_v29 = vmul.f32 0.5, %v226_v21  ;;  %v243_v30 = vmul.f32 0.5, %v227_v22  ;;  %v185_v16 = vld [vmem:[#allocation2 + $0x20] sm:$0xff]  ;;  %v186_v17 = vld [vmem:[#allocation2 + $0x10] sm:$0xff] }
  0x2a   : > { %v256_v33 = vadd.f32 %v240_v25, %v176_v1  ;;  %v257_v34 = vadd.f32 %v241_v26, %v177_v3  ;;  %v246_v39 = vmul.f32 0.5, %v230_v31  ;;  %v247_v40 = vmul.f32 0.5, %v231_v32 }
  0x2b   : > { %v244_v35 = vmul.f32 0.5, %v228_v27  ;;  %v245_v36 = vmul.f32 0.5, %v229_v28  ;;  %v258_v37 = vadd.f32 %v242_v29, %v178_v6  ;;  %v259_v38 = vadd.f32 %v243_v30, %v179_v8  ;;  %v187_v28 = vld [vmem:[#allocation2 + $0x38] sm:$0xff] }
  0x2c   : > { %vm272_vm0 = vcmp.ge.f32.partialorder %v256_v33, 1.0  ;;  %vm273_vm1 = vcmp.ge.f32.partialorder %v257_v34, 1.0  ;;  %v262_v8 = vadd.f32 %v246_v39, %v182_v18  ;;  %v263_v9 = vadd.f32 %v247_v40, %v183_v20 }
  0x2d   : > { %v260_v41 = vadd.f32 %v244_v35, %v180_v11  ;;  %v261_v42 = vadd.f32 %v245_v36, %v181_v13  ;;  %v714_v44 = vsel %vm272_vm0, 1.0, %v670_v43  ;;  %v717_v45 = vsel %vm273_vm1, 1.0, %v670_v43 }
  0x2e   : > { %vm274_vm2 = vcmp.ge.f32.partialorder %v258_v37, 1.0  ;;  %vm275_vm3 = vcmp.ge.f32.partialorder %v259_v38, 1.0  ;;  %v320_v46 = vsub.f32 1.0, %v714_v44  ;;  %v352_v47 = vmul.f32 0.0, %v714_v44 }
  0x2f   : > { %v321_v48 = vsub.f32 1.0, %v717_v45  ;;  %v353_v49 = vmul.f32 0.0, %v717_v45  ;;  %v724_v50 = vsel %vm274_vm2, 1.0, %v670_v43  ;;  %v727_v51 = vsel %vm275_vm3, 1.0, %v670_v43 }
  0x30   : > { %vm276_vm4 = vcmp.ge.f32.partialorder %v260_v41, 1.0  ;;  %vm277_vm5 = vcmp.ge.f32.partialorder %v261_v42, 1.0  ;;  %v336_v52 = vmul.f32 %v320_v46, %v256_v33  ;;  %v322_v54 = vsub.f32 1.0, %v724_v50  ;;  %v188_v33 = vld [vmem:[#allocation2 + $0x60] sm:$0xff]  ;;  %v611_v46 = vld [vmem:[%s702_s14 + $0x38] sm:$0xff]  }
  0x31   : > { %v337_v53 = vmul.f32 %v321_v48, %v257_v34  ;;  %v354_v55 = vmul.f32 0.0, %v724_v50  ;;  %v323_v56 = vsub.f32 1.0, %v727_v51  ;;  %v355_v57 = vmul.f32 0.0, %v727_v51  ;;  %v189_v34 = vld [vmem:[#allocation2 + $0x70] sm:$0xff] }
  0x32   : > { %v734_v58 = vsel %vm276_vm4, 1.0, %v670_v43  ;;  %v737_v59 = vsel %vm277_vm5, 1.0, %v670_v43  ;;  %v368_v60 = vadd.f32 %v352_v47, %v336_v52  ;;  %v338_v62 = vmul.f32 %v322_v54, %v258_v37 }
  0x33   : > { %v369_v61 = vadd.f32 %v353_v49, %v337_v53  ;;  %v324_v63 = vsub.f32 1.0, %v734_v58  ;;  %v339_v1 = vmul.f32 %v323_v56, %v259_v38  ;;  %v356_v2 = vmul.f32 0.0, %v734_v58 }
  0x34   : > { %v325_v3 = vsub.f32 1.0, %v737_v59  ;;  %v357_v4 = vmul.f32 0.0, %v737_v59  ;;  %384 = vst [vmem:[#allocation2 + $0x30] sm:$0xff] %v368_v60  ;;  %v370_v6 = vadd.f32 %v354_v55, %v338_v62  ;;  %v567_v13 = vunpack.c.l.bf16 %v608_v0 }
  0x35   : > { %v340_v7 = vmul.f32 %v324_v63, %v260_v41  ;;  %385 = vst [vmem:[#allocation2] sm:$0xff] %v369_v61  ;;  %v371_v11 = vadd.f32 %v355_v57, %v339_v1  ;;  %v568_v14 = vunpack.c.h.bf16 %v608_v0  ;;  %vm278_vm6 = vcmp.ge.f32.partialorder %v262_v8, 1.0 }
  0x36   : > { %v341_v12 = vmul.f32 %v325_v3, %v261_v42  ;;  %386 = vst [vmem:[#allocation2 + $0x58] sm:$0xff] %v370_v6  ;;  %vm279_vm7 = vcmp.ge.f32.partialorder %v263_v9, 1.0  ;;  %v571_v19 = vunpack.c.l.bf16 %v609_v5  ;;  %v746_v22 = vsel %vm278_vm6, 1.0, %v670_v43 }
  0x37   : > { %v372_v15 = vadd.f32 %v356_v2, %v340_v7  ;;  %387 = vst [vmem:[#allocation2 + $0x18] sm:$0xff] %v371_v11  ;;  %v749_v18 = vsel %vm279_vm7, 1.0, %v670_v43  ;;  %v232_v20 = vsub.f32 %v567_v13, %v184_v10  ;;  %v326_v24 = vsub.f32 1.0, %v746_v22 }
  0x38   : > { %v373_v21 = vadd.f32 %v357_v4, %v341_v12  ;;  %v358_v25 = vmul.f32 0.0, %v746_v22  ;;  %v327_v26 = vsub.f32 1.0, %v749_v18  ;;  %v359_v27 = vmul.f32 0.0, %v749_v18 }
  0x39   : > { %388 = vst [vmem:[#allocation2 + $0x50] sm:$0xff] %v372_v15  ;;  %v248_v29 = vmul.f32 0.5, %v232_v20  ;;  %v233_v30 = vsub.f32 %v568_v14, %v185_v16  ;;  %v234_v31 = vsub.f32 %v571_v19, %v186_v17  ;;  %v572_v32 = vunpack.c.h.bf16 %v609_v5  ;;  %v190_v14 = vld [vmem:[#allocation2 + $0x78] sm:$0xff] }
  0x3a   : > { %389 = vst [vmem:[#allocation2 + $0x68] sm:$0xff] %v373_v21  ;;  %v342_v35 = vmul.f32 %v326_v24, %v262_v8  ;;  %v343_v36 = vmul.f32 %v327_v26, %v263_v9  ;;  %v575_v37 = vunpack.c.l.bf16 %v610_v23  ;;  %v576_v38 = vunpack.c.h.bf16 %v610_v23  ;;  %v191_v24 = vld [vmem:[#allocation2 + $0x28] sm:$0xff] }
  0x3b   : > { %v264_v39 = vadd.f32 %v248_v29, %v184_v10  ;;  %v249_v40 = vmul.f32 0.5, %v233_v30  ;;  %v250_v41 = vmul.f32 0.5, %v234_v31  ;;  %v235_v42 = vsub.f32 %v572_v32, %v187_v28 }
  0x3c   : > { %v374_v47 = vadd.f32 %v358_v25, %v342_v35  ;;  %v375_v48 = vadd.f32 %v359_v27, %v343_v36  ;;  %v236_v49 = vsub.f32 %v575_v37, %v188_v33  ;;  %v237_v52 = vsub.f32 %v576_v38, %v189_v34 }
  0x3d   : > { %vm280_vm8 = vcmp.ge.f32.partialorder %v264_v39, 1.0  ;;  %v265_v53 = vadd.f32 %v249_v40, %v185_v16  ;;  %v266_v54 = vadd.f32 %v250_v41, %v186_v17  ;;  %v251_v55 = vmul.f32 0.5, %v235_v42 }
  0x3e   : > { %390 = vst [vmem:[#allocation2 + $0x8] sm:$0xff] %v374_v47  ;;  %v758_v56 = vsel %vm280_vm8, 1.0, %v670_v43  ;;  %v252_v57 = vmul.f32 0.5, %v236_v49  ;;  %v253_v60 = vmul.f32 0.5, %v237_v52  ;;  %v579_v61 = vunpack.c.l.bf16 %v611_v46 }
  0x3f   : > { %391 = vst [vmem:[#allocation2 + $0x48] sm:$0xff] %v375_v48  ;;  %v328_v62 = vsub.f32 1.0, %v758_v56  ;;  %v360_v63 = vmul.f32 0.0, %v758_v56  ;;  %vm281_vm9 = vcmp.ge.f32.partialorder %v265_v53, 1.0  ;;  %vm282_vm10 = vcmp.ge.f32.partialorder %v266_v54, 1.0 }
  0x40   : > { %v763_v0 = vsel %vm281_vm9, 1.0, %v670_v43  ;;  %v766_v1 = vsel %vm282_vm10, 1.0, %v670_v43  ;;  %v267_v2 = vadd.f32 %v251_v55, %v187_v28  ;;  %v268_v3 = vadd.f32 %v252_v57, %v188_v33 }
  0x41   : > { %v344_v4 = vmul.f32 %v328_v62, %v264_v39  ;;  %v329_v5 = vsub.f32 1.0, %v763_v0  ;;  %v361_v6 = vmul.f32 0.0, %v763_v0  ;;  %v330_v7 = vsub.f32 1.0, %v766_v1 }
  0x42   : > { %v362_v8 = vmul.f32 0.0, %v766_v1  ;;  %vm283_vm11 = vcmp.ge.f32.partialorder %v267_v2, 1.0  ;;  %vm284_vm12 = vcmp.ge.f32.partialorder %v268_v3, 1.0  ;;  %v269_v9 = vadd.f32 %v253_v60, %v189_v34 }
  0x43   : > { %v376_v10 = vadd.f32 %v360_v63, %v344_v4  ;;  %v345_v11 = vmul.f32 %v329_v5, %v265_v53  ;;  %v346_v12 = vmul.f32 %v330_v7, %v266_v54  ;;  %v540_v13 = vsel %vm283_vm11, 1.0, %v670_v43 }
  0x44   : > { %v331_v15 = vsub.f32 1.0, %v540_v13  ;;  %v363_v16 = vmul.f32 0.0, %v540_v13  ;;  %v541_v17 = vsel %vm284_vm12, 1.0, %v670_v43  ;;  %vm285_vm13 = vcmp.ge.f32.partialorder %v269_v9, 1.0 }
  0x45   : > { %392 = vst [vmem:[#allocation2 + $0x40] sm:$0xff] %v376_v10  ;;  %v377_v19 = vadd.f32 %v361_v6, %v345_v11  ;;  %v378_v21 = vadd.f32 %v362_v8, %v346_v12  ;;  %v332_v20 = vsub.f32 1.0, %v541_v17  ;;  %v364_v23 = vmul.f32 0.0, %v541_v17 }
  0x46   : > { %v347_v25 = vmul.f32 %v331_v15, %v267_v2  ;;  %v542_v26 = vsel %vm285_vm13, 1.0, %v670_v43  ;;  %v238_v27 = vsub.f32 %v579_v61, %v190_v14  ;;  %v580_v28 = vunpack.c.h.bf16 %v611_v46 }
  0x47   : > { %393 = vst [vmem:[#allocation2 + $0x20] sm:$0xff] %v377_v19  ;;  %v348_v29 = vmul.f32 %v332_v20, %v268_v3  ;;  %v333_v30 = vsub.f32 1.0, %v542_v26  ;;  %v365_v31 = vmul.f32 0.0, %v542_v26  ;;  %v582_v32 = vpack.c.bf16 %v717_v45, %v714_v44 }
  0x48   : > { %394 = vst [vmem:[#allocation2 + $0x10] sm:$0xff] %v378_v21  ;;  %v379_v33 = vadd.f32 %v363_v16, %v347_v25  ;;  %v254_v34 = vmul.f32 0.5, %v238_v27  ;;  %v239_v35 = vsub.f32 %v580_v28, %v191_v24  ;;  %v585_v36 = vpack.c.bf16 %v727_v51, %v724_v50 }
  0x49   : > { %v380_v37 = vadd.f32 %v364_v23, %v348_v29  ;;  %v349_v38 = vmul.f32 %v333_v30, %v269_v9  ;;  %583 = vst [vmem:[%s707_s17] sm:$0xff] %v582_v32   ;;  %v588_v41 = vpack.c.bf16 %v737_v59, %v734_v58  ;;  %v591_v45 = vpack.c.bf16 %v749_v18, %v746_v22 }
  0x4a   : > { %395 = vst [vmem:[#allocation2 + $0x38] sm:$0xff] %v379_v33  ;;  %v270_v39 = vadd.f32 %v254_v34, %v190_v14  ;;  %v255_v40 = vmul.f32 0.5, %v239_v35  ;;  %v594_v50 = vpack.c.bf16 %v763_v0, %v758_v56  ;;  %v597_v46 = vpack.c.bf16 %v540_v13, %v766_v1 }
  0x4b   : > { %396 = vst [vmem:[#allocation2 + $0x60] sm:$0xff] %v380_v37  ;;  %v381_v44 = vadd.f32 %v365_v31, %v349_v38  ;;  %v600_v22 = vpack.c.bf16 %v542_v26, %v541_v17 }
  0x4c   : > { %vm286_vm14 = vcmp.ge.f32.partialorder %v270_v39, 1.0  ;;  %v271_v42 = vadd.f32 %v255_v40, %v191_v24  ;;  %612 = vst [vmem:[%s707_s17 + $0x8] sm:$0xff] %v585_v36  }
  0x4d   : > { %397 = vst [vmem:[#allocation2 + $0x70] sm:$0xff] %v381_v44  ;;  %v543_v51 = vsel %vm286_vm14, 1.0, %v670_v43 }
  0x4e   : > { %v334_v58 = vsub.f32 1.0, %v543_v51  ;;  %v366_v59 = vmul.f32 0.0, %v543_v51  ;;  %vm287_vm15 = vcmp.ge.f32.partialorder %v271_v42, 1.0  ;;  %613 = vst [vmem:[%s707_s17 + $0x10] sm:$0xff] %v588_v41  }
  0x4f   : > { %v544_v18 = vsel %vm287_vm15, 1.0, %v670_v43  ;;  %614 = vst [vmem:[%s707_s17 + $0x18] sm:$0xff] %v591_v45  }
  0x50   : > { %v350_v47 = vmul.f32 %v334_v58, %v270_v39  ;;  %v335_v48 = vsub.f32 1.0, %v544_v18  ;;  %v367_v49 = vmul.f32 0.0, %v544_v18  ;;  %615 = vst [vmem:[%s707_s17 + $0x20] sm:$0xff] %v594_v50   ;;  %v603_v52 = vpack.c.bf16 %v544_v18, %v543_v51 }
  0x51   : > { %616 = vst [vmem:[%s707_s17 + $0x28] sm:$0xff] %v597_v46  }
  0x52   : > { %v382_v53 = vadd.f32 %v366_v59, %v350_v47  ;;  %v351_v54 = vmul.f32 %v335_v48, %v271_v42  ;;  %617 = vst [vmem:[%s707_s17 + $0x30] sm:$0xff] %v600_v22  }
  0x53   : > { %618 = vst [vmem:[%s707_s17 + $0x38] sm:$0xff] %v603_v52  }
  0x54   : > { %398 = vst [vmem:[#allocation2 + $0x78] sm:$0xff] %v382_v53  ;;  %v383_v55 = vadd.f32 %v367_v49, %v351_v54 }
  0x56   : > { %399 = vst [vmem:[#allocation2 + $0x28] sm:$0xff] %v383_v55 }
  0x57 PF: > { %s11_s8 = sadd.s32 1, %s667_s8   ;;  %s807_s6 = smov %s663_s7 }
  0x58   : > { %p8_p6 = scmp.ge.s32.totalorder %s11_s8, 6   ;;  %s808_s7 = smov %s810_s9 }
  0x5a   :  { %10 = sbr.rel (!%p8_p6) target bundleno = 2 (0x2), region = 58 }

// kernel: multi_step_cifar10dvs_forward.18
= control target key start
LH: loop header
LB: loop body
LE: loop exit
PB: predicated region body
PF: predicated region fallthrough
CT: control target
= control target key end

     0   :  { %s1924_s12 = smov 0   ;;  %s1926_s13 = smov 0   ;;  %s2148_s0 = inlined_call_operand.vmem [shape: bf16[2048,72], index: 0, kind: input, shape index: {}]   ;;  %s2149_s1 = inlined_call_operand.vmem [shape: bf16[72,128], index: 1, kind: input, shape index: {}]   ;;  %s2150_s2 = inlined_call_operand.vmem [shape: f32[1,128], index: 2, kind: input, shape index: {}]   ;;  %s2151_s3 = inlined_call_operand.vmem [shape: bf16[2048,128], index: 3, kind: output, shape index: {}]  }
   0x1   :  { %s1928_s14 = smov 0  }
   0x2 LB: > { %s32_s15 = sadd.s32 1, %s1898_s13  ;;  %p1430_p0 = scmp.ge.s32.totalorder %s1902_s14, 1  ;;  %s1902_s14 = sphi %s1928_s14, %s13_s14   ;;  %s1898_s13 = sphi %s1926_s13, %s2153_s13   ;;  %s1894_s12 = sphi %s1924_s12, %s2152_s12  }
   0x3   : > { %p34_p1 = scmp.ge.s32.totalorder %s32_s15, 4  ;;  %p188_p2 = scmp.lt.s32.totalorder %s1902_s14, 5 }
   0x5   : > { %s2155_s15 = smov (%p34_p1, %s32_s15), 0  ;;  %p189_p3 = pnand %p1430_p0, %p188_p2 }
   0x6   : > { %s1431_s18 = sshll.u32 (!%p189_p3), %s1894_s12, 6 }
   0x7   : > { %192 = sbr.rel (%p189_p3) target bundleno = 296 (0x128), region = 32  ;;  %p230_p4 = scmp.lt.s32.totalorder (!%p189_p3), %s1431_s18, 255 }
   0xc   : > { %v464_v0 = vld [vmem:[%s2149_s1 + $0x20] sm:$0xf]  ;;  %vm749_vm0 = vcmask 1043456   ;;  %v1648_v4 = vld [vmem:[%s2149_s1 + $0x18] sm:$0xff]  ;;  %v1647_v5 = vld [vmem:[%s2149_s1 + $0x10] sm:$0xff]  ;;  %s2157_s18 = smov (!%p230_p4, %s1431_s18), 255 }
   0xd   : > { %v642_v1 = vunpack.c.l.b16 %v464_v0  ;;  %v1646_v6 = vld [vmem:[%s2149_s1 + $0x8] sm:$0xff]  ;;  %s1432_s25 = sshll.u32 %s2157_s18, 2  ;;  %v1645_v7 = vld [vmem:[%s2149_s1] sm:$0xff]  ;;  %vm652_vm1 = vcmask 588800  }
   0xe   : > { %s1965_s30 = scalar_lea.vmem %s2148_s0, %s1432_s25  ;;  %v2034_v42 = vld [vmem:[%s2150_s2] ss:$0 sm:$0xff]  ;;  %s2045_s8 = scalar_lea.vmem %s2151_s3, %s1432_s25 }
   0xf   : > { %v647_v2 = vpack.c.b16 %v642_v1, %v642_v1  ;;  %v1613_v8 = vld [vmem:[%s1965_s30] sm:$0xff]  ;;  %v1614_v12 = vld [vmem:[%s1965_s30 + $0x8] sm:$0xff]  ;;  %v1615_v16 = vld [vmem:[%s1965_s30 + $0x10] sm:$0xff] }
  0x10   : > { %v1621_v9 = vld [vmem:[%s1965_s30 + $0x40] sm:$0xff]  ;;  %v1622_v13 = vld [vmem:[%s1965_s30 + $0x48] sm:$0xff]  ;;  %v1623_v17 = vld [vmem:[%s1965_s30 + $0x50] sm:$0xff] }
  0x11   : > { %v751_v3 = vsel %vm749_vm0, %v647_v2, 0  ;;  %v1629_v10 = vld [vmem:[%s1965_s30 + $0x80] sm:$0xff]  ;;  %v1630_v14 = vld [vmem:[%s1965_s30 + $0x88] sm:$0xff]  ;;  %v1631_v18 = vld [vmem:[%s1965_s30 + $0x90] sm:$0xff] }
  0x12   : > { %756 = vmatpush.bf16.msra.mxu0 %v751_v3  ;;  %1840 = vmatpush.bf16.msra.mxu1 %v751_v3  ;;  %v1637_v11 = vld [vmem:[%s1965_s30 + $0xc0] sm:$0xff]  ;;  %v1638_v15 = vld [vmem:[%s1965_s30 + $0xc8] sm:$0xff]  ;;  %v1639_v19 = vld [vmem:[%s1965_s30 + $0xd0] sm:$0xff] }
  0x13   : > { %1841 = vmatpush.bf16.msra.mxu2 %v751_v3  ;;  %1842 = vmatpush.bf16.msra.mxu3 %v751_v3  ;;  %v1616_v20 = vld [vmem:[%s1965_s30 + $0x18] sm:$0xff]  ;;  %v1617_v24 = vld [vmem:[%s1965_s30 + $0x20] sm:$0xff]  ;;  %v1618_v28 = vld [vmem:[%s1965_s30 + $0x28] sm:$0xff] }
  0x14   : > { %v1624_v21 = vld [vmem:[%s1965_s30 + $0x58] sm:$0xff]  ;;  %v1625_v25 = vld [vmem:[%s1965_s30 + $0x60] sm:$0xff]  ;;  %v1626_v29 = vld [vmem:[%s1965_s30 + $0x68] sm:$0xff] }
  0x15   : > { %v1632_v22 = vld [vmem:[%s1965_s30 + $0x98] sm:$0xff]  ;;  %v1633_v26 = vld [vmem:[%s1965_s30 + $0xa0] sm:$0xff]  ;;  %v1634_v30 = vld [vmem:[%s1965_s30 + $0xa8] sm:$0xff] }
  0x16   : > { %757 = vmatpush.bf16.msra.mxu0 %v1648_v4  ;;  %1843 = vmatpush.bf16.msra.mxu1 %v1648_v4  ;;  %v1640_v23 = vld [vmem:[%s1965_s30 + $0xd8] sm:$0xff]  ;;  %v1641_v27 = vld [vmem:[%s1965_s30 + $0xe0] sm:$0xff]  ;;  %v1642_v31 = vld [vmem:[%s1965_s30 + $0xe8] sm:$0xff] }
  0x17   : > { %1844 = vmatpush.bf16.msra.mxu2 %v1648_v4  ;;  %1845 = vmatpush.bf16.msra.mxu3 %v1648_v4  ;;  %v1619_v32 = vld [vmem:[%s1965_s30 + $0x30] sm:$0xff]  ;;  %v1620_v36 = vld [vmem:[%s1965_s30 + $0x38] sm:$0xff] }
  0x18   : > { %v1627_v33 = vld [vmem:[%s1965_s30 + $0x70] sm:$0xff]  ;;  %v1628_v37 = vld [vmem:[%s1965_s30 + $0x78] sm:$0xff] }
  0x19   : > { %v1635_v34 = vld [vmem:[%s1965_s30 + $0xb0] sm:$0xff]  ;;  %v1636_v38 = vld [vmem:[%s1965_s30 + $0xb8] sm:$0xff] }
  0x1a   : > { %758 = vmatpush.bf16.msra.mxu0 %v1647_v5  ;;  %1846 = vmatpush.bf16.msra.mxu1 %v1647_v5  ;;  %v1643_v35 = vld [vmem:[%s1965_s30 + $0xf0] sm:$0xff]  ;;  %v1644_v39 = vld [vmem:[%s1965_s30 + $0xf8] sm:$0xff] }
  0x1b   : > { %1847 = vmatpush.bf16.msra.mxu2 %v1647_v5  ;;  %1848 = vmatpush.bf16.msra.mxu3 %v1647_v5 }
  0x1e   : > { %759 = vmatpush.bf16.msra.mxu0 %v1646_v6  ;;  %1849 = vmatpush.bf16.msra.mxu1 %v1646_v6 }
  0x1f   : > { %1850 = vmatpush.bf16.msra.mxu2 %v1646_v6  ;;  %1851 = vmatpush.bf16.msra.mxu3 %v1646_v6 }
  0x22   : > { %760 = vmatpush.bf16.msra.mxu0 %v1645_v7  ;;  %1852 = vmatpush.bf16.msra.mxu1 %v1645_v7 }
  0x23   : > { %1853 = vmatpush.bf16.msra.mxu2 %v1645_v7  ;;  %1854 = vmatpush.bf16.msra.mxu3 %v1645_v7 }
  0x25   : > { %1579 = vmatmul.msk.bf16.vlgmr.msra.gmra.mxu0 %vm652_vm1, %v1613_v8  ;;  %1587 = vmatmul.msk.bf16.vlgmr.msra.gmra.mxu1 %vm652_vm1, %v1621_v9 }
  0x26   : > { %1595 = vmatmul.msk.bf16.vlgmr.msra.gmra.mxu2 %vm652_vm1, %v1629_v10  ;;  %1603 = vmatmul.msk.bf16.vlgmr.msra.gmra.mxu3 %vm652_vm1, %v1637_v11 }
  0x35   : > { %1580 = vmatmul.msk.bf16.gmra.mxu0 %vm652_vm1, %v1614_v12  ;;  %1588 = vmatmul.msk.bf16.gmra.mxu1 %vm652_vm1, %v1622_v13 }
  0x36   : > { %1596 = vmatmul.msk.bf16.gmra.mxu2 %vm652_vm1, %v1630_v14  ;;  %1604 = vmatmul.msk.bf16.gmra.mxu3 %vm652_vm1, %v1638_v15 }
  0x45   : > { %1581 = vmatmul.msk.bf16.gmra.mxu0 %vm652_vm1, %v1615_v16  ;;  %1589 = vmatmul.msk.bf16.gmra.mxu1 %vm652_vm1, %v1623_v17 }
  0x46   : > { %1597 = vmatmul.msk.bf16.gmra.mxu2 %vm652_vm1, %v1631_v18  ;;  %1605 = vmatmul.msk.bf16.gmra.mxu3 %vm652_vm1, %v1639_v19 }
  0x55   : > { %1582 = vmatmul.msk.bf16.gmra.mxu0 %vm652_vm1, %v1616_v20  ;;  %1590 = vmatmul.msk.bf16.gmra.mxu1 %vm652_vm1, %v1624_v21 }
  0x56   : > { %1598 = vmatmul.msk.bf16.gmra.mxu2 %vm652_vm1, %v1632_v22  ;;  %1606 = vmatmul.msk.bf16.gmra.mxu3 %vm652_vm1, %v1640_v23 }
  0x65   : > { %1583 = vmatmul.msk.bf16.gmra.mxu0 %vm652_vm1, %v1617_v24  ;;  %1591 = vmatmul.msk.bf16.gmra.mxu1 %vm652_vm1, %v1625_v25 }
  0x66   : > { %1599 = vmatmul.msk.bf16.gmra.mxu2 %vm652_vm1, %v1633_v26  ;;  %1607 = vmatmul.msk.bf16.gmra.mxu3 %vm652_vm1, %v1641_v27 }
  0x75   : > { %1584 = vmatmul.msk.bf16.gmra.mxu0 %vm652_vm1, %v1618_v28  ;;  %1592 = vmatmul.msk.bf16.gmra.mxu1 %vm652_vm1, %v1626_v29 }
  0x76   : > { %1600 = vmatmul.msk.bf16.gmra.mxu2 %vm652_vm1, %v1634_v30  ;;  %1608 = vmatmul.msk.bf16.gmra.mxu3 %vm652_vm1, %v1642_v31 }
  0x85   : > { %1585 = vmatmul.msk.bf16.gmra.mxu0 %vm652_vm1, %v1619_v32  ;;  %1593 = vmatmul.msk.bf16.gmra.mxu1 %vm652_vm1, %v1627_v33 }
  0x86   : > { %1601 = vmatmul.msk.bf16.gmra.mxu2 %vm652_vm1, %v1635_v34  ;;  %1609 = vmatmul.msk.bf16.gmra.mxu3 %vm652_vm1, %v1643_v35 }
  0x95   : > { %1586 = vmatmul.msk.bf16.gmra.mxu0 %vm652_vm1, %v1620_v36  ;;  %1594 = vmatmul.msk.bf16.gmra.mxu1 %vm652_vm1, %v1628_v37 }
  0x96   : > { %1602 = vmatmul.msk.bf16.gmra.mxu2 %vm652_vm1, %v1636_v38  ;;  %1610 = vmatmul.msk.bf16.gmra.mxu3 %vm652_vm1, %v1644_v39 }
  0xa2   : > { %v762_v40 = vpop.f32.mrf.mxu0  ;;  %v802_v41 = vpop.f32.mrf.mxu1 }
  0xa3   : > { %v1121_v47 = vadd.f32 %v2034_v42, %v762_v40  ;;  %v1137_v48 = vadd.f32 %v2034_v42, %v802_v41 }
  0xa9   : > { %v842_v43 = vpop.f32.mrf.mxu2  ;;  %v882_v44 = vpop.f32.mrf.mxu3 }
  0xaa   : > { %v764_v45 = vpop.f32.mrf.mxu0  ;;  %v804_v46 = vpop.f32.mrf.mxu1  ;;  %v1153_v55 = vadd.f32 %v2034_v42, %v842_v43  ;;  %v1169_v56 = vadd.f32 %v2034_v42, %v882_v44 }
  0xab   : > { %v1122_v49 = vadd.f32 %v2034_v42, %v764_v45  ;;  %v1138_v50 = vadd.f32 %v2034_v42, %v804_v46 }
  0xad   : > { %v1652_v51 = vpack.c.bf16 %v1122_v49, %v1121_v47  ;;  %v1692_v52 = vpack.c.bf16 %v1138_v50, %v1137_v48 }
  0xaf   : > { %1653 = vst [vmem:[%s2045_s8] sm:$0xff] %v1652_v51  }
  0xb0   : > { %1816 = vst [vmem:[%s2045_s8 + $0x40] sm:$0xff] %v1692_v52  }
  0xb1   : > { %v844_v53 = vpop.f32.mrf.mxu2  ;;  %v884_v54 = vpop.f32.mrf.mxu3 }
  0xb2   : > { %v1154_v57 = vadd.f32 %v2034_v42, %v844_v53  ;;  %v1170_v58 = vadd.f32 %v2034_v42, %v884_v54  ;;  %v767_v59 = vpop.f32.mrf.mxu0  ;;  %v807_v60 = vpop.f32.mrf.mxu1 }
  0xb3   : > { %v1123_v3 = vadd.f32 %v2034_v42, %v767_v59  ;;  %v1139_v4 = vadd.f32 %v2034_v42, %v807_v60 }
  0xb4   : > { %v1732_v61 = vpack.c.bf16 %v1154_v57, %v1153_v55  ;;  %v1772_v62 = vpack.c.bf16 %v1170_v58, %v1169_v56 }
  0xb6   : > { %1824 = vst [vmem:[%s2045_s8 + $0x80] sm:$0xff] %v1732_v61  }
  0xb7   : > { %1832 = vst [vmem:[%s2045_s8 + $0xc0] sm:$0xff] %v1772_v62  }
  0xb9   : > { %v847_v63 = vpop.f32.mrf.mxu2  ;;  %v887_v0 = vpop.f32.mrf.mxu3 }
  0xba   : > { %v769_v1 = vpop.f32.mrf.mxu0  ;;  %v809_v2 = vpop.f32.mrf.mxu1  ;;  %v1155_v11 = vadd.f32 %v2034_v42, %v847_v63  ;;  %v1171_v12 = vadd.f32 %v2034_v42, %v887_v0 }
  0xbb   : > { %v1124_v5 = vadd.f32 %v2034_v42, %v769_v1  ;;  %v1140_v6 = vadd.f32 %v2034_v42, %v809_v2 }
  0xbd   : > { %v1657_v7 = vpack.c.bf16 %v1124_v5, %v1123_v3  ;;  %v1697_v8 = vpack.c.bf16 %v1140_v6, %v1139_v4 }
  0xbf   : > { %1809 = vst [vmem:[%s2045_s8 + $0x8] sm:$0xff] %v1657_v7  }
  0xc0   : > { %1817 = vst [vmem:[%s2045_s8 + $0x48] sm:$0xff] %v1697_v8  }
  0xc1   : > { %v849_v9 = vpop.f32.mrf.mxu2  ;;  %v889_v10 = vpop.f32.mrf.mxu3 }
  0xc2   : > { %v1156_v13 = vadd.f32 %v2034_v42, %v849_v9  ;;  %v1172_v14 = vadd.f32 %v2034_v42, %v889_v10  ;;  %v772_v15 = vpop.f32.mrf.mxu0  ;;  %v812_v16 = vpop.f32.mrf.mxu1 }
  0xc3   : > { %v1125_v23 = vadd.f32 %v2034_v42, %v772_v15  ;;  %v1141_v24 = vadd.f32 %v2034_v42, %v812_v16 }
  0xc4   : > { %v1737_v17 = vpack.c.bf16 %v1156_v13, %v1155_v11  ;;  %v1777_v18 = vpack.c.bf16 %v1172_v14, %v1171_v12 }
  0xc6   : > { %1825 = vst [vmem:[%s2045_s8 + $0x88] sm:$0xff] %v1737_v17  }
  0xc7   : > { %1833 = vst [vmem:[%s2045_s8 + $0xc8] sm:$0xff] %v1777_v18  }
  0xc9   : > { %v852_v19 = vpop.f32.mrf.mxu2  ;;  %v892_v20 = vpop.f32.mrf.mxu3 }
  0xca   : > { %v774_v21 = vpop.f32.mrf.mxu0  ;;  %v814_v22 = vpop.f32.mrf.mxu1  ;;  %v1157_v31 = vadd.f32 %v2034_v42, %v852_v19  ;;  %v1173_v32 = vadd.f32 %v2034_v42, %v892_v20 }
  0xcb   : > { %v1126_v25 = vadd.f32 %v2034_v42, %v774_v21  ;;  %v1142_v26 = vadd.f32 %v2034_v42, %v814_v22 }
  0xcd   : > { %v1662_v27 = vpack.c.bf16 %v1126_v25, %v1125_v23  ;;  %v1702_v28 = vpack.c.bf16 %v1142_v26, %v1141_v24 }
  0xcf   : > { %1810 = vst [vmem:[%s2045_s8 + $0x10] sm:$0xff] %v1662_v27  }
  0xd0   : > { %1818 = vst [vmem:[%s2045_s8 + $0x50] sm:$0xff] %v1702_v28  }
  0xd1   : > { %v854_v29 = vpop.f32.mrf.mxu2  ;;  %v894_v30 = vpop.f32.mrf.mxu3 }
  0xd2   : > { %v1158_v33 = vadd.f32 %v2034_v42, %v854_v29  ;;  %v1174_v34 = vadd.f32 %v2034_v42, %v894_v30  ;;  %v777_v35 = vpop.f32.mrf.mxu0  ;;  %v817_v36 = vpop.f32.mrf.mxu1 }
  0xd3   : > { %v1127_v44 = vadd.f32 %v2034_v42, %v777_v35  ;;  %v1143_v45 = vadd.f32 %v2034_v42, %v817_v36 }
  0xd4   : > { %v1742_v37 = vpack.c.bf16 %v1158_v33, %v1157_v31  ;;  %v1782_v38 = vpack.c.bf16 %v1174_v34, %v1173_v32 }
  0xd6   : > { %1826 = vst [vmem:[%s2045_s8 + $0x90] sm:$0xff] %v1742_v37  }
  0xd7   : > { %1834 = vst [vmem:[%s2045_s8 + $0xd0] sm:$0xff] %v1782_v38  }
  0xd9   : > { %v857_v39 = vpop.f32.mrf.mxu2  ;;  %v897_v40 = vpop.f32.mrf.mxu3 }
  0xda   : > { %v779_v41 = vpop.f32.mrf.mxu0  ;;  %v819_v43 = vpop.f32.mrf.mxu1  ;;  %v1159_v52 = vadd.f32 %v2034_v42, %v857_v39  ;;  %v1175_v53 = vadd.f32 %v2034_v42, %v897_v40 }
  0xdb   : > { %v1128_v46 = vadd.f32 %v2034_v42, %v779_v41  ;;  %v1144_v47 = vadd.f32 %v2034_v42, %v819_v43 }
  0xdd   : > { %v1667_v48 = vpack.c.bf16 %v1128_v46, %v1127_v44  ;;  %v1707_v49 = vpack.c.bf16 %v1144_v47, %v1143_v45 }
  0xdf   : > { %1811 = vst [vmem:[%s2045_s8 + $0x18] sm:$0xff] %v1667_v48  }
  0xe0   : > { %1819 = vst [vmem:[%s2045_s8 + $0x58] sm:$0xff] %v1707_v49  }
  0xe1   : > { %v859_v50 = vpop.f32.mrf.mxu2  ;;  %v899_v51 = vpop.f32.mrf.mxu3 }
  0xe2   : > { %v1160_v54 = vadd.f32 %v2034_v42, %v859_v50  ;;  %v1176_v55 = vadd.f32 %v2034_v42, %v899_v51  ;;  %v782_v56 = vpop.f32.mrf.mxu0  ;;  %v822_v57 = vpop.f32.mrf.mxu1 }
  0xe3   : > { %v1129_v0 = vadd.f32 %v2034_v42, %v782_v56  ;;  %v1145_v1 = vadd.f32 %v2034_v42, %v822_v57 }
  0xe4   : > { %v1747_v58 = vpack.c.bf16 %v1160_v54, %v1159_v52  ;;  %v1787_v59 = vpack.c.bf16 %v1176_v55, %v1175_v53 }
  0xe6   : > { %1827 = vst [vmem:[%s2045_s8 + $0x98] sm:$0xff] %v1747_v58  }
  0xe7   : > { %1835 = vst [vmem:[%s2045_s8 + $0xd8] sm:$0xff] %v1787_v59  }
  0xe9   : > { %v862_v60 = vpop.f32.mrf.mxu2  ;;  %v902_v61 = vpop.f32.mrf.mxu3 }
  0xea   : > { %v784_v62 = vpop.f32.mrf.mxu0  ;;  %v824_v63 = vpop.f32.mrf.mxu1  ;;  %v1161_v8 = vadd.f32 %v2034_v42, %v862_v60  ;;  %v1177_v9 = vadd.f32 %v2034_v42, %v902_v61 }
  0xeb   : > { %v1130_v2 = vadd.f32 %v2034_v42, %v784_v62  ;;  %v1146_v3 = vadd.f32 %v2034_v42, %v824_v63 }
  0xed   : > { %v1672_v4 = vpack.c.bf16 %v1130_v2, %v1129_v0  ;;  %v1712_v5 = vpack.c.bf16 %v1146_v3, %v1145_v1 }
  0xef   : > { %1812 = vst [vmem:[%s2045_s8 + $0x20] sm:$0xff] %v1672_v4  }
  0xf0   : > { %1820 = vst [vmem:[%s2045_s8 + $0x60] sm:$0xff] %v1712_v5  }
  0xf1   : > { %v864_v6 = vpop.f32.mrf.mxu2  ;;  %v904_v7 = vpop.f32.mrf.mxu3 }
  0xf2   : > { %v1162_v10 = vadd.f32 %v2034_v42, %v864_v6  ;;  %v1178_v11 = vadd.f32 %v2034_v42, %v904_v7  ;;  %v787_v12 = vpop.f32.mrf.mxu0  ;;  %v827_v13 = vpop.f32.mrf.mxu1 }
  0xf3   : > { %v1131_v20 = vadd.f32 %v2034_v42, %v787_v12  ;;  %v1147_v21 = vadd.f32 %v2034_v42, %v827_v13 }
  0xf4   : > { %v1752_v14 = vpack.c.bf16 %v1162_v10, %v1161_v8  ;;  %v1792_v15 = vpack.c.bf16 %v1178_v11, %v1177_v9 }
  0xf6   : > { %1828 = vst [vmem:[%s2045_s8 + $0xa0] sm:$0xff] %v1752_v14  }
  0xf7   : > { %1836 = vst [vmem:[%s2045_s8 + $0xe0] sm:$0xff] %v1792_v15  }
  0xf9   : > { %v867_v16 = vpop.f32.mrf.mxu2  ;;  %v907_v17 = vpop.f32.mrf.mxu3 }
  0xfa   : > { %v789_v18 = vpop.f32.mrf.mxu0  ;;  %v829_v19 = vpop.f32.mrf.mxu1  ;;  %v1163_v28 = vadd.f32 %v2034_v42, %v867_v16  ;;  %v1179_v29 = vadd.f32 %v2034_v42, %v907_v17 }
  0xfb   : > { %v1132_v22 = vadd.f32 %v2034_v42, %v789_v18  ;;  %v1148_v23 = vadd.f32 %v2034_v42, %v829_v19 }
  0xfd   : > { %v1677_v24 = vpack.c.bf16 %v1132_v22, %v1131_v20  ;;  %v1717_v25 = vpack.c.bf16 %v1148_v23, %v1147_v21 }
  0xff   : > { %1813 = vst [vmem:[%s2045_s8 + $0x28] sm:$0xff] %v1677_v24  }
 0x100   : > { %1821 = vst [vmem:[%s2045_s8 + $0x68] sm:$0xff] %v1717_v25  }
 0x101   : > { %v869_v26 = vpop.f32.mrf.mxu2  ;;  %v909_v27 = vpop.f32.mrf.mxu3 }
 0x102   : > { %v1164_v30 = vadd.f32 %v2034_v42, %v869_v26  ;;  %v1180_v31 = vadd.f32 %v2034_v42, %v909_v27  ;;  %v792_v32 = vpop.f32.mrf.mxu0  ;;  %v832_v33 = vpop.f32.mrf.mxu1 }
 0x103   : > { %v1133_v40 = vadd.f32 %v2034_v42, %v792_v32  ;;  %v1149_v41 = vadd.f32 %v2034_v42, %v832_v33 }
 0x104   : > { %v1757_v34 = vpack.c.bf16 %v1164_v30, %v1163_v28  ;;  %v1797_v35 = vpack.c.bf16 %v1180_v31, %v1179_v29 }
 0x106   : > { %1829 = vst [vmem:[%s2045_s8 + $0xa8] sm:$0xff] %v1757_v34  }
 0x107   : > { %1837 = vst [vmem:[%s2045_s8 + $0xe8] sm:$0xff] %v1797_v35  }
 0x109   : > { %v872_v36 = vpop.f32.mrf.mxu2  ;;  %v912_v37 = vpop.f32.mrf.mxu3 }
 0x10a   : > { %v794_v38 = vpop.f32.mrf.mxu0  ;;  %v834_v39 = vpop.f32.mrf.mxu1  ;;  %v1165_v49 = vadd.f32 %v2034_v42, %v872_v36  ;;  %v1181_v50 = vadd.f32 %v2034_v42, %v912_v37 }
 0x10b   : > { %v1134_v43 = vadd.f32 %v2034_v42, %v794_v38  ;;  %v1150_v44 = vadd.f32 %v2034_v42, %v834_v39 }
 0x10d   : > { %v1682_v45 = vpack.c.bf16 %v1134_v43, %v1133_v40  ;;  %v1722_v46 = vpack.c.bf16 %v1150_v44, %v1149_v41 }
 0x10f   : > { %1814 = vst [vmem:[%s2045_s8 + $0x30] sm:$0xff] %v1682_v45  }
 0x110   : > { %1822 = vst [vmem:[%s2045_s8 + $0x70] sm:$0xff] %v1722_v46  }
 0x111   : > { %v874_v47 = vpop.f32.mrf.mxu2  ;;  %v914_v48 = vpop.f32.mrf.mxu3 }
 0x112   : > { %v1166_v51 = vadd.f32 %v2034_v42, %v874_v47  ;;  %v1182_v52 = vadd.f32 %v2034_v42, %v914_v48  ;;  %v797_v53 = vpop.f32.mrf.mxu0  ;;  %v837_v54 = vpop.f32.mrf.mxu1 }
 0x113   : > { %v1135_v61 = vadd.f32 %v2034_v42, %v797_v53  ;;  %v1151_v62 = vadd.f32 %v2034_v42, %v837_v54 }
 0x114   : > { %v1762_v55 = vpack.c.bf16 %v1166_v51, %v1165_v49  ;;  %v1802_v56 = vpack.c.bf16 %v1182_v52, %v1181_v50 }
 0x116   : > { %1830 = vst [vmem:[%s2045_s8 + $0xb0] sm:$0xff] %v1762_v55  }
 0x117   : > { %1838 = vst [vmem:[%s2045_s8 + $0xf0] sm:$0xff] %v1802_v56  }
 0x119   : > { %v877_v57 = vpop.f32.mrf.mxu2  ;;  %v917_v58 = vpop.f32.mrf.mxu3 }
 0x11a   : > { %v799_v59 = vpop.f32.mrf.mxu0  ;;  %v839_v60 = vpop.f32.mrf.mxu1  ;;  %v1167_v5 = vadd.f32 %v2034_v42, %v877_v57  ;;  %v1183_v6 = vadd.f32 %v2034_v42, %v917_v58 }
 0x11b   : > { %v1136_v63 = vadd.f32 %v2034_v42, %v799_v59  ;;  %v1152_v0 = vadd.f32 %v2034_v42, %v839_v60 }
 0x11d   : > { %v1687_v1 = vpack.c.bf16 %v1136_v63, %v1135_v61  ;;  %v1727_v2 = vpack.c.bf16 %v1152_v0, %v1151_v62 }
 0x11f   : > { %1815 = vst [vmem:[%s2045_s8 + $0x38] sm:$0xff] %v1687_v1  }
 0x120   : > { %1823 = vst [vmem:[%s2045_s8 + $0x78] sm:$0xff] %v1727_v2  }
 0x121   : > { %v879_v3 = vpop.f32.mrf.mxu2  ;;  %v919_v4 = vpop.f32.mrf.mxu3 }
 0x122   : > { %v1168_v7 = vadd.f32 %v2034_v42, %v879_v3  ;;  %v1184_v8 = vadd.f32 %v2034_v42, %v919_v4 }
 0x124   : > { %v1767_v9 = vpack.c.bf16 %v1168_v7, %v1167_v5  ;;  %v1807_v10 = vpack.c.bf16 %v1184_v8, %v1183_v6 }
 0x126   : > { %1831 = vst [vmem:[%s2045_s8 + $0xb8] sm:$0xff] %v1767_v9  }
 0x127   : > { %1839 = vst [vmem:[%s2045_s8 + $0xf8] sm:$0xff] %v1807_v10  }
 0x128 PF: > { %s13_s14 = sadd.s32 1, %s1902_s14   ;;  %s2152_s12 = smov %s1898_s13 }
 0x129   : > { %p10_p5 = scmp.ge.s32.totalorder %s13_s14, 6   ;;  %s2153_s13 = smov %s2155_s15 }
 0x12b   :  { %12 = sbr.rel (!%p10_p5) target bundleno = 2 (0x2), region = 76 }

// kernel: multi_step_cifar10dvs_forward.19
= control target key start
LH: loop header
LB: loop body
LE: loop exit
PB: predicated region body
PF: predicated region fallthrough
CT: control target
= control target key end

     0   :  { %s411_s6 = smov 0   ;;  %s413_s7 = smov 0   ;;  %s448_s0 = inlined_call_operand.vmem [shape: bf16[4,32,128], index: 0, kind: input, shape index: {}]   ;;  %s449_s1 = inlined_call_operand.vmem [shape: bf16[4,32,128], index: 1, kind: output, shape index: {}]  }
   0x1   :  { %s415_s8 = smov 0  }
   0x2 LB: > { %s20_s9 = sadd.s32 1, %s393_s7  ;;  %p319_p0 = scmp.ge.s32.totalorder %s397_s8, 1  ;;  %s397_s8 = sphi %s415_s8, %s11_s8   ;;  %s393_s7 = sphi %s413_s7, %s451_s7   ;;  %s389_s6 = sphi %s411_s6, %s450_s6  }
   0x3   : > { %p21_p1 = scmp.ge.s32.totalorder %s20_s9, 4  ;;  %p108_p2 = scmp.lt.s32.totalorder %s397_s8, 5 }
   0x5   : > { %s453_s9 = smov (%p21_p1, %s20_s9), 0  ;;  %p109_p3 = pnand %p319_p0, %p108_p2 }
   0x6   : > { %p137_p4 = scmp.lt.s32.totalorder (!%p109_p3), %s389_s6, 3  ;;  %p324_p5 = scmp.ne.s32.totalorder (!%p109_p3), %s389_s6, 0 }
   0x7   : > { %112 = sbr.rel (%p109_p3) target bundleno = 46 (0x2e), region = 24 }
   0xc   : > { %s138_s10 = scalar_select %p137_p4, %s389_s6, 3 }
   0xd   : > { %159 = sbr.rel (%p324_p5) target bundleno = 23 (0x17), region = 28 }
   0xe   : > { %s331_s11 = sshll.u32 %s138_s10, 4 }
   0xf   : > { %s144_s14 = scalar_lea.vmem %s448_s0, %s331_s11  ;;  %s435_s17 = scalar_lea.vmem %s449_s1, %s331_s11 }
  0x12   : > { %v399_v0 = vmov 0.0  }
  0x13   : > { %160 = vst [vmem:[#allocation2 + $0x10] sm:$0xff] %v399_v0 }
  0x14   : > { %161 = vst [vmem:[#allocation2] sm:$0xff] %v399_v0 }
  0x15   : > { %162 = vst [vmem:[#allocation2 + $0x18] sm:$0xff] %v399_v0 }
  0x16   : > { %163 = vst [vmem:[#allocation2 + $0x8] sm:$0xff] %v399_v0 }
  0x17 PF: > { %v334_v2 = vld [vmem:[%s144_s14] sm:$0xff]   ;;  %v347_v7 = vld [vmem:[%s144_s14 + $0x8] sm:$0xff]   ;;  %v400_v23 = vmov 0.0  }
  0x18   : > { %v335_v4 = vunpack.c.l.bf16 %v334_v2  ;;  %v336_v5 = vunpack.c.h.bf16 %v334_v2  ;;  %v339_v9 = vunpack.c.l.bf16 %v347_v7  ;;  %v340_v10 = vunpack.c.h.bf16 %v347_v7 }
  0x1a   : > { %v164_v1 = vld [vmem:[#allocation2 + $0x10] sm:$0xff] }
  0x1b   : > { %v165_v3 = vld [vmem:[#allocation2] sm:$0xff]  ;;  %v176_v11 = vsub.f32 %v335_v4, %v164_v1 }
  0x1c   : > { %v166_v6 = vld [vmem:[#allocation2 + $0x18] sm:$0xff]  ;;  %v177_v12 = vsub.f32 %v336_v5, %v165_v3 }
  0x1d   : > { %v167_v8 = vld [vmem:[#allocation2 + $0x8] sm:$0xff]  ;;  %v178_v13 = vsub.f32 %v339_v9, %v166_v6  ;;  %v180_v15 = vmul.f32 0.5, %v176_v11 }
  0x1e   : > { %v179_v14 = vsub.f32 %v340_v10, %v167_v8  ;;  %v181_v16 = vmul.f32 0.5, %v177_v12 }
  0x1f   : > { %v182_v17 = vmul.f32 0.5, %v178_v13  ;;  %v184_v19 = vadd.f32 %v180_v15, %v164_v1 }
  0x20   : > { %v183_v18 = vmul.f32 0.5, %v179_v14  ;;  %v185_v20 = vadd.f32 %v181_v16, %v165_v3 }
  0x21   : > { %v186_v21 = vadd.f32 %v182_v17, %v166_v6  ;;  %vm188_vm0 = vcmp.ge.f32.partialorder %v184_v19, 1.0 }
  0x22   : > { %v187_v22 = vadd.f32 %v183_v18, %v167_v8  ;;  %vm189_vm1 = vcmp.ge.f32.partialorder %v185_v20, 1.0  ;;  %v325_v24 = vsel %vm188_vm0, 1.0, %v400_v23 }
  0x23   : > { %v326_v25 = vsel %vm189_vm1, 1.0, %v400_v23  ;;  %vm190_vm2 = vcmp.ge.f32.partialorder %v186_v21, 1.0  ;;  %v200_v26 = vsub.f32 1.0, %v325_v24  ;;  %v208_v27 = vmul.f32 0.0, %v325_v24 }
  0x24   : > { %vm191_vm3 = vcmp.ge.f32.partialorder %v187_v22, 1.0  ;;  %v201_v28 = vsub.f32 1.0, %v326_v25  ;;  %v209_v29 = vmul.f32 0.0, %v326_v25  ;;  %v327_v30 = vsel %vm190_vm2, 1.0, %v400_v23 }
  0x25   : > { %v328_v31 = vsel %vm191_vm3, 1.0, %v400_v23  ;;  %v342_v32 = vpack.c.bf16 %v326_v25, %v325_v24  ;;  %v204_v33 = vmul.f32 %v200_v26, %v184_v19  ;;  %v202_v35 = vsub.f32 1.0, %v327_v30 }
  0x26   : > { %v205_v34 = vmul.f32 %v201_v28, %v185_v20  ;;  %v210_v36 = vmul.f32 0.0, %v327_v30  ;;  %v203_v37 = vsub.f32 1.0, %v328_v31  ;;  %v211_v38 = vmul.f32 0.0, %v328_v31 }
  0x27   : > { %343 = vst [vmem:[%s435_s17] sm:$0xff] %v342_v32   ;;  %v345_v39 = vpack.c.bf16 %v328_v31, %v327_v30  ;;  %v212_v40 = vadd.f32 %v208_v27, %v204_v33  ;;  %v206_v42 = vmul.f32 %v202_v35, %v186_v21 }
  0x28   : > { %v213_v41 = vadd.f32 %v209_v29, %v205_v34  ;;  %v207_v43 = vmul.f32 %v203_v37, %v187_v22 }
  0x29   : > { %348 = vst [vmem:[%s435_s17 + $0x8] sm:$0xff] %v345_v39   ;;  %v214_v44 = vadd.f32 %v210_v36, %v206_v42 }
  0x2a   : > { %216 = vst [vmem:[#allocation2 + $0x10] sm:$0xff] %v212_v40  ;;  %v215_v45 = vadd.f32 %v211_v38, %v207_v43 }
  0x2b   : > { %217 = vst [vmem:[#allocation2] sm:$0xff] %v213_v41 }
  0x2c   : > { %218 = vst [vmem:[#allocation2 + $0x18] sm:$0xff] %v214_v44 }
  0x2d   : > { %219 = vst [vmem:[#allocation2 + $0x8] sm:$0xff] %v215_v45 }
  0x2e PF: > { %s11_s8 = sadd.s32 1, %s397_s8   ;;  %s450_s6 = smov %s393_s7 }
  0x2f   : > { %p8_p6 = scmp.ge.s32.totalorder %s11_s8, 6   ;;  %s451_s7 = smov %s453_s9 }
  0x31   :  { %10 = sbr.rel (!%p8_p6) target bundleno = 2 (0x2), region = 58 }

// kernel: multi_step_cifar10dvs_forward.20
= control target key start
LH: loop header
LB: loop body
LE: loop exit
PB: predicated region body
PF: predicated region fallthrough
CT: control target
= control target key end

     0   :  { %s1641_s12 = smov 0   ;;  %s1643_s13 = smov 0   ;;  %s1993_s0 = inlined_call_operand.vmem [shape: bf16[8,512], index: 0, kind: input, shape index: {}]   ;;  %s1994_s1 = inlined_call_operand.vmem [shape: bf16[512,512], index: 1, kind: input, shape index: {}]   ;;  %s1995_s2 = inlined_call_operand.vmem [shape: f32[1,512], index: 2, kind: input, shape index: {}]   ;;  %s1996_s3 = inlined_call_operand.vmem [shape: bf16[8,512], index: 3, kind: output, shape index: {}]  }
   0x1   :  { %s1645_s14 = smov 0   ;;  %s1647_s15 = smov 0  }
   0x2   :  { %s1649_s16 = smov 0  }
   0x3 LB: > { %s28_s17 = sadd.s32 1, %s1615_s15  ;;  %p76_p1 = scmp.ne.s32.totalorder %s1607_s13, %s1603_s12  ;;  %s1619_s16 = sphi %s1649_s16, %s13_s16   ;;  %s1615_s15 = sphi %s1647_s15, %s2000_s15   ;;  %s1611_s14 = sphi %s1645_s14, %s1999_s14   ;;  %s1607_s13 = sphi %s1643_s13, %s1998_s13   ;;  %s1603_s12 = sphi %s1641_s12, %s1997_s12  }
   0x4   : > { %p30_p0 = scmp.ge.s32.totalorder %s28_s17, 2  ;;  %p77_p2 = scmp.eq.s32.totalorder %s1619_s16, 0 }
   0x5   : > { %s69_s19 = sadd.s32 1, %s1607_s13  ;;  %p1209_p5 = scmp.ge.s32.totalorder %s1619_s16, 2 }
   0x6   : > { %s2002_s17 = smov (%p30_p0, %s28_s17), 0  ;;  %p78_p3 = por %p77_p2, %p76_p1 }
   0x7   : > { %s65_s18 = ssub.s32 %s1615_s15, %s2002_s17  ;;  %169 = sbr.rel (%p1209_p5) target bundleno = 80 (0x50), region = 20 }
   0x8   : > { %p67_p4 = scmp.eq.s32.totalorder %s65_s18, 0 }
   0xa   : > { %s1676_s20 = scalar_select %p67_p4, %s1607_s13, %s69_s19  }
   0xc   : > { %172 = sbr.rel (!%p78_p3) target bundleno = 80 (0x50), region = 24  ;;  %s174_s21 = sand.u32 (%p78_p3), 1, %s1607_s13  }
   0xd   : > { %s1476_s22 = sshll.u32 (%p78_p3), %s1615_s15, 3  ;;  %s1210_s23 = sshll.u32 (%p78_p3), %s174_s21, 9 }
   0xe   : > { %s1684_s26 = scalar_lea.vmem (%p78_p3), %s1994_s1, %s1476_s22  ;;  %s1689_s27 = scalar_lea.vmem (%p78_p3), [#allocation3], %s1210_s23 }
   0xf   : > { %v337_v0 = vld [vmem:[%s1684_s26] sm:$0xff] (%p78_p3)  ;;  %v339_v1 = vld [vmem:[%s1684_s26 + $0x10] sm:$0xff] (%p78_p3) }
  0x10   : > { %v341_v2 = vld [vmem:[%s1684_s26 + $0x20] sm:$0xff] (%p78_p3)  ;;  %338 = vst [vmem:[%s1689_s27] sm:$0xff] (%p78_p3), %v337_v0  ;;  %v343_v3 = vld [vmem:[%s1684_s26 + $0x30] sm:$0xff] (%p78_p3) }
  0x11   : > { %340 = vst [vmem:[%s1689_s27 + $0x8] sm:$0xff] %v339_v1  ;;  %v345_v4 = vld [vmem:[%s1684_s26 + $0x40] sm:$0xff]  ;;  %v347_v5 = vld [vmem:[%s1684_s26 + $0x50] sm:$0xff] }
  0x12   : > { %342 = vst [vmem:[%s1689_s27 + $0x10] sm:$0xff] %v341_v2  ;;  %v349_v6 = vld [vmem:[%s1684_s26 + $0x60] sm:$0xff]  ;;  %v351_v7 = vld [vmem:[%s1684_s26 + $0x70] sm:$0xff] }
  0x13   : > { %344 = vst [vmem:[%s1689_s27 + $0x18] sm:$0xff] %v343_v3  ;;  %v353_v8 = vld [vmem:[%s1684_s26 + $0x80] sm:$0xff]  ;;  %v355_v9 = vld [vmem:[%s1684_s26 + $0x90] sm:$0xff] }
  0x14   : > { %346 = vst [vmem:[%s1689_s27 + $0x20] sm:$0xff] %v345_v4  ;;  %v357_v10 = vld [vmem:[%s1684_s26 + $0xa0] sm:$0xff]  ;;  %v359_v11 = vld [vmem:[%s1684_s26 + $0xb0] sm:$0xff] }
  0x15   : > { %348 = vst [vmem:[%s1689_s27 + $0x28] sm:$0xff] %v347_v5  ;;  %v361_v12 = vld [vmem:[%s1684_s26 + $0xc0] sm:$0xff]  ;;  %v363_v13 = vld [vmem:[%s1684_s26 + $0xd0] sm:$0xff] }
  0x16   : > { %350 = vst [vmem:[%s1689_s27 + $0x30] sm:$0xff] %v349_v6  ;;  %v365_v14 = vld [vmem:[%s1684_s26 + $0xe0] sm:$0xff]  ;;  %v367_v15 = vld [vmem:[%s1684_s26 + $0xf0] sm:$0xff] }
  0x17   : > { %352 = vst [vmem:[%s1689_s27 + $0x38] sm:$0xff] %v351_v7  ;;  %v369_v16 = vld [vmem:[%s1684_s26 + $0x100] sm:$0xff]  ;;  %v371_v17 = vld [vmem:[%s1684_s26 + $0x110] sm:$0xff] }
  0x18   : > { %354 = vst [vmem:[%s1689_s27 + $0x40] sm:$0xff] %v353_v8  ;;  %v373_v18 = vld [vmem:[%s1684_s26 + $0x120] sm:$0xff]  ;;  %v375_v19 = vld [vmem:[%s1684_s26 + $0x130] sm:$0xff] }
  0x19   : > { %356 = vst [vmem:[%s1689_s27 + $0x48] sm:$0xff] %v355_v9  ;;  %v377_v20 = vld [vmem:[%s1684_s26 + $0x140] sm:$0xff]  ;;  %v379_v21 = vld [vmem:[%s1684_s26 + $0x150] sm:$0xff] }
  0x1a   : > { %358 = vst [vmem:[%s1689_s27 + $0x50] sm:$0xff] %v357_v10  ;;  %v381_v22 = vld [vmem:[%s1684_s26 + $0x160] sm:$0xff]  ;;  %v383_v23 = vld [vmem:[%s1684_s26 + $0x170] sm:$0xff] }
  0x1b   : > { %360 = vst [vmem:[%s1689_s27 + $0x58] sm:$0xff] %v359_v11  ;;  %v385_v24 = vld [vmem:[%s1684_s26 + $0x180] sm:$0xff]  ;;  %v387_v25 = vld [vmem:[%s1684_s26 + $0x190] sm:$0xff] }
  0x1c   : > { %362 = vst [vmem:[%s1689_s27 + $0x60] sm:$0xff] %v361_v12  ;;  %v389_v26 = vld [vmem:[%s1684_s26 + $0x1a0] sm:$0xff]  ;;  %v391_v27 = vld [vmem:[%s1684_s26 + $0x1b0] sm:$0xff] }
  0x1d   : > { %364 = vst [vmem:[%s1689_s27 + $0x68] sm:$0xff] %v363_v13  ;;  %v393_v28 = vld [vmem:[%s1684_s26 + $0x1c0] sm:$0xff]  ;;  %v395_v29 = vld [vmem:[%s1684_s26 + $0x1d0] sm:$0xff] }
  0x1e   : > { %366 = vst [vmem:[%s1689_s27 + $0x70] sm:$0xff] %v365_v14  ;;  %v397_v30 = vld [vmem:[%s1684_s26 + $0x1e0] sm:$0xff]  ;;  %v399_v31 = vld [vmem:[%s1684_s26 + $0x1f0] sm:$0xff] }
  0x1f   : > { %368 = vst [vmem:[%s1689_s27 + $0x78] sm:$0xff] %v367_v15  ;;  %v401_v32 = vld [vmem:[%s1684_s26 + $0x200] sm:$0xff]  ;;  %v403_v33 = vld [vmem:[%s1684_s26 + $0x210] sm:$0xff] }
  0x20   : > { %370 = vst [vmem:[%s1689_s27 + $0x80] sm:$0xff] %v369_v16  ;;  %v405_v34 = vld [vmem:[%s1684_s26 + $0x220] sm:$0xff]  ;;  %v407_v35 = vld [vmem:[%s1684_s26 + $0x230] sm:$0xff] }
  0x21   : > { %372 = vst [vmem:[%s1689_s27 + $0x88] sm:$0xff] %v371_v17  ;;  %v409_v36 = vld [vmem:[%s1684_s26 + $0x240] sm:$0xff]  ;;  %v411_v37 = vld [vmem:[%s1684_s26 + $0x250] sm:$0xff] }
  0x22   : > { %374 = vst [vmem:[%s1689_s27 + $0x90] sm:$0xff] %v373_v18  ;;  %v413_v38 = vld [vmem:[%s1684_s26 + $0x260] sm:$0xff]  ;;  %v415_v39 = vld [vmem:[%s1684_s26 + $0x270] sm:$0xff] }
  0x23   : > { %376 = vst [vmem:[%s1689_s27 + $0x98] sm:$0xff] %v375_v19  ;;  %v417_v40 = vld [vmem:[%s1684_s26 + $0x280] sm:$0xff]  ;;  %v419_v41 = vld [vmem:[%s1684_s26 + $0x290] sm:$0xff] }
  0x24   : > { %378 = vst [vmem:[%s1689_s27 + $0xa0] sm:$0xff] %v377_v20  ;;  %v421_v42 = vld [vmem:[%s1684_s26 + $0x2a0] sm:$0xff]  ;;  %v423_v43 = vld [vmem:[%s1684_s26 + $0x2b0] sm:$0xff] }
  0x25   : > { %380 = vst [vmem:[%s1689_s27 + $0xa8] sm:$0xff] %v379_v21  ;;  %v425_v44 = vld [vmem:[%s1684_s26 + $0x2c0] sm:$0xff]  ;;  %v427_v45 = vld [vmem:[%s1684_s26 + $0x2d0] sm:$0xff] }
  0x26   : > { %382 = vst [vmem:[%s1689_s27 + $0xb0] sm:$0xff] %v381_v22  ;;  %v429_v46 = vld [vmem:[%s1684_s26 + $0x2e0] sm:$0xff]  ;;  %v431_v47 = vld [vmem:[%s1684_s26 + $0x2f0] sm:$0xff] }
  0x27   : > { %384 = vst [vmem:[%s1689_s27 + $0xb8] sm:$0xff] %v383_v23  ;;  %v433_v48 = vld [vmem:[%s1684_s26 + $0x300] sm:$0xff]  ;;  %v435_v49 = vld [vmem:[%s1684_s26 + $0x310] sm:$0xff] }
  0x28   : > { %386 = vst [vmem:[%s1689_s27 + $0xc0] sm:$0xff] %v385_v24  ;;  %v437_v50 = vld [vmem:[%s1684_s26 + $0x320] sm:$0xff]  ;;  %v439_v51 = vld [vmem:[%s1684_s26 + $0x330] sm:$0xff] }
  0x29   : > { %388 = vst [vmem:[%s1689_s27 + $0xc8] sm:$0xff] %v387_v25  ;;  %v441_v52 = vld [vmem:[%s1684_s26 + $0x340] sm:$0xff]  ;;  %v443_v53 = vld [vmem:[%s1684_s26 + $0x350] sm:$0xff] }
  0x2a   : > { %390 = vst [vmem:[%s1689_s27 + $0xd0] sm:$0xff] %v389_v26  ;;  %v445_v54 = vld [vmem:[%s1684_s26 + $0x360] sm:$0xff]  ;;  %v447_v55 = vld [vmem:[%s1684_s26 + $0x370] sm:$0xff] }
  0x2b   : > { %392 = vst [vmem:[%s1689_s27 + $0xd8] sm:$0xff] %v391_v27  ;;  %v449_v56 = vld [vmem:[%s1684_s26 + $0x380] sm:$0xff]  ;;  %v451_v57 = vld [vmem:[%s1684_s26 + $0x390] sm:$0xff] }
  0x2c   : > { %394 = vst [vmem:[%s1689_s27 + $0xe0] sm:$0xff] %v393_v28  ;;  %v453_v58 = vld [vmem:[%s1684_s26 + $0x3a0] sm:$0xff]  ;;  %v455_v59 = vld [vmem:[%s1684_s26 + $0x3b0] sm:$0xff] }
  0x2d   : > { %396 = vst [vmem:[%s1689_s27 + $0xe8] sm:$0xff] %v395_v29  ;;  %v457_v60 = vld [vmem:[%s1684_s26 + $0x3c0] sm:$0xff]  ;;  %v459_v61 = vld [vmem:[%s1684_s26 + $0x3d0] sm:$0xff] }
  0x2e   : > { %398 = vst [vmem:[%s1689_s27 + $0xf0] sm:$0xff] %v397_v30  ;;  %v461_v62 = vld [vmem:[%s1684_s26 + $0x3e0] sm:$0xff]  ;;  %v463_v63 = vld [vmem:[%s1684_s26 + $0x3f0] sm:$0xff] }
  0x2f   : > { %400 = vst [vmem:[%s1689_s27 + $0xf8] sm:$0xff] %v399_v31 }
  0x30   : > { %402 = vst [vmem:[%s1689_s27 + $0x100] sm:$0xff] %v401_v32 }
  0x31   : > { %404 = vst [vmem:[%s1689_s27 + $0x108] sm:$0xff] %v403_v33 }
  0x32   : > { %406 = vst [vmem:[%s1689_s27 + $0x110] sm:$0xff] %v405_v34 }
  0x33   : > { %408 = vst [vmem:[%s1689_s27 + $0x118] sm:$0xff] %v407_v35 }
  0x34   : > { %410 = vst [vmem:[%s1689_s27 + $0x120] sm:$0xff] %v409_v36 }
  0x35   : > { %412 = vst [vmem:[%s1689_s27 + $0x128] sm:$0xff] %v411_v37 }
  0x36   : > { %414 = vst [vmem:[%s1689_s27 + $0x130] sm:$0xff] %v413_v38 }
  0x37   : > { %416 = vst [vmem:[%s1689_s27 + $0x138] sm:$0xff] %v415_v39 }
  0x38   : > { %418 = vst [vmem:[%s1689_s27 + $0x140] sm:$0xff] %v417_v40 }
  0x39   : > { %420 = vst [vmem:[%s1689_s27 + $0x148] sm:$0xff] %v419_v41 }
  0x3a   : > { %422 = vst [vmem:[%s1689_s27 + $0x150] sm:$0xff] %v421_v42 }
  0x3b   : > { %424 = vst [vmem:[%s1689_s27 + $0x158] sm:$0xff] %v423_v43 }
  0x3c   : > { %426 = vst [vmem:[%s1689_s27 + $0x160] sm:$0xff] %v425_v44 }
  0x3d   : > { %428 = vst [vmem:[%s1689_s27 + $0x168] sm:$0xff] %v427_v45 }
  0x3e   : > { %430 = vst [vmem:[%s1689_s27 + $0x170] sm:$0xff] %v429_v46 }
  0x3f   : > { %432 = vst [vmem:[%s1689_s27 + $0x178] sm:$0xff] %v431_v47 }
  0x40   : > { %434 = vst [vmem:[%s1689_s27 + $0x180] sm:$0xff] %v433_v48 }
  0x41   : > { %436 = vst [vmem:[%s1689_s27 + $0x188] sm:$0xff] %v435_v49 }
  0x42   : > { %438 = vst [vmem:[%s1689_s27 + $0x190] sm:$0xff] %v437_v50 }
  0x43   : > { %440 = vst [vmem:[%s1689_s27 + $0x198] sm:$0xff] %v439_v51 }
  0x44   : > { %442 = vst [vmem:[%s1689_s27 + $0x1a0] sm:$0xff] %v441_v52 }
  0x45   : > { %444 = vst [vmem:[%s1689_s27 + $0x1a8] sm:$0xff] %v443_v53 }
  0x46   : > { %446 = vst [vmem:[%s1689_s27 + $0x1b0] sm:$0xff] %v445_v54 }
  0x47   : > { %448 = vst [vmem:[%s1689_s27 + $0x1b8] sm:$0xff] %v447_v55 }
  0x48   : > { %450 = vst [vmem:[%s1689_s27 + $0x1c0] sm:$0xff] %v449_v56 }
  0x49   : > { %452 = vst [vmem:[%s1689_s27 + $0x1c8] sm:$0xff] %v451_v57 }
  0x4a   : > { %454 = vst [vmem:[%s1689_s27 + $0x1d0] sm:$0xff] %v453_v58 }
  0x4b   : > { %456 = vst [vmem:[%s1689_s27 + $0x1d8] sm:$0xff] %v455_v59 }
  0x4c   : > { %458 = vst [vmem:[%s1689_s27 + $0x1e0] sm:$0xff] %v457_v60 }
  0x4d   : > { %460 = vst [vmem:[%s1689_s27 + $0x1e8] sm:$0xff] %v459_v61 }
  0x4e   : > { %462 = vst [vmem:[%s1689_s27 + $0x1f0] sm:$0xff] %v461_v62 }
  0x4f   : > { %464 = vst [vmem:[%s1689_s27 + $0x1f8] sm:$0xff] %v463_v63 }
  0x50 PF: > { %p1213_p6 = scmp.ge.s32.totalorder %s1619_s16, 1  ;;  %p477_p7 = scmp.lt.s32.totalorder %s1619_s16, 3 }
  0x52   : > { %p478_p8 = pnand %p1213_p6, %p477_p7 }
  0x53   : > { %s484_s28 = sand.u32 (!%p478_p8), 1, %s1603_s12   ;;  %s1215_s8 = sshll.u32 (!%p478_p8), %s1611_s14, 1 }
  0x54   : > { %481 = sbr.rel (%p478_p8) target bundleno = 298 (0x12a), region = 66  ;;  %s1214_s29 = sshll.u32 (!%p478_p8), %s484_s28, 9 }
  0x55   : > { %s1819_s30 = scalar_lea.vmem (!%p478_p8), [#allocation3], %s1214_s29  ;;  %p537_p9 = scmp.lt.s32.totalorder (!%p478_p8), %s1215_s8, 3 }
  0x59   : > { %v1276_v0 = vld [vmem:[%s1819_s30 + $0x70] sm:$0xf]  ;;  %v1492_v1 = vld [vmem:[%s1819_s30 + $0x74] sm:$0xf0]  ;;  %v1268_v11 = vld [vmem:[%s1819_s30 + $0x60] sm:$0xf] }
  0x5a   : > { %v1340_v2 = vld [vmem:[%s1819_s30 + $0xf0] sm:$0xf]  ;;  %v1277_v3 = vor.u32 %v1492_v1, %v1276_v0  ;;  %v1508_v4 = vld [vmem:[%s1819_s30 + $0xf4] sm:$0xf0]  ;;  %v1490_v13 = vld [vmem:[%s1819_s30 + $0x64] sm:$0xf0] }
  0x5b   : > { %v1404_v5 = vld [vmem:[%s1819_s30 + $0x170] sm:$0xf]  ;;  %v1524_v6 = vld [vmem:[%s1819_s30 + $0x174] sm:$0xf0]  ;;  %v1341_v7 = vor.u32 %v1508_v4, %v1340_v2  ;;  %v1332_v14 = vld [vmem:[%s1819_s30 + $0xe0] sm:$0xf]  ;;  %v1269_v16 = vor.u32 %v1490_v13, %v1268_v11 }
  0x5c   : > { %v1405_v8 = vor.u32 %v1524_v6, %v1404_v5  ;;  %v1468_v9 = vld [vmem:[%s1819_s30 + $0x1f0] sm:$0xf]  ;;  %v1540_v10 = vld [vmem:[%s1819_s30 + $0x1f4] sm:$0xf0]  ;;  %959 = vmatpush.bf16.msra.mxu0 %v1277_v3  ;;  %v1506_v15 = vld [vmem:[%s1819_s30 + $0xe4] sm:$0xf0] }
  0x5d   : > { %v1469_v12 = vor.u32 %v1540_v10, %v1468_v9  ;;  %972 = vmatpush.bf16.msra.mxu1 %v1341_v7  ;;  %v1333_v17 = vor.u32 %v1506_v15, %v1332_v14  ;;  %v1396_v18 = vld [vmem:[%s1819_s30 + $0x160] sm:$0xf]  ;;  %v1522_v19 = vld [vmem:[%s1819_s30 + $0x164] sm:$0xf0]  ;;  %v1260_v23 = vld [vmem:[%s1819_s30 + $0x50] sm:$0xf] }
  0x5e   : > { %985 = vmatpush.bf16.msra.mxu2 %v1405_v8  ;;  %v1460_v20 = vld [vmem:[%s1819_s30 + $0x1e0] sm:$0xf]  ;;  %v1397_v21 = vor.u32 %v1522_v19, %v1396_v18  ;;  %v1538_v22 = vld [vmem:[%s1819_s30 + $0x1e4] sm:$0xf0]  ;;  %v1488_v24 = vld [vmem:[%s1819_s30 + $0x54] sm:$0xf0] }
  0x5f   : > { %998 = vmatpush.bf16.msra.mxu3 %v1469_v12  ;;  %v1461_v25 = vor.u32 %v1538_v22, %v1460_v20  ;;  %v1324_v26 = vld [vmem:[%s1819_s30 + $0xd0] sm:$0xf]  ;;  %v1504_v27 = vld [vmem:[%s1819_s30 + $0xd4] sm:$0xf0]  ;;  %v1261_v29 = vor.u32 %v1488_v24, %v1260_v23  ;;  %v1252_v35 = vld [vmem:[%s1819_s30 + $0x40] sm:$0xf] }
  0x60   : > { %v1388_v28 = vld [vmem:[%s1819_s30 + $0x150] sm:$0xf]  ;;  %960 = vmatpush.bf16.msra.mxu0 %v1269_v16  ;;  %v1520_v30 = vld [vmem:[%s1819_s30 + $0x154] sm:$0xf0]  ;;  %v1325_v33 = vor.u32 %v1504_v27, %v1324_v26  ;;  %v1486_v36 = vld [vmem:[%s1819_s30 + $0x44] sm:$0xf0] }
  0x61   : > { %v1452_v31 = vld [vmem:[%s1819_s30 + $0x1d0] sm:$0xf]  ;;  %v1536_v32 = vld [vmem:[%s1819_s30 + $0x1d4] sm:$0xf0]  ;;  %973 = vmatpush.bf16.msra.mxu1 %v1333_v17  ;;  %v1389_v34 = vor.u32 %v1520_v30, %v1388_v28  ;;  %v1316_v37 = vld [vmem:[%s1819_s30 + $0xc0] sm:$0xf]  ;;  %v1253_v44 = vor.u32 %v1486_v36, %v1252_v35 }
  0x62   : > { %986 = vmatpush.bf16.msra.mxu2 %v1397_v21  ;;  %v1453_v38 = vor.u32 %v1536_v32, %v1452_v31  ;;  %v1502_v39 = vld [vmem:[%s1819_s30 + $0xc4] sm:$0xf0]  ;;  %v1380_v40 = vld [vmem:[%s1819_s30 + $0x140] sm:$0xf]  ;;  %v1244_v47 = vld [vmem:[%s1819_s30 + $0x30] sm:$0xf] }
  0x63   : > { %999 = vmatpush.bf16.msra.mxu3 %v1461_v25  ;;  %v1518_v41 = vld [vmem:[%s1819_s30 + $0x144] sm:$0xf0]  ;;  %v1444_v42 = vld [vmem:[%s1819_s30 + $0x1c0] sm:$0xf]  ;;  %v1317_v45 = vor.u32 %v1502_v39, %v1316_v37  ;;  %v1484_v48 = vld [vmem:[%s1819_s30 + $0x34] sm:$0xf0] }
  0x64   : > { %v1534_v43 = vld [vmem:[%s1819_s30 + $0x1c4] sm:$0xf0]  ;;  %961 = vmatpush.bf16.msra.mxu0 %v1261_v29  ;;  %v1381_v46 = vor.u32 %v1518_v41, %v1380_v40  ;;  %v1308_v49 = vld [vmem:[%s1819_s30 + $0xb0] sm:$0xf]  ;;  %v1500_v51 = vld [vmem:[%s1819_s30 + $0xb4] sm:$0xf0]  ;;  %v1245_v56 = vor.u32 %v1484_v48, %v1244_v47 }
  0x65   : > { %974 = vmatpush.bf16.msra.mxu1 %v1325_v33  ;;  %v1445_v50 = vor.u32 %v1534_v43, %v1444_v42  ;;  %v1372_v52 = vld [vmem:[%s1819_s30 + $0x130] sm:$0xf]  ;;  %v1516_v53 = vld [vmem:[%s1819_s30 + $0x134] sm:$0xf0]  ;;  %v1309_v57 = vor.u32 %v1500_v51, %v1308_v49  ;;  %v1236_v59 = vld [vmem:[%s1819_s30 + $0x20] sm:$0xf] }
  0x66   : > { %987 = vmatpush.bf16.msra.mxu2 %v1389_v34  ;;  %v1436_v54 = vld [vmem:[%s1819_s30 + $0x1b0] sm:$0xf]  ;;  %v1532_v55 = vld [vmem:[%s1819_s30 + $0x1b4] sm:$0xf0]  ;;  %v1373_v58 = vor.u32 %v1516_v53, %v1372_v52  ;;  %v1482_v60 = vld [vmem:[%s1819_s30 + $0x24] sm:$0xf0] }
  0x67   : > { %1000 = vmatpush.bf16.msra.mxu3 %v1453_v38  ;;  %v1300_v61 = vld [vmem:[%s1819_s30 + $0xa0] sm:$0xf]  ;;  %v1437_v62 = vor.u32 %v1532_v55, %v1436_v54  ;;  %v1498_v63 = vld [vmem:[%s1819_s30 + $0xa4] sm:$0xf0]  ;;  %v1237_v4 = vor.u32 %v1482_v60, %v1236_v59  ;;  %v1228_v7 = vld [vmem:[%s1819_s30 + $0x10] sm:$0xf] }
  0x68   : > { %962 = vmatpush.bf16.msra.mxu0 %v1253_v44  ;;  %v1364_v0 = vld [vmem:[%s1819_s30 + $0x120] sm:$0xf]  ;;  %v1514_v1 = vld [vmem:[%s1819_s30 + $0x124] sm:$0xf0]  ;;  %v1301_v5 = vor.u32 %v1498_v63, %v1300_v61  ;;  %v1480_v8 = vld [vmem:[%s1819_s30 + $0x14] sm:$0xf0] }
  0x69   : > { %975 = vmatpush.bf16.msra.mxu1 %v1317_v45  ;;  %v1428_v2 = vld [vmem:[%s1819_s30 + $0x1a0] sm:$0xf]  ;;  %v1530_v3 = vld [vmem:[%s1819_s30 + $0x1a4] sm:$0xf0]  ;;  %v1365_v6 = vor.u32 %v1514_v1, %v1364_v0  ;;  %v1292_v9 = vld [vmem:[%s1819_s30 + $0x90] sm:$0xf]  ;;  %v1229_v16 = vor.u32 %v1480_v8, %v1228_v7 }
  0x6a   : > { %988 = vmatpush.bf16.msra.mxu2 %v1381_v46  ;;  %v1429_v10 = vor.u32 %v1530_v3, %v1428_v2  ;;  %v1496_v11 = vld [vmem:[%s1819_s30 + $0x94] sm:$0xf0]  ;;  %v1356_v12 = vld [vmem:[%s1819_s30 + $0x110] sm:$0xf]  ;;  %v1220_v17 = vld [vmem:[%s1819_s30] sm:$0xf] }
  0x6b   : > { %1001 = vmatpush.bf16.msra.mxu3 %v1445_v50  ;;  %v1512_v13 = vld [vmem:[%s1819_s30 + $0x114] sm:$0xf0]  ;;  %v1420_v14 = vld [vmem:[%s1819_s30 + $0x190] sm:$0xf]  ;;  %v1478_v18 = vld [vmem:[%s1819_s30 + $0x4] sm:$0xf0]  ;;  %v1293_v20 = vor.u32 %v1496_v11, %v1292_v9 }
  0x6c   : > { %963 = vmatpush.bf16.msra.mxu0 %v1245_v56  ;;  %v1528_v15 = vld [vmem:[%s1819_s30 + $0x194] sm:$0xf0]  ;;  %v1284_v19 = vld [vmem:[%s1819_s30 + $0x80] sm:$0xf]  ;;  %v1357_v21 = vor.u32 %v1512_v13, %v1356_v12  ;;  %v1494_v22 = vld [vmem:[%s1819_s30 + $0x84] sm:$0xf0]  ;;  %v1221_v32 = vor.u32 %v1478_v18, %v1220_v17 }
  0x6d   : > { %976 = vmatpush.bf16.msra.mxu1 %v1309_v57  ;;  %v1348_v23 = vld [vmem:[%s1819_s30 + $0x100] sm:$0xf]  ;;  %v1510_v24 = vld [vmem:[%s1819_s30 + $0x104] sm:$0xf0]  ;;  %v1421_v25 = vor.u32 %v1528_v15, %v1420_v14  ;;  %v1491_v28 = vld [vmem:[%s1819_s30 + $0x74] sm:$0xf]  ;;  %v1285_v37 = vor.u32 %v1494_v22, %v1284_v19 }
  0x6e   : > { %989 = vmatpush.bf16.msra.mxu2 %v1373_v58  ;;  %v1412_v26 = vld [vmem:[%s1819_s30 + $0x180] sm:$0xf]  ;;  %v1526_v27 = vld [vmem:[%s1819_s30 + $0x184] sm:$0xf0]  ;;  %v1278_v29 = vld [vmem:[%s1819_s30 + $0x78] sm:$0xf0]  ;;  %v1349_v38 = vor.u32 %v1510_v24, %v1348_v23 }
  0x6f   : > { %1002 = vmatpush.bf16.msra.mxu3 %v1437_v62  ;;  %v1507_v30 = vld [vmem:[%s1819_s30 + $0xf4] sm:$0xf]  ;;  %v560_v31 = vld [vmem:[%s1993_s0 + $0x8] sm:$0xff]  ;;  %v1342_v33 = vld [vmem:[%s1819_s30 + $0xf8] sm:$0xf0]  ;;  %v1413_v42 = vor.u32 %v1526_v27, %v1412_v26  ;;  %v1281_v43 = vor.u32 %v1491_v28, %v1278_v29  ;;  %s2004_s8 = smov (!%p537_p9, %s1215_s8), 3 }
  0x70   : > { %964 = vmatpush.bf16.msra.mxu0 %v1237_v4  ;;  %v1523_v34 = vld [vmem:[%s1819_s30 + $0x174] sm:$0xf]  ;;  %v1406_v35 = vld [vmem:[%s1819_s30 + $0x178] sm:$0xf0]  ;;  %v629_v36 = vunpack.c.l.b16 %v560_v31  ;;  %v630_v41 = vunpack.c.h.b16 %v560_v31  ;;  %v559_v44 = vld [vmem:[%s1993_s0] sm:$0xff]  ;;  %v1345_v45 = vor.u32 %v1507_v30, %v1342_v33  ;;  %s539_s11 = scalar_lea.vmem %s1995_s2, %s2004_s8  ;;  %s1217_s12 = sshll.u32 %s2004_s8, 2 }
  0x71   : > { %977 = vmatpush.bf16.msra.mxu1 %v1301_v5  ;;  %v1539_v39 = vld [vmem:[%s1819_s30 + $0x1f4] sm:$0xf]  ;;  %v1470_v40 = vld [vmem:[%s1819_s30 + $0x1f8] sm:$0xf0]  ;;  %v1409_v46 = vor.u32 %v1523_v34, %v1406_v35  ;;  %v1489_v47 = vld [vmem:[%s1819_s30 + $0x64] sm:$0xf]  ;;  %v627_v50 = vunpack.c.l.b16 %v559_v44  ;;  %v628_v51 = vunpack.c.h.b16 %v559_v44  ;;  %s549_s19 = scalar_lea.vmem %s1996_s3, %s1217_s12 }
  0x72   : > { %990 = vmatpush.bf16.msra.mxu2 %v1365_v6  ;;  %v1270_v48 = vld [vmem:[%s1819_s30 + $0x68] sm:$0xf0]  ;;  %v1505_v49 = vld [vmem:[%s1819_s30 + $0xe4] sm:$0xf]  ;;  %v1473_v52 = vor.u32 %v1539_v39, %v1470_v40  ;;  %v1905_v56 = vpack.c.b16 %v629_v36, %v629_v36  ;;  %v1909_v59 = vpack.c.b16 %v630_v41, %v630_v41  ;;  %v1487_v1 = vld [vmem:[%s1819_s30 + $0x54] sm:$0xf] }
  0x73   : > { %1003 = vmatpush.bf16.msra.mxu3 %v1429_v10  ;;  %v1334_v53 = vld [vmem:[%s1819_s30 + $0xe8] sm:$0xf0]  ;;  %v1521_v54 = vld [vmem:[%s1819_s30 + $0x164] sm:$0xf]  ;;  %v1911_v60 = vpack.c.b16 %v627_v50, %v627_v50  ;;  %v1273_v61 = vor.u32 %v1489_v47, %v1270_v48  ;;  %v1913_v62 = vpack.c.b16 %v628_v51, %v628_v51  ;;  %v1262_v2 = vld [vmem:[%s1819_s30 + $0x58] sm:$0xf0] }
  0x74   : > { %965 = vmatpush.bf16.msra.mxu0 %v1229_v16  ;;  %v1398_v55 = vld [vmem:[%s1819_s30 + $0x168] sm:$0xf0]  ;;  %v1537_v57 = vld [vmem:[%s1819_s30 + $0x1e4] sm:$0xf]  ;;  %v1337_v63 = vor.u32 %v1505_v49, %v1334_v53  ;;  %v1503_v3 = vld [vmem:[%s1819_s30 + $0xd4] sm:$0xf]  ;;  %v1265_v10 = vor.u32 %v1487_v1, %v1262_v2 }
  0x75   : > { %978 = vmatpush.bf16.msra.mxu1 %v1293_v20  ;;  %v1462_v58 = vld [vmem:[%s1819_s30 + $0x1e8] sm:$0xf0]  ;;  %v1401_v0 = vor.u32 %v1521_v54, %v1398_v55  ;;  %v1326_v5 = vld [vmem:[%s1819_s30 + $0xd8] sm:$0xf0]  ;;  %v1519_v6 = vld [vmem:[%s1819_s30 + $0x154] sm:$0xf] }
  0x76   : > { %991 = vmatpush.bf16.msra.mxu2 %v1357_v21  ;;  %v1465_v4 = vor.u32 %v1537_v57, %v1462_v58  ;;  %v1390_v7 = vld [vmem:[%s1819_s30 + $0x158] sm:$0xf0]  ;;  %v1535_v8 = vld [vmem:[%s1819_s30 + $0x1d4] sm:$0xf]  ;;  %v1329_v11 = vor.u32 %v1503_v3, %v1326_v5  ;;  %v1485_v13 = vld [vmem:[%s1819_s30 + $0x44] sm:$0xf] }
  0x77   : > { %1004 = vmatpush.bf16.msra.mxu3 %v1421_v25  ;;  %v1454_v9 = vld [vmem:[%s1819_s30 + $0x1d8] sm:$0xf0]  ;;  %v1393_v12 = vor.u32 %v1519_v6, %v1390_v7  ;;  %v1254_v14 = vld [vmem:[%s1819_s30 + $0x48] sm:$0xf0]  ;;  %v1501_v15 = vld [vmem:[%s1819_s30 + $0xc4] sm:$0xf] }
  0x78   : > { %966 = vmatpush.bf16.msra.mxu0 %v1221_v32  ;;  %v1457_v16 = vor.u32 %v1535_v8, %v1454_v9  ;;  %v1318_v17 = vld [vmem:[%s1819_s30 + $0xc8] sm:$0xf0]  ;;  %v1517_v18 = vld [vmem:[%s1819_s30 + $0x144] sm:$0xf]  ;;  %v1257_v22 = vor.u32 %v1485_v13, %v1254_v14  ;;  %v1483_v25 = vld [vmem:[%s1819_s30 + $0x34] sm:$0xf] }
  0x79   : > { %979 = vmatpush.bf16.msra.mxu1 %v1285_v37  ;;  %v1382_v19 = vld [vmem:[%s1819_s30 + $0x148] sm:$0xf0]  ;;  %v1533_v20 = vld [vmem:[%s1819_s30 + $0x1c4] sm:$0xf]  ;;  %v1321_v23 = vor.u32 %v1501_v15, %v1318_v17  ;;  %v1246_v26 = vld [vmem:[%s1819_s30 + $0x38] sm:$0xf0] }
  0x7a   : > { %992 = vmatpush.bf16.msra.mxu2 %v1349_v38  ;;  %v1446_v21 = vld [vmem:[%s1819_s30 + $0x1c8] sm:$0xf0]  ;;  %v1385_v24 = vor.u32 %v1517_v18, %v1382_v19  ;;  %v1499_v27 = vld [vmem:[%s1819_s30 + $0xb4] sm:$0xf]  ;;  %v1310_v29 = vld [vmem:[%s1819_s30 + $0xb8] sm:$0xf0]  ;;  %v1249_v34 = vor.u32 %v1483_v25, %v1246_v26 }
  0x7b   : > { %1005 = vmatpush.bf16.msra.mxu3 %v1413_v42  ;;  %967 = vmatmul.bf16.vlgmr.msra.gmra.mxu0 %v1911_v60  ;;  %v1449_v28 = vor.u32 %v1533_v20, %v1446_v21  ;;  %v1515_v30 = vld [vmem:[%s1819_s30 + $0x134] sm:$0xf]  ;;  %v1374_v31 = vld [vmem:[%s1819_s30 + $0x138] sm:$0xf0]  ;;  %v1313_v35 = vor.u32 %v1499_v27, %v1310_v29  ;;  %v1481_v37 = vld [vmem:[%s1819_s30 + $0x24] sm:$0xf] }
  0x7c   : > { %1011 = vmatpush.bf16.msrb.mxu0 %v1281_v43  ;;  %980 = vmatmul.bf16.vlgmr.msra.gmra.mxu1 %v1913_v62  ;;  %v1531_v32 = vld [vmem:[%s1819_s30 + $0x1b4] sm:$0xf]  ;;  %v1438_v33 = vld [vmem:[%s1819_s30 + $0x1b8] sm:$0xf0]  ;;  %v1377_v36 = vor.u32 %v1515_v30, %v1374_v31  ;;  %v1238_v38 = vld [vmem:[%s1819_s30 + $0x28] sm:$0xf0] }
  0x7d   : > { %1024 = vmatpush.bf16.msrb.mxu1 %v1345_v45  ;;  %993 = vmatmul.bf16.vlgmr.msra.gmra.mxu2 %v1905_v56  ;;  %v1497_v39 = vld [vmem:[%s1819_s30 + $0xa4] sm:$0xf]  ;;  %v1441_v40 = vor.u32 %v1531_v32, %v1438_v33  ;;  %v1302_v41 = vld [vmem:[%s1819_s30 + $0xa8] sm:$0xf0]  ;;  %v1479_v49 = vld [vmem:[%s1819_s30 + $0x14] sm:$0xf] }
  0x7e   : > { %1037 = vmatpush.bf16.msrb.mxu2 %v1409_v46  ;;  %1006 = vmatmul.bf16.vlgmr.msra.gmra.mxu3 %v1909_v59  ;;  %v1513_v42 = vld [vmem:[%s1819_s30 + $0x124] sm:$0xf]  ;;  %v1366_v43 = vld [vmem:[%s1819_s30 + $0x128] sm:$0xf0]  ;;  %v1241_v46 = vor.u32 %v1481_v37, %v1238_v38  ;;  %v1305_v47 = vor.u32 %v1497_v39, %v1302_v41  ;;  %v1230_v50 = vld [vmem:[%s1819_s30 + $0x18] sm:$0xf0] }
  0x7f   : > { %1050 = vmatpush.bf16.msrb.mxu3 %v1473_v52  ;;  %v1529_v44 = vld [vmem:[%s1819_s30 + $0x1a4] sm:$0xf]  ;;  %v1430_v45 = vld [vmem:[%s1819_s30 + $0x1a8] sm:$0xf0]  ;;  %v1369_v48 = vor.u32 %v1513_v42, %v1366_v43  ;;  %v1495_v51 = vld [vmem:[%s1819_s30 + $0x94] sm:$0xf] }
  0x80   : > { %1012 = vmatpush.bf16.msrb.mxu0 %v1273_v61  ;;  %v1433_v52 = vor.u32 %v1529_v44, %v1430_v45  ;;  %v1294_v53 = vld [vmem:[%s1819_s30 + $0x98] sm:$0xf0]  ;;  %v1511_v54 = vld [vmem:[%s1819_s30 + $0x114] sm:$0xf]  ;;  %v1233_v61 = vor.u32 %v1479_v49, %v1230_v50  ;;  %v1477_v1 = vld [vmem:[%s1819_s30 + $0x4] sm:$0xf] }
  0x81   : > { %1025 = vmatpush.bf16.msrb.mxu1 %v1337_v63  ;;  %v1358_v55 = vld [vmem:[%s1819_s30 + $0x118] sm:$0xf0]  ;;  %v1527_v57 = vld [vmem:[%s1819_s30 + $0x194] sm:$0xf]  ;;  %v1297_v63 = vor.u32 %v1495_v51, %v1294_v53  ;;  %v1222_v2 = vld [vmem:[%s1819_s30 + $0x8] sm:$0xf0] }
  0x82   : > { %1038 = vmatpush.bf16.msrb.mxu2 %v1401_v0  ;;  %v1422_v58 = vld [vmem:[%s1819_s30 + $0x198] sm:$0xf0]  ;;  %v1361_v0 = vor.u32 %v1511_v54, %v1358_v55  ;;  %v1493_v3 = vld [vmem:[%s1819_s30 + $0x84] sm:$0xf]  ;;  %v1286_v5 = vld [vmem:[%s1819_s30 + $0x88] sm:$0xf0] }
  0x83   : > { %1051 = vmatpush.bf16.msrb.mxu3 %v1465_v4  ;;  %v1425_v4 = vor.u32 %v1527_v57, %v1422_v58  ;;  %v1509_v6 = vld [vmem:[%s1819_s30 + $0x104] sm:$0xf]  ;;  %v1350_v7 = vld [vmem:[%s1819_s30 + $0x108] sm:$0xf0] }
  0x84   : > { %1013 = vmatpush.bf16.msrb.mxu0 %v1265_v10  ;;  %v1525_v8 = vld [vmem:[%s1819_s30 + $0x184] sm:$0xf]  ;;  %v1414_v9 = vld [vmem:[%s1819_s30 + $0x188] sm:$0xf0]  ;;  %v1225_v10 = vor.u32 %v1477_v1, %v1222_v2 }
  0x85   : > { %1026 = vmatpush.bf16.msrb.mxu1 %v1329_v11  ;;  %v1289_v11 = vor.u32 %v1493_v3, %v1286_v5  ;;  %v1417_v13 = vor.u32 %v1525_v8, %v1414_v9 }
  0x86   : > { %1039 = vmatpush.bf16.msrb.mxu2 %v1393_v12  ;;  %v1353_v12 = vor.u32 %v1509_v6, %v1350_v7 }
  0x87   : > { %1052 = vmatpush.bf16.msrb.mxu3 %v1457_v16 }
  0x88   : > { %1014 = vmatpush.bf16.msrb.mxu0 %v1257_v22 }
  0x89   : > { %1027 = vmatpush.bf16.msrb.mxu1 %v1321_v23 }
  0x8a   : > { %1040 = vmatpush.bf16.msrb.mxu2 %v1385_v24 }
  0x8b   : > { %1053 = vmatpush.bf16.msrb.mxu3 %v1449_v28 }
  0x8c   : > { %1015 = vmatpush.bf16.msrb.mxu0 %v1249_v34 }
  0x8d   : > { %1028 = vmatpush.bf16.msrb.mxu1 %v1313_v35 }
  0x8e   : > { %1041 = vmatpush.bf16.msrb.mxu2 %v1377_v36 }
  0x8f   : > { %1054 = vmatpush.bf16.msrb.mxu3 %v1441_v40 }
  0x90   : > { %1016 = vmatpush.bf16.msrb.mxu0 %v1241_v46 }
  0x91   : > { %1029 = vmatpush.bf16.msrb.mxu1 %v1305_v47 }
  0x92   : > { %1042 = vmatpush.bf16.msrb.mxu2 %v1369_v48 }
  0x93   : > { %1055 = vmatpush.bf16.msrb.mxu3 %v1433_v52 }
  0x94   : > { %1017 = vmatpush.bf16.msrb.mxu0 %v1233_v61 }
  0x95   : > { %1030 = vmatpush.bf16.msrb.mxu1 %v1297_v63 }
  0x96   : > { %1043 = vmatpush.bf16.msrb.mxu2 %v1361_v0 }
  0x97   : > { %1056 = vmatpush.bf16.msrb.mxu3 %v1425_v4 }
  0x98   : > { %1018 = vmatpush.bf16.msrb.mxu0 %v1225_v10 }
  0x99   : > { %1031 = vmatpush.bf16.msrb.mxu1 %v1289_v11 }
  0x9a   : > { %1044 = vmatpush.bf16.msrb.mxu2 %v1353_v12 }
  0x9b   : > { %1057 = vmatpush.bf16.msrb.mxu3 %v1417_v13  ;;  %1019 = vmatmul.bf16.vlgmr.msrb.gmra.mxu0 %v1911_v60 }
  0x9c   : > { %1032 = vmatmul.bf16.vlgmr.msrb.gmra.mxu1 %v1913_v62  ;;  %v1072_v62 = vld [vmem:[%s539_s11] sm:$0x3] }
  0x9d   : > { %1045 = vmatmul.bf16.vlgmr.msrb.gmra.mxu2 %v1905_v56  ;;  %v1074_v26 = vperm.slane %v1072_v62, 0  ;;  %v1075_v29 = vperm.slane %v1072_v62, 1 }
  0x9e   : > { %1058 = vmatmul.bf16.vlgmr.msrb.gmra.mxu3 %v1909_v59 }
  0xf8   : > { %v968_v14 = vpop.f32.mrf.mxu0 }
  0xf9   : > { %v981_v15 = vpop.f32.mrf.mxu1 }
  0xfa   : > { %v982_v22 = vadd.f32 %v981_v15, %v968_v14 }
 0x100   : > { %v994_v16 = vpop.f32.mrf.mxu2  ;;  %v970_v18 = vpop.f32.mrf.mxu0 }
 0x101   : > { %v1007_v17 = vpop.f32.mrf.mxu3  ;;  %v983_v19 = vpop.f32.mrf.mxu1  ;;  %v995_v56 = vadd.f32 %v994_v16, %v982_v22 }
 0x103   : > { %v1008_v25 = vadd.f32 %v1007_v17, %v995_v56 }
 0x105   : > { %v1078_v33 = vadd.f32 %v1074_v26, %v1008_v25 }
 0x108   : > { %v996_v20 = vpop.f32.mrf.mxu2 }
 0x109   : > { %v1009_v21 = vpop.f32.mrf.mxu3 }
 0x118   : > { %v1020_v23 = vpop.f32.mrf.mxu0 }
 0x119   : > { %v1033_v60 = vpop.f32.mrf.mxu1 }
 0x11a   : > { %v1034_v59 = vadd.f32 %v1033_v60, %v1020_v23 }
 0x120   : > { %v1046_v24 = vpop.f32.mrf.mxu2  ;;  %v1022_v30 = vpop.f32.mrf.mxu0 }
 0x121   : > { %v1047_v27 = vadd.f32 %v1046_v24, %v1034_v59  ;;  %v1059_v28 = vpop.f32.mrf.mxu3  ;;  %v1035_v31 = vpop.f32.mrf.mxu1 }
 0x123   : > { %v1060_v32 = vadd.f32 %v1059_v28, %v1047_v27 }
 0x125   : > { %v1079_v34 = vadd.f32 %v1075_v29, %v1060_v32 }
 0x127   : > { %v1080_v35 = vpack.c.bf16 %v1079_v34, %v1078_v33 }
 0x128   : > { %v1048_v36 = vpop.f32.mrf.mxu2 }
 0x129   : > { %1081 = vst [vmem:[%s549_s19] sm:$0xff] %v1080_v35  ;;  %v1061_v37 = vpop.f32.mrf.mxu3 }
 0x12a PF: > { %s13_s16 = sadd.s32 1, %s1619_s16   ;;  %s1997_s12 = smov %s1607_s13 }
 0x12b   : > { %p10_p10 = scmp.ge.s32.totalorder %s13_s16, 4   ;;  %s1998_s13 = smov %s1676_s20 }
 0x12c   : > { %s1999_s14 = smov %s1615_s15  ;;  %s2000_s15 = smov %s2002_s17 }
 0x12d   :  { %12 = sbr.rel (!%p10_p10) target bundleno = 3 (0x3), region = 119 }

// kernel: multi_step_cifar10dvs_forward.21
= control target key start
LH: loop header
LB: loop body
LE: loop exit
PB: predicated region body
PF: predicated region fallthrough
CT: control target
= control target key end

     0   :  { %s311_s6 = smov 0   ;;  %s313_s7 = smov 0   ;;  %s344_s0 = inlined_call_operand.vmem [shape: bf16[4,8,128], index: 0, kind: input, shape index: {}]   ;;  %s345_s1 = inlined_call_operand.vmem [shape: bf16[4,8,128], index: 1, kind: output, shape index: {}]  }
   0x1   :  { %s315_s8 = smov 0  }
   0x2 LB: > { %s20_s9 = sadd.s32 1, %s293_s7  ;;  %p242_p0 = scmp.ge.s32.totalorder %s297_s8, 1  ;;  %s297_s8 = sphi %s315_s8, %s11_s8   ;;  %s293_s7 = sphi %s313_s7, %s347_s7   ;;  %s289_s6 = sphi %s311_s6, %s346_s6  }
   0x3   : > { %p21_p1 = scmp.ge.s32.totalorder %s20_s9, 4  ;;  %p105_p2 = scmp.lt.s32.totalorder %s297_s8, 5 }
   0x5   : > { %s349_s9 = smov (%p21_p1, %s20_s9), 0  ;;  %p106_p3 = pnand %p242_p0, %p105_p2 }
   0x6   : > { %p129_p4 = scmp.lt.s32.totalorder (!%p106_p3), %s289_s6, 3  ;;  %p245_p5 = scmp.ne.s32.totalorder (!%p106_p3), %s289_s6, 0 }
   0x7   : > { %109 = sbr.rel (%p106_p3) target bundleno = 42 (0x2a), region = 24 }
   0xc   : > { %s130_s10 = scalar_select %p129_p4, %s289_s6, 3 }
   0xd   : > { %146 = sbr.rel (%p245_p5) target bundleno = 20 (0x14), region = 28 }
   0xe   : > { %s243_s11 = sshll.u32 %s130_s10, 2 }
   0xf   : > { %s135_s14 = scalar_lea.vmem %s344_s0, %s243_s11  ;;  %s142_s17 = scalar_lea.vmem %s345_s1, %s243_s11 }
  0x12   : > { %v299_v0 = vmov 0.0  }
  0x13   : > { %147 = vst [vmem:[#allocation2] sm:$0xff] %v299_v0 }
  0x14 PF: > { %v149_v2 = vld [vmem:[%s135_s14] sm:$0xf]  ;;  %v300_v7 = vmov 0.0  }
  0x15   : > { %v150_v3 = vunpack.c.l.bf16 %v149_v2 }
  0x1a   : > { %v148_v1 = vld [vmem:[#allocation2] sm:$0xff] }
  0x1b   : > { %v151_v4 = vsub.f32 %v150_v3, %v148_v1 }
  0x1d   : > { %v152_v5 = vmul.f32 0.5, %v151_v4 }
  0x1f   : > { %v153_v6 = vadd.f32 %v152_v5, %v148_v1 }
  0x21   : > { %vm154_vm0 = vcmp.ge.f32.partialorder %v153_v6, 1.0 }
  0x22   : > { %v246_v8 = vsel %vm154_vm0, 1.0, %v300_v7 }
  0x23   : > { %v157_v9 = vsub.f32 1.0, %v246_v8  ;;  %v159_v10 = vmul.f32 0.0, %v246_v8  ;;  %v162_v11 = vpack.c.bf16 %v246_v8, %v246_v8 }
  0x25   : > { %v158_v12 = vmul.f32 %v157_v9, %v153_v6  ;;  %163 = vst [vmem:[%s142_s17] sm:$0xf] %v162_v11 }
  0x27   : > { %v160_v13 = vadd.f32 %v159_v10, %v158_v12 }
  0x29   : > { %161 = vst [vmem:[#allocation2] sm:$0xff] %v160_v13 }
  0x2a PF: > { %s11_s8 = sadd.s32 1, %s297_s8   ;;  %s346_s6 = smov %s293_s7 }
  0x2b   : > { %p8_p6 = scmp.ge.s32.totalorder %s11_s8, 6   ;;  %s347_s7 = smov %s349_s9 }
  0x2d   :  { %10 = sbr.rel (!%p8_p6) target bundleno = 2 (0x2), region = 58 }

// kernel: multi_step_cifar10dvs_forward.22
= control target key start
LH: loop header
LB: loop body
LE: loop exit
PB: predicated region body
PF: predicated region fallthrough
CT: control target
= control target key end

     0   :  { %s650_s1 = inlined_call_operand.vmem [shape: bf16[512,128], index: 1, kind: input, shape index: {}]   ;;  %s651_s0 = inlined_call_operand.vmem [shape: bf16[8,512], index: 0, kind: input, shape index: {}]   ;;  %s652_s2 = inlined_call_operand.vmem [shape: f32[1,128], index: 2, kind: input, shape index: {}]   ;;  %s653_s3 = inlined_call_operand.vmem [shape: bf16[8,128], index: 3, kind: output, shape index: {}]  }
   0x1   :  { %v496_v0 = vld [vmem:[%s650_s1 + $0x38] sm:$0xff]  ;;  %v495_v4 = vld [vmem:[%s650_s1 + $0x30] sm:$0xff]  ;;  %v494_v8 = vld [vmem:[%s650_s1 + $0x28] sm:$0xff] }
   0x2   :  { %v504_v1 = vld [vmem:[%s650_s1 + $0x78] sm:$0xff]  ;;  %292 = vmatpush.bf16.msra.mxu0 %v496_v0  ;;  %v503_v5 = vld [vmem:[%s650_s1 + $0x70] sm:$0xff]  ;;  %v502_v9 = vld [vmem:[%s650_s1 + $0x68] sm:$0xff] }
   0x3   :  { %v512_v2 = vld [vmem:[%s650_s1 + $0xb8] sm:$0xff]  ;;  %305 = vmatpush.bf16.msra.mxu1 %v504_v1  ;;  %v511_v6 = vld [vmem:[%s650_s1 + $0xb0] sm:$0xff]  ;;  %v510_v10 = vld [vmem:[%s650_s1 + $0xa8] sm:$0xff] }
   0x4   :  { %v520_v3 = vld [vmem:[%s650_s1 + $0xf8] sm:$0xff]  ;;  %318 = vmatpush.bf16.msra.mxu2 %v512_v2  ;;  %v519_v7 = vld [vmem:[%s650_s1 + $0xf0] sm:$0xff]  ;;  %v518_v11 = vld [vmem:[%s650_s1 + $0xe8] sm:$0xff] }
   0x5   :  { %331 = vmatpush.bf16.msra.mxu3 %v520_v3  ;;  %v493_v12 = vld [vmem:[%s650_s1 + $0x20] sm:$0xff]  ;;  %v492_v16 = vld [vmem:[%s650_s1 + $0x18] sm:$0xff]  ;;  %v491_v20 = vld [vmem:[%s650_s1 + $0x10] sm:$0xff] }
   0x6   :  { %293 = vmatpush.bf16.msra.mxu0 %v495_v4  ;;  %v501_v13 = vld [vmem:[%s650_s1 + $0x60] sm:$0xff]  ;;  %v500_v17 = vld [vmem:[%s650_s1 + $0x58] sm:$0xff]  ;;  %v499_v21 = vld [vmem:[%s650_s1 + $0x50] sm:$0xff] }
   0x7   :  { %306 = vmatpush.bf16.msra.mxu1 %v503_v5  ;;  %v509_v14 = vld [vmem:[%s650_s1 + $0xa0] sm:$0xff]  ;;  %v508_v18 = vld [vmem:[%s650_s1 + $0x98] sm:$0xff]  ;;  %v507_v22 = vld [vmem:[%s650_s1 + $0x90] sm:$0xff] }
   0x8   :  { %319 = vmatpush.bf16.msra.mxu2 %v511_v6  ;;  %v517_v15 = vld [vmem:[%s650_s1 + $0xe0] sm:$0xff]  ;;  %v516_v19 = vld [vmem:[%s650_s1 + $0xd8] sm:$0xff]  ;;  %v515_v23 = vld [vmem:[%s650_s1 + $0xd0] sm:$0xff] }
   0x9   :  { %332 = vmatpush.bf16.msra.mxu3 %v519_v7  ;;  %v490_v24 = vld [vmem:[%s650_s1 + $0x8] sm:$0xff]  ;;  %v20_v26 = vld [vmem:[%s651_s0] sm:$0xff] }
   0xa   :  { %294 = vmatpush.bf16.msra.mxu0 %v494_v8  ;;  %v498_v25 = vld [vmem:[%s650_s1 + $0x48] sm:$0xff]  ;;  %v88_v30 = vunpack.c.l.b16 %v20_v26  ;;  %v89_v31 = vunpack.c.h.b16 %v20_v26  ;;  %v489_v32 = vld [vmem:[%s650_s1] sm:$0xff] }
   0xb   :  { %307 = vmatpush.bf16.msra.mxu1 %v502_v9  ;;  %v506_v27 = vld [vmem:[%s650_s1 + $0x88] sm:$0xff]  ;;  %v497_v33 = vld [vmem:[%s650_s1 + $0x40] sm:$0xff] }
   0xc   :  { %320 = vmatpush.bf16.msra.mxu2 %v510_v10  ;;  %v514_v28 = vld [vmem:[%s650_s1 + $0xc8] sm:$0xff]  ;;  %v505_v36 = vld [vmem:[%s650_s1 + $0x80] sm:$0xff]  ;;  %v92_v38 = vpack.c.b16 %v88_v30, %v88_v30  ;;  %v93_v39 = vpack.c.b16 %v89_v31, %v89_v31 }
   0xd   :  { %333 = vmatpush.bf16.msra.mxu3 %v518_v11  ;;  %v21_v29 = vld [vmem:[%s651_s0 + $0x8] sm:$0xff]  ;;  %v513_v37 = vld [vmem:[%s650_s1 + $0xc0] sm:$0xff] }
   0xe   :  { %295 = vmatpush.bf16.msra.mxu0 %v493_v12  ;;  %v90_v34 = vunpack.c.l.b16 %v21_v29  ;;  %v91_v35 = vunpack.c.h.b16 %v21_v29  ;;  %v521_v48 = vld [vmem:[%s652_s2] ss:$0 sm:$0xff] }
   0xf   :  { %308 = vmatpush.bf16.msra.mxu1 %v501_v13 }
  0x10   :  { %321 = vmatpush.bf16.msra.mxu2 %v509_v14  ;;  %v94_v40 = vpack.c.b16 %v90_v34, %v90_v34  ;;  %v95_v41 = vpack.c.b16 %v91_v35, %v91_v35 }
  0x11   :  { %334 = vmatpush.bf16.msra.mxu3 %v517_v15 }
  0x12   :  { %296 = vmatpush.bf16.msra.mxu0 %v492_v16 }
  0x13   :  { %309 = vmatpush.bf16.msra.mxu1 %v500_v17 }
  0x14   :  { %322 = vmatpush.bf16.msra.mxu2 %v508_v18 }
  0x15   :  { %335 = vmatpush.bf16.msra.mxu3 %v516_v19 }
  0x16   :  { %297 = vmatpush.bf16.msra.mxu0 %v491_v20 }
  0x17   :  { %310 = vmatpush.bf16.msra.mxu1 %v499_v21 }
  0x18   :  { %323 = vmatpush.bf16.msra.mxu2 %v507_v22 }
  0x19   :  { %336 = vmatpush.bf16.msra.mxu3 %v515_v23 }
  0x1a   :  { %298 = vmatpush.bf16.msra.mxu0 %v490_v24 }
  0x1b   :  { %311 = vmatpush.bf16.msra.mxu1 %v498_v25 }
  0x1c   :  { %324 = vmatpush.bf16.msra.mxu2 %v506_v27 }
  0x1d   :  { %337 = vmatpush.bf16.msra.mxu3 %v514_v28 }
  0x1e   :  { %299 = vmatpush.bf16.msra.mxu0 %v489_v32 }
  0x1f   :  { %312 = vmatpush.bf16.msra.mxu1 %v497_v33 }
  0x20   :  { %325 = vmatpush.bf16.msra.mxu2 %v505_v36 }
  0x21   :  { %338 = vmatpush.bf16.msra.mxu3 %v513_v37  ;;  %300 = vmatmul.bf16.vlgmr.msra.gmra.mxu0 %v92_v38 }
  0x22   :  { %313 = vmatmul.bf16.vlgmr.msra.gmra.mxu1 %v93_v39 }
  0x23   :  { %326 = vmatmul.bf16.vlgmr.msra.gmra.mxu2 %v94_v40 }
  0x24   :  { %339 = vmatmul.bf16.vlgmr.msra.gmra.mxu3 %v95_v41 }
  0x9e   :  { %v301_v42 = vpop.f32.mrf.mxu0 }
  0x9f   :  { %v314_v43 = vpop.f32.mrf.mxu1 }
  0xa0   :  { %v315_v44 = vadd.f32 %v314_v43, %v301_v42 }
  0xa6   :  { %v327_v45 = vpop.f32.mrf.mxu2  ;;  %v303_v49 = vpop.f32.mrf.mxu0 }
  0xa7   :  { %v340_v46 = vpop.f32.mrf.mxu3  ;;  %v328_v47 = vadd.f32 %v327_v45, %v315_v44  ;;  %v316_v50 = vpop.f32.mrf.mxu1 }
  0xa9   :  { %v341_v51 = vadd.f32 %v340_v46, %v328_v47 }
  0xab   :  { %v354_v52 = vadd.f32 %v521_v48, %v341_v51 }
  0xad   :  { %v355_v53 = vpack.c.bf16 %v354_v52, %v354_v52 }
  0xae   :  { %v329_v54 = vpop.f32.mrf.mxu2 }
  0xaf   :  { %v342_v55 = vpop.f32.mrf.mxu3  ;;  %356 = vst [vmem:[%s653_s3] sm:$0xf] %v355_v53 }

</bundles_post_ra>
